<compile_context>
chip_gen: v7x
topology: tpu7x:2x2x1
jax: 0.10.0
libtpu: 0.0.40
codegen_flags: <defaults>
</compile_context>

<pallas_src>
import functools

import jax
import jax.numpy as jnp
from jax.experimental import pallas as pl
from jax.experimental.pallas import tpu as pltpu


# ----------------------------------------------------------------------------
# Fused kernel: hoisted input projection -> sequential GRU recurrence (2 fused
# matmuls per step) -> deferred FC head.  Single invocation, no grid.
# ----------------------------------------------------------------------------
def gru_decoder_kernel(xaug_ref,   # (T*Bp, IN+1) teacher-forced inputs + ones col
                       w0x_ref,    # (IN+1, 3Hp)  L0 input weights [r|z|n] + bias row
                       w0h_ref,    # (Hp,   3Hp)  L0 hidden weights [r|z|n]
                       w1_ref,     # (2Hp,  4Hp)  L1 fused weights  [r|z|n_x|n_h]
                       b_ref,      # (8, Hp)      bias rows (see wrapper)
                       fcw_ref,    # (Hp, OD)
                       fcb_ref,    # (1, OD)
                       o_ref,      # (T*Bp, OD)
                       gi0_ref,    # (T*Bp, 3Hp)  VMEM scratch (hoisted L0 input proj)
                       h1a_ref,    # (T*Bp, Hp)   VMEM scratch (top-layer h per step)
                       *, T, Bp, Hp, unroll):
    def mm(a, w):
        return jnp.dot(a, w, preferred_element_type=jnp.float32)

    # ---- Phase 1: hoisted layer-0 input projection, all T steps in one matmul.
    # Biases are folded in via the ones column of xaug / bias row of w0x.
    gi0_ref[...] = mm(xaug_ref[...], w0x_ref[...])

    # ---- Loop-invariant bias broadcasts (hoisted: JAX does not CSE these). ----
    b0_nh = jnp.broadcast_to(b_ref[0:1, :], (Bp, Hp))   # L0 b_hh_n
    b1_r  = jnp.broadcast_to(b_ref[1:2, :], (Bp, Hp))   # L1 b_ih_r + b_hh_r
    b1_z  = jnp.broadcast_to(b_ref[2:3, :], (Bp, Hp))   # L1 b_ih_z + b_hh_z
    b1_ni = jnp.broadcast_to(b_ref[3:4, :], (Bp, Hp))   # L1 b_ih_n
    b1_nh = jnp.broadcast_to(b_ref[4:5, :], (Bp, Hp))   # L1 b_hh_n

    # ---- Phase 2: sequential recurrence, 2 fused MXU ops per step. ----
    def step(t, carry):
        h0, h1 = carry
        off = pl.multiple_of(t * Bp, Bp)          # full-sublane-tile offsets
        gi = gi0_ref[pl.ds(off, Bp), :]           # (Bp, 3Hp), tile-aligned load

        # Layer 0: one recurrent matmul; gate slices at vreg boundaries.
        gh = mm(h0, w0h_ref[...])                 # (Bp, 3Hp)
        r0 = jax.nn.sigmoid(gi[:, 0:Hp] + gh[:, 0:Hp])
        z0 = jax.nn.sigmoid(gi[:, Hp:2 * Hp] + gh[:, Hp:2 * Hp])
        n0 = jnp.tanh(gi[:, 2 * Hp:3 * Hp] + r0 * (gh[:, 2 * Hp:3 * Hp] + b0_nh))
        h0 = (1.0 - z0) * n0 + z0 * h0

        # Layer 1: all six gate products in one matmul on [h0 | h1].
        hcat = jnp.concatenate([h0, h1], axis=1)  # (Bp, 2Hp), vreg-boundary concat
        g1 = mm(hcat, w1_ref[...])                # (Bp, 4Hp)
        r1 = jax.nn.sigmoid(g1[:, 0:Hp] + b1_r)
        z1 = jax.nn.sigmoid(g1[:, Hp:2 * Hp] + b1_z)
        n1 = jnp.tanh(g1[:, 2 * Hp:3 * Hp] + b1_ni
                      + r1 * (g1[:, 3 * Hp:4 * Hp] + b1_nh))
        h1 = (1.0 - z1) * n1 + z1 * h1

        h1a_ref[pl.ds(off, Bp), :] = h1           # stash for the deferred head
        return h0, h1

    h_init = (jnp.zeros((Bp, Hp), jnp.float32), jnp.zeros((Bp, Hp), jnp.float32))
    jax.lax.fori_loop(0, T, step, h_init, unroll=unroll)

    # ---- Phase 3: deferred FC head — one matmul + tanh, one output store. ----
    o_ref[...] = jnp.tanh(mm(h1a_ref[...], fcw_ref[...]) + fcb_ref[...])


# ----------------------------------------------------------------------------
# Wrapper: builds the teacher-forced sequence, the lane-padded fused weights and
# the folded biases (one-time glue), then runs the fused kernel.
# ----------------------------------------------------------------------------
@jax.jit
def baseline_forward(x, xlens, params):
    del xlens  # accepted but unused, exactly as in the PyTorch forward()
    (wih0, whh0, bih0, bhh0, wih1, whh1, bih1, bhh1, fcw, fcb) = params

    f32 = jnp.float32
    B, T, _ = x.shape
    H = whh0.shape[0]
    OD = fcw.shape[1]
    IN = wih0.shape[0]                       # input_channels + output_dim (= 8)
    Bp = max(8, ((B + 7) // 8) * 8)          # sublane-tile padded batch
    Hp = ((H + 127) // 128) * 128            # lane-tile padded hidden width

    # Teacher-forced inputs for every step (known up front):
    #   step 0 : [ones(OD), emotion = x[:, 0, 4:8]]
    #   step i : [targets = x[:, i-1, 0:4], emotion]
    targets = x[:, :, 0:4]
    emo = x[:, 0:1, -4:]
    first = jnp.concatenate([jnp.ones((B, 1, OD), x.dtype), emo], axis=2)
    rest = jnp.concatenate([targets[:, :T - 1, :],
                            jnp.broadcast_to(emo, (B, T - 1, 4))], axis=2)
    seq = jnp.concatenate([first, rest], axis=1)                    # (B, T, IN)
    seq_aug = jnp.concatenate([seq, jnp.ones((B, T, 1), x.dtype)], axis=2)
    seq_tm = jnp.transpose(seq_aug, (1, 0, 2))                      # (T, B, IN+1)
    seq_tm = jnp.pad(seq_tm, ((0, 0), (0, Bp - B), (0, 0)))
    seq_tm = seq_tm.reshape(T * Bp, IN + 1).astype(f32)

    # Per-gate lane padding: (K, 3H) -> (K, 3Hp), gate g at columns [g*Hp, g*Hp+H).
    def pad_gates_cols(w):
        out = jnp.zeros((w.shape[0], 3 * Hp), f32)
        for g in range(3):
            out = out.at[:, g * Hp:g * Hp + H].set(w[:, g * H:(g + 1) * H])
        return out

    # Layer-0 input weights + folded-bias row (ones-column trick).
    b0_row = jnp.zeros((1, 3 * Hp), f32)
    b0_row = b0_row.at[:, 0:H].set(bih0[:, 0:H] + bhh0[:, 0:H])
    b0_row = b0_row.at[:, Hp:Hp + H].set(bih0[:, H:2 * H] + bhh0[:, H:2 * H])
    b0_row = b0_row.at[:, 2 * Hp:2 * Hp + H].set(bih0[:, 2 * H:3 * H])
    w0x_aug = jnp.concatenate([pad_gates_cols(wih0), b0_row], axis=0)  # (IN+1, 3Hp)

    # Layer-0 hidden weights, zero-padded rows to Hp.
    w0h = jnp.zeros((Hp, 3 * Hp), f32).at[0:H, :].set(pad_gates_cols(whh0))

    # Layer-1 fused weight over rows [h0 | h1], columns [r | z | n_x | n_h].
    w1 = jnp.zeros((2 * Hp, 4 * Hp), f32)
    w1 = w1.at[0:H, 0:H].set(wih1[:, 0:H])                       # r  <- h0
    w1 = w1.at[0:H, Hp:Hp + H].set(wih1[:, H:2 * H])             # z  <- h0
    w1 = w1.at[0:H, 2 * Hp:2 * Hp + H].set(wih1[:, 2 * H:3 * H])  # n_x <- h0
    w1 = w1.at[Hp:Hp + H, 0:H].set(whh1[:, 0:H])                 # r  <- h1
    w1 = w1.at[Hp:Hp + H, Hp:Hp + H].set(whh1[:, H:2 * H])       # z  <- h1
    w1 = w1.at[Hp:Hp + H, 3 * Hp:3 * Hp + H].set(whh1[:, 2 * H:3 * H])  # n_h <- h1

    # Remaining biases, lane-padded, stacked into one (8, Hp) tile.
    def pad_lane(v):
        return jnp.pad(v.astype(f32), ((0, 0), (0, Hp - H)))
    b = jnp.concatenate([
        pad_lane(bhh0[:, 2 * H:3 * H]),                  # 0: L0 b_hh_n
        pad_lane(bih1[:, 0:H] + bhh1[:, 0:H]),           # 1: L1 b_ih_r + b_hh_r
        pad_lane(bih1[:, H:2 * H] + bhh1[:, H:2 * H]),   # 2: L1 b_ih_z + b_hh_z
        pad_lane(bih1[:, 2 * H:3 * H]),                  # 3: L1 b_ih_n
        pad_lane(bhh1[:, 2 * H:3 * H]),                  # 4: L1 b_hh_n
        jnp.zeros((3, Hp), f32),
    ], axis=0)                                           # (8, Hp)

    fcw_pad = jnp.zeros((Hp, OD), f32).at[0:H, :].set(fcw)
    fcb_f32 = fcb.astype(f32)

    # Explicit VMEM sizing (elements are f32): inputs + output + scratches, 2x margin.
    resident_elems = (seq_tm.size + w0x_aug.size + w0h.size + w1.size + b.size
                      + fcw_pad.size + fcb_f32.size + T * Bp * OD
                      + T * Bp * 3 * Hp + T * Bp * Hp)
    vmem_limit = int(min(max(2 * 4 * resident_elems, 8 << 20), 64 << 20))

    vmem = pl.BlockSpec(memory_space=pltpu.MemorySpace.VMEM)
    out_flat = pl.pallas_call(
        functools.partial(gru_decoder_kernel, T=T, Bp=Bp, Hp=Hp,
                          unroll=(Hp <= 128)),
        out_shape=jax.ShapeDtypeStruct((T * Bp, OD), f32),
        in_specs=[vmem] * 7,
        out_specs=vmem,
        scratch_shapes=[pltpu.VMEM((T * Bp, 3 * Hp), f32),
                        pltpu.VMEM((T * Bp, Hp), f32)],
        compiler_params=pltpu.CompilerParams(vmem_limit_bytes=vmem_limit),
    )(seq_tm, w0x_aug, w0h, w1, b, fcw_pad, fcb_f32)

    out = out_flat.reshape(T, Bp, OD)[:, :B, :]          # drop batch padding
    return jnp.transpose(out, (1, 0, 2))                 # (B, T, OD)


# ----------------------------------------------------------------------------
# Pure-JAX reference of the exact PyTorch forward (for validation).
# ----------------------------------------------------------------------------
def reference_forward(x, params, hidden_size, output_dim):
    (wih0, whh0, bih0, bhh0, wih1, whh1, bih1, bhh1, fcw, fcb) = params
    B, T, _ = x.shape
    H = hidden_size
    targets = x[:, :, 0:4]
    emo = x[:, 0, -4:]
    h0 = jnp.zeros((B, H), jnp.float32)
    h1 = jnp.zeros((B, H), jnp.float32)
    nxt = jnp.concatenate([jnp.ones((B, output_dim), x.dtype), emo], axis=1)

    def cell(xt, h, wih, whh, bih, bhh):
        gi = xt @ wih + bih
        gh = h @ whh + bhh
        r = jax.nn.sigmoid(gi[:, :H] + gh[:, :H])
        z = jax.nn.sigmoid(gi[:, H:2 * H] + gh[:, H:2 * H])
        n = jnp.tanh(gi[:, 2 * H:] + r * gh[:, 2 * H:])
        return (1.0 - z) * n + z * h

    outs = []
    for i in range(T):
        h0 = cell(nxt, h0, wih0, whh0, bih0, bhh0)
        h1 = cell(h0, h1, wih1, whh1, bih1, bhh1)
        outs.append(jnp.tanh(h1 @ fcw + fcb))
        nxt = jnp.concatenate([targets[:, i, :], emo], axis=1)
    return jnp.stack(outs, axis=1)


# ----------------------------------------------------------------------------
# Deterministic PyTorch-style init (uniform(-1/sqrt(H), 1/sqrt(H))); weights
# stored pre-transposed (x @ W), gate-concatenated ([r, z, n] along 3H).
# ----------------------------------------------------------------------------
def init_params(key, input_size, hidden_size, output_dim):
    H = hidden_size
    k = 1.0 / jnp.sqrt(jnp.float32(H))
    keys = jax.random.split(key, 10)
    u = lambda kk, shape: jax.random.uniform(kk, shape, jnp.float32, -k, k)
    wih0 = u(keys[0], (input_size, 3 * H))
    whh0 = u(keys[1], (H, 3 * H))
    bih0 = u(keys[2], (1, 3 * H))
    bhh0 = u(keys[3], (1, 3 * H))
    wih1 = u(keys[4], (H, 3 * H))
    whh1 = u(keys[5], (H, 3 * H))
    bih1 = u(keys[6], (1, 3 * H))
    bhh1 = u(keys[7], (1, 3 * H))
    fcw = u(keys[8], (H, output_dim))
    fcb = u(keys[9], (1, output_dim))
    return (wih0, whh0, bih0, bhh0, wih1, whh1, bih1, bhh1, fcw, fcb)


if __name__ == "__main__":
    # The forward is only shape-valid with input_channels=4, output_dim=4
    # (x carries 8 feature channels: 0:4 targets/noise, 4:8 emotion).
    B, T = 2, 8
    INPUT_CHANNELS = 4
    OUTPUT_DIM = 4
    INPUT_SIZE = INPUT_CHANNELS + OUTPUT_DIM   # 8
    HIDDEN = 32                                # scaled-down from the default 200
    C = 8

    key = jax.random.PRNGKey(0)
    kx, kp = jax.random.split(key)
    x = jax.random.normal(kx, (B, T, C), jnp.float32)
    xlens = jnp.full((B,), T, jnp.int32)       # unused, kept for API fidelity
    params = init_params(kp, INPUT_SIZE, HIDDEN, OUTPUT_DIM)

    out = baseline_forward(x, xlens, params)
    out = jax.block_until_ready(out)

    ref = reference_forward(x, params, HIDDEN, OUTPUT_DIM)
    assert out.shape == (B, T, OUTPUT_DIM), out.shape
    max_err = float(jnp.max(jnp.abs(out - ref)))
    assert jnp.allclose(out, ref, rtol=5e-3, atol=5e-3), max_err

    print("KERNEL_OK")
</pallas_src>

<mosaic_0001>
module attributes {stable_mosaic.version = 11 : i64} {
  func.func @gru_decoder_kernel(%arg0: memref<64x9xf32, #tpu.memory_space<vmem>>, %arg1: memref<9x384xf32, #tpu.memory_space<vmem>>, %arg2: memref<128x384xf32, #tpu.memory_space<vmem>>, %arg3: memref<256x512xf32, #tpu.memory_space<vmem>>, %arg4: memref<8x128xf32, #tpu.memory_space<vmem>>, %arg5: memref<128x4xf32, #tpu.memory_space<vmem>>, %arg6: memref<1x4xf32, #tpu.memory_space<vmem>>, %arg7: memref<64x4xf32, #tpu.memory_space<vmem>>, %arg8: memref<64x384xf32, #tpu.memory_space<vmem>>, %arg9: memref<64x128xf32, #tpu.memory_space<vmem>>) attributes {dimension_semantics = [], scalar_prefetch = 0 : i64, scratch_operands = 2 : i64, tpu.core_type = #tpu.core_type<tc>} {
    %c0 = arith.constant 0 : index
    %c0_0 = arith.constant 0 : index
    %0 = vector.load %arg0[%c0, %c0_0] : memref<64x9xf32, #tpu.memory_space<vmem>>, vector<64x9xf32>
    %c0_1 = arith.constant 0 : index
    %c0_2 = arith.constant 0 : index
    %1 = vector.load %arg1[%c0_1, %c0_2] : memref<9x384xf32, #tpu.memory_space<vmem>>, vector<9x384xf32>
    %cst = arith.constant dense<0.000000e+00> : vector<64x384xf32>
    %2 = tpu.matmul %0, %1, %cst {dimension_numbers = #tpu.dot_dimension_numbers<[1], [0], [0], [1], [0, 0, 1, 1], [], []>} : vector<64x9xf32>, vector<9x384xf32>, vector<64x384xf32> -> vector<64x384xf32>
    %c0_3 = arith.constant 0 : index
    %c0_4 = arith.constant 0 : index
    %3 = vector.load %arg8[%c0_3, %c0_4] : memref<64x384xf32, #tpu.memory_space<vmem>>, vector<64x384xf32>
    tpu.vector_store %arg8[%c0_3, %c0_4], %2 {strides = array<i32>} : memref<64x384xf32, #tpu.memory_space<vmem>>, vector<64x384xf32>,
    %c0_5 = arith.constant 0 : index
    %c0_6 = arith.constant 0 : index
    %4 = vector.load %arg4[%c0_5, %c0_6] : memref<8x128xf32, #tpu.memory_space<vmem>>, vector<1x128xf32>
    %5 = vector.shape_cast %4 : vector<1x128xf32> to vector<1x128xf32>
    %6 = vector.broadcast %5 : vector<1x128xf32> to vector<8x128xf32>
    %c1 = arith.constant 1 : index
    %c0_7 = arith.constant 0 : index
    %7 = vector.load %arg4[%c1, %c0_7] : memref<8x128xf32, #tpu.memory_space<vmem>>, vector<1x128xf32>
    %8 = vector.shape_cast %7 : vector<1x128xf32> to vector<1x128xf32>
    %9 = vector.broadcast %8 : vector<1x128xf32> to vector<8x128xf32>
    %c2 = arith.constant 2 : index
    %c0_8 = arith.constant 0 : index
    %10 = vector.load %arg4[%c2, %c0_8] : memref<8x128xf32, #tpu.memory_space<vmem>>, vector<1x128xf32>
    %11 = vector.shape_cast %10 : vector<1x128xf32> to vector<1x128xf32>
    %12 = vector.broadcast %11 : vector<1x128xf32> to vector<8x128xf32>
    %c3 = arith.constant 3 : index
    %c0_9 = arith.constant 0 : index
    %13 = vector.load %arg4[%c3, %c0_9] : memref<8x128xf32, #tpu.memory_space<vmem>>, vector<1x128xf32>
    %14 = vector.shape_cast %13 : vector<1x128xf32> to vector<1x128xf32>
    %15 = vector.broadcast %14 : vector<1x128xf32> to vector<8x128xf32>
    %c4 = arith.constant 4 : index
    %c0_10 = arith.constant 0 : index
    %16 = vector.load %arg4[%c4, %c0_10] : memref<8x128xf32, #tpu.memory_space<vmem>>, vector<1x128xf32>
    %17 = vector.shape_cast %16 : vector<1x128xf32> to vector<1x128xf32>
    %18 = vector.broadcast %17 : vector<1x128xf32> to vector<8x128xf32>
    %cst_11 = arith.constant 0.000000e+00 : f32
    %19 = vector.broadcast %cst_11 : f32 to vector<8x128xf32>
    %cst_12 = arith.constant 0.000000e+00 : f32
    %20 = vector.broadcast %cst_12 : f32 to vector<8x128xf32>
    %c0_i32 = arith.constant 0 : i32
    %c8_i32 = arith.constant 8 : i32
    %21 = arith.muli %c0_i32, %c8_i32 : i32
    %22 = tpu.assume_multiple %21, 8 : i32
    %23 = arith.index_cast %22 : i32 to index
    %c0_13 = arith.constant 0 : index
    %24 = vector.load %arg8[%23, %c0_13] : memref<64x384xf32, #tpu.memory_space<vmem>>, vector<8x384xf32>
    %c0_14 = arith.constant 0 : index
    %c0_15 = arith.constant 0 : index
    %25 = vector.load %arg2[%c0_14, %c0_15] : memref<128x384xf32, #tpu.memory_space<vmem>>, vector<128x384xf32>
    %cst_16 = arith.constant dense<0.000000e+00> : vector<8x384xf32>
    %26 = tpu.matmul %19, %25, %cst_16 {dimension_numbers = #tpu.dot_dimension_numbers<[1], [0], [0], [1], [0, 0, 1, 1], [], []>} : vector<8x128xf32>, vector<128x384xf32>, vector<8x384xf32> -> vector<8x384xf32>
    %27 = vector.extract_strided_slice %24 {offsets = [0, 0], sizes = [8, 128], strides = [1, 1]} : vector<8x384xf32> to vector<8x128xf32>
    %28 = vector.extract_strided_slice %26 {offsets = [0, 0], sizes = [8, 128], strides = [1, 1]} : vector<8x384xf32> to vector<8x128xf32>
    %29 = arith.addf %27, %28 : vector<8x128xf32>
    %30 = arith.negf %29 : vector<8x128xf32>
    %31 = math.exp %30 : vector<8x128xf32>
    %cst_17 = arith.constant 1.000000e+00 : f32
    %32 = vector.broadcast %cst_17 : f32 to vector<8x128xf32>
    %33 = arith.addf %32, %31 : vector<8x128xf32>
    %34 = arith.divf %32, %33 : vector<8x128xf32>
    %35 = vector.extract_strided_slice %24 {offsets = [0, 128], sizes = [8, 128], strides = [1, 1]} : vector<8x384xf32> to vector<8x128xf32>
    %36 = vector.extract_strided_slice %26 {offsets = [0, 128], sizes = [8, 128], strides = [1, 1]} : vector<8x384xf32> to vector<8x128xf32>
    %37 = arith.addf %35, %36 : vector<8x128xf32>
    %38 = arith.negf %37 : vector<8x128xf32>
    %39 = math.exp %38 : vector<8x128xf32>
    %cst_18 = arith.constant 1.000000e+00 : f32
    %40 = vector.broadcast %cst_18 : f32 to vector<8x128xf32>
    %41 = arith.addf %40, %39 : vector<8x128xf32>
    %42 = arith.divf %40, %41 : vector<8x128xf32>
    %43 = vector.extract_strided_slice %24 {offsets = [0, 256], sizes = [8, 128], strides = [1, 1]} : vector<8x384xf32> to vector<8x128xf32>
    %44 = vector.extract_strided_slice %26 {offsets = [0, 256], sizes = [8, 128], strides = [1, 1]} : vector<8x384xf32> to vector<8x128xf32>
    %45 = arith.addf %44, %6 : vector<8x128xf32>
    %46 = arith.mulf %34, %45 : vector<8x128xf32>
    %47 = arith.addf %43, %46 : vector<8x128xf32>
    %48 = math.tanh %47 : vector<8x128xf32>
    %cst_19 = arith.constant 1.000000e+00 : f32
    %49 = vector.broadcast %cst_19 : f32 to vector<8x128xf32>
    %50 = arith.subf %49, %42 : vector<8x128xf32>
    %51 = arith.mulf %50, %48 : vector<8x128xf32>
    %52 = arith.mulf %42, %19 : vector<8x128xf32>
    %53 = arith.addf %51, %52 : vector<8x128xf32>
    %54 = tpu.concatenate %53, %20 in 1 : vector<8x128xf32>, vector<8x128xf32> -> vector<8x256xf32>
    %c0_20 = arith.constant 0 : index
    %c0_21 = arith.constant 0 : index
    %55 = vector.load %arg3[%c0_20, %c0_21] : memref<256x512xf32, #tpu.memory_space<vmem>>, vector<256x512xf32>
    %cst_22 = arith.constant dense<0.000000e+00> : vector<8x512xf32>
    %56 = tpu.matmul %54, %55, %cst_22 {dimension_numbers = #tpu.dot_dimension_numbers<[1], [0], [0], [1], [0, 0, 1, 1], [], []>} : vector<8x256xf32>, vector<256x512xf32>, vector<8x512xf32> -> vector<8x512xf32>
    %57 = vector.extract_strided_slice %56 {offsets = [0, 0], sizes = [8, 128], strides = [1, 1]} : vector<8x512xf32> to vector<8x128xf32>
    %58 = arith.addf %57, %9 : vector<8x128xf32>
    %59 = arith.negf %58 : vector<8x128xf32>
    %60 = math.exp %59 : vector<8x128xf32>
    %cst_23 = arith.constant 1.000000e+00 : f32
    %61 = vector.broadcast %cst_23 : f32 to vector<8x128xf32>
    %62 = arith.addf %61, %60 : vector<8x128xf32>
    %63 = arith.divf %61, %62 : vector<8x128xf32>
    %64 = vector.extract_strided_slice %56 {offsets = [0, 128], sizes = [8, 128], strides = [1, 1]} : vector<8x512xf32> to vector<8x128xf32>
    %65 = arith.addf %64, %12 : vector<8x128xf32>
    %66 = arith.negf %65 : vector<8x128xf32>
    %67 = math.exp %66 : vector<8x128xf32>
    %cst_24 = arith.constant 1.000000e+00 : f32
    %68 = vector.broadcast %cst_24 : f32 to vector<8x128xf32>
    %69 = arith.addf %68, %67 : vector<8x128xf32>
    %70 = arith.divf %68, %69 : vector<8x128xf32>
    %71 = vector.extract_strided_slice %56 {offsets = [0, 256], sizes = [8, 128], strides = [1, 1]} : vector<8x512xf32> to vector<8x128xf32>
    %72 = arith.addf %71, %15 : vector<8x128xf32>
    %73 = vector.extract_strided_slice %56 {offsets = [0, 384], sizes = [8, 128], strides = [1, 1]} : vector<8x512xf32> to vector<8x128xf32>
    %74 = arith.addf %73, %18 : vector<8x128xf32>
    %75 = arith.mulf %63, %74 : vector<8x128xf32>
    %76 = arith.addf %72, %75 : vector<8x128xf32>
    %77 = math.tanh %76 : vector<8x128xf32>
    %cst_25 = arith.constant 1.000000e+00 : f32
    %78 = vector.broadcast %cst_25 : f32 to vector<8x128xf32>
    %79 = arith.subf %78, %70 : vector<8x128xf32>
    %80 = arith.mulf %79, %77 : vector<8x128xf32>
    %81 = arith.mulf %70, %20 : vector<8x128xf32>
    %82 = arith.addf %80, %81 : vector<8x128xf32>
    %83 = arith.index_cast %22 : i32 to index
    %c0_26 = arith.constant 0 : index
    %84 = vector.load %arg9[%83, %c0_26] : memref<64x128xf32, #tpu.memory_space<vmem>>, vector<8x128xf32>
    tpu.vector_store %arg9[%83, %c0_26], %82 {strides = array<i32>} : memref<64x128xf32, #tpu.memory_space<vmem>>, vector<8x128xf32>,
    %c1_i32 = arith.constant 1 : i32
    %c8_i32_27 = arith.constant 8 : i32
    %85 = arith.muli %c1_i32, %c8_i32_27 : i32
    %86 = tpu.assume_multiple %85, 8 : i32
    %87 = arith.index_cast %86 : i32 to index
    %c0_28 = arith.constant 0 : index
    %88 = vector.load %arg8[%87, %c0_28] : memref<64x384xf32, #tpu.memory_space<vmem>>, vector<8x384xf32>
    %c0_29 = arith.constant 0 : index
    %c0_30 = arith.constant 0 : index
    %89 = vector.load %arg2[%c0_29, %c0_30] : memref<128x384xf32, #tpu.memory_space<vmem>>, vector<128x384xf32>
    %cst_31 = arith.constant dense<0.000000e+00> : vector<8x384xf32>
    %90 = tpu.matmul %53, %89, %cst_31 {dimension_numbers = #tpu.dot_dimension_numbers<[1], [0], [0], [1], [0, 0, 1, 1], [], []>} : vector<8x128xf32>, vector<128x384xf32>, vector<8x384xf32> -> vector<8x384xf32>
    %91 = vector.extract_strided_slice %88 {offsets = [0, 0], sizes = [8, 128], strides = [1, 1]} : vector<8x384xf32> to vector<8x128xf32>
    %92 = vector.extract_strided_slice %90 {offsets = [0, 0], sizes = [8, 128], strides = [1, 1]} : vector<8x384xf32> to vector<8x128xf32>
    %93 = arith.addf %91, %92 : vector<8x128xf32>
    %94 = arith.negf %93 : vector<8x128xf32>
    %95 = math.exp %94 : vector<8x128xf32>
    %cst_32 = arith.constant 1.000000e+00 : f32
    %96 = vector.broadcast %cst_32 : f32 to vector<8x128xf32>
    %97 = arith.addf %96, %95 : vector<8x128xf32>
    %98 = arith.divf %96, %97 : vector<8x128xf32>
    %99 = vector.extract_strided_slice %88 {offsets = [0, 128], sizes = [8, 128], strides = [1, 1]} : vector<8x384xf32> to vector<8x128xf32>
    %100 = vector.extract_strided_slice %90 {offsets = [0, 128], sizes = [8, 128], strides = [1, 1]} : vector<8x384xf32> to vector<8x128xf32>
    %101 = arith.addf %99, %100 : vector<8x128xf32>
    %102 = arith.negf %101 : vector<8x128xf32>
    %103 = math.exp %102 : vector<8x128xf32>
    %cst_33 = arith.constant 1.000000e+00 : f32
    %104 = vector.broadcast %cst_33 : f32 to vector<8x128xf32>
    %105 = arith.addf %104, %103 : vector<8x128xf32>
    %106 = arith.divf %104, %105 : vector<8x128xf32>
    %107 = vector.extract_strided_slice %88 {offsets = [0, 256], sizes = [8, 128], strides = [1, 1]} : vector<8x384xf32> to vector<8x128xf32>
    %108 = vector.extract_strided_slice %90 {offsets = [0, 256], sizes = [8, 128], strides = [1, 1]} : vector<8x384xf32> to vector<8x128xf32>
    %109 = arith.addf %108, %6 : vector<8x128xf32>
    %110 = arith.mulf %98, %109 : vector<8x128xf32>
    %111 = arith.addf %107, %110 : vector<8x128xf32>
    %112 = math.tanh %111 : vector<8x128xf32>
    %cst_34 = arith.constant 1.000000e+00 : f32
    %113 = vector.broadcast %cst_34 : f32 to vector<8x128xf32>
    %114 = arith.subf %113, %106 : vector<8x128xf32>
    %115 = arith.mulf %114, %112 : vector<8x128xf32>
    %116 = arith.mulf %106, %53 : vector<8x128xf32>
    %117 = arith.addf %115, %116 : vector<8x128xf32>
    %118 = tpu.concatenate %117, %82 in 1 : vector<8x128xf32>, vector<8x128xf32> -> vector<8x256xf32>
    %c0_35 = arith.constant 0 : index
    %c0_36 = arith.constant 0 : index
    %119 = vector.load %arg3[%c0_35, %c0_36] : memref<256x512xf32, #tpu.memory_space<vmem>>, vector<256x512xf32>
    %cst_37 = arith.constant dense<0.000000e+00> : vector<8x512xf32>
    %120 = tpu.matmul %118, %119, %cst_37 {dimension_numbers = #tpu.dot_dimension_numbers<[1], [0], [0], [1], [0, 0, 1, 1], [], []>} : vector<8x256xf32>, vector<256x512xf32>, vector<8x512xf32> -> vector<8x512xf32>
    %121 = vector.extract_strided_slice %120 {offsets = [0, 0], sizes = [8, 128], strides = [1, 1]} : vector<8x512xf32> to vector<8x128xf32>
    %122 = arith.addf %121, %9 : vector<8x128xf32>
    %123 = arith.negf %122 : vector<8x128xf32>
    %124 = math.exp %123 : vector<8x128xf32>
    %cst_38 = arith.constant 1.000000e+00 : f32
    %125 = vector.broadcast %cst_38 : f32 to vector<8x128xf32>
    %126 = arith.addf %125, %124 : vector<8x128xf32>
    %127 = arith.divf %125, %126 : vector<8x128xf32>
    %128 = vector.extract_strided_slice %120 {offsets = [0, 128], sizes = [8, 128], strides = [1, 1]} : vector<8x512xf32> to vector<8x128xf32>
    %129 = arith.addf %128, %12 : vector<8x128xf32>
    %130 = arith.negf %129 : vector<8x128xf32>
    %131 = math.exp %130 : vector<8x128xf32>
    %cst_39 = arith.constant 1.000000e+00 : f32
    %132 = vector.broadcast %cst_39 : f32 to vector<8x128xf32>
    %133 = arith.addf %132, %131 : vector<8x128xf32>
    %134 = arith.divf %132, %133 : vector<8x128xf32>
    %135 = vector.extract_strided_slice %120 {offsets = [0, 256], sizes = [8, 128], strides = [1, 1]} : vector<8x512xf32> to vector<8x128xf32>
    %136 = arith.addf %135, %15 : vector<8x128xf32>
    %137 = vector.extract_strided_slice %120 {offsets = [0, 384], sizes = [8, 128], strides = [1, 1]} : vector<8x512xf32> to vector<8x128xf32>
    %138 = arith.addf %137, %18 : vector<8x128xf32>
    %139 = arith.mulf %127, %138 : vector<8x128xf32>
    %140 = arith.addf %136, %139 : vector<8x128xf32>
    %141 = math.tanh %140 : vector<8x128xf32>
    %cst_40 = arith.constant 1.000000e+00 : f32
    %142 = vector.broadcast %cst_40 : f32 to vector<8x128xf32>
    %143 = arith.subf %142, %134 : vector<8x128xf32>
    %144 = arith.mulf %143, %141 : vector<8x128xf32>
    %145 = arith.mulf %134, %82 : vector<8x128xf32>
    %146 = arith.addf %144, %145 : vector<8x128xf32>
    %147 = arith.index_cast %86 : i32 to index
    %c0_41 = arith.constant 0 : index
    %148 = vector.load %arg9[%147, %c0_41] : memref<64x128xf32, #tpu.memory_space<vmem>>, vector<8x128xf32>
    tpu.vector_store %arg9[%147, %c0_41], %146 {strides = array<i32>} : memref<64x128xf32, #tpu.memory_space<vmem>>, vector<8x128xf32>,
    %c2_i32 = arith.constant 2 : i32
    %c8_i32_42 = arith.constant 8 : i32
    %149 = arith.muli %c2_i32, %c8_i32_42 : i32
    %150 = tpu.assume_multiple %149, 8 : i32
    %151 = arith.index_cast %150 : i32 to index
    %c0_43 = arith.constant 0 : index
    %152 = vector.load %arg8[%151, %c0_43] : memref<64x384xf32, #tpu.memory_space<vmem>>, vector<8x384xf32>
    %c0_44 = arith.constant 0 : index
    %c0_45 = arith.constant 0 : index
    %153 = vector.load %arg2[%c0_44, %c0_45] : memref<128x384xf32, #tpu.memory_space<vmem>>, vector<128x384xf32>
    %cst_46 = arith.constant dense<0.000000e+00> : vector<8x384xf32>
    %154 = tpu.matmul %117, %153, %cst_46 {dimension_numbers = #tpu.dot_dimension_numbers<[1], [0], [0], [1], [0, 0, 1, 1], [], []>} : vector<8x128xf32>, vector<128x384xf32>, vector<8x384xf32> -> vector<8x384xf32>
    %155 = vector.extract_strided_slice %152 {offsets = [0, 0], sizes = [8, 128], strides = [1, 1]} : vector<8x384xf32> to vector<8x128xf32>
    %156 = vector.extract_strided_slice %154 {offsets = [0, 0], sizes = [8, 128], strides = [1, 1]} : vector<8x384xf32> to vector<8x128xf32>
    %157 = arith.addf %155, %156 : vector<8x128xf32>
    %158 = arith.negf %157 : vector<8x128xf32>
    %159 = math.exp %158 : vector<8x128xf32>
    %cst_47 = arith.constant 1.000000e+00 : f32
    %160 = vector.broadcast %cst_47 : f32 to vector<8x128xf32>
    %161 = arith.addf %160, %159 : vector<8x128xf32>
    %162 = arith.divf %160, %161 : vector<8x128xf32>
    %163 = vector.extract_strided_slice %152 {offsets = [0, 128], sizes = [8, 128], strides = [1, 1]} : vector<8x384xf32> to vector<8x128xf32>
    %164 = vector.extract_strided_slice %154 {offsets = [0, 128], sizes = [8, 128], strides = [1, 1]} : vector<8x384xf32> to vector<8x128xf32>
    %165 = arith.addf %163, %164 : vector<8x128xf32>
    %166 = arith.negf %165 : vector<8x128xf32>
    %167 = math.exp %166 : vector<8x128xf32>
    %cst_48 = arith.constant 1.000000e+00 : f32
    %168 = vector.broadcast %cst_48 : f32 to vector<8x128xf32>
    %169 = arith.addf %168, %167 : vector<8x128xf32>
    %170 = arith.divf %168, %169 : vector<8x128xf32>
    %171 = vector.extract_strided_slice %152 {offsets = [0, 256], sizes = [8, 128], strides = [1, 1]} : vector<8x384xf32> to vector<8x128xf32>
    %172 = vector.extract_strided_slice %154 {offsets = [0, 256], sizes = [8, 128], strides = [1, 1]} : vector<8x384xf32> to vector<8x128xf32>
    %173 = arith.addf %172, %6 : vector<8x128xf32>
    %174 = arith.mulf %162, %173 : vector<8x128xf32>
    %175 = arith.addf %171, %174 : vector<8x128xf32>
    %176 = math.tanh %175 : vector<8x128xf32>
    %cst_49 = arith.constant 1.000000e+00 : f32
    %177 = vector.broadcast %cst_49 : f32 to vector<8x128xf32>
    %178 = arith.subf %177, %170 : vector<8x128xf32>
    %179 = arith.mulf %178, %176 : vector<8x128xf32>
    %180 = arith.mulf %170, %117 : vector<8x128xf32>
    %181 = arith.addf %179, %180 : vector<8x128xf32>
    %182 = tpu.concatenate %181, %146 in 1 : vector<8x128xf32>, vector<8x128xf32> -> vector<8x256xf32>
    %c0_50 = arith.constant 0 : index
    %c0_51 = arith.constant 0 : index
    %183 = vector.load %arg3[%c0_50, %c0_51] : memref<256x512xf32, #tpu.memory_space<vmem>>, vector<256x512xf32>
    %cst_52 = arith.constant dense<0.000000e+00> : vector<8x512xf32>
    %184 = tpu.matmul %182, %183, %cst_52 {dimension_numbers = #tpu.dot_dimension_numbers<[1], [0], [0], [1], [0, 0, 1, 1], [], []>} : vector<8x256xf32>, vector<256x512xf32>, vector<8x512xf32> -> vector<8x512xf32>
    %185 = vector.extract_strided_slice %184 {offsets = [0, 0], sizes = [8, 128], strides = [1, 1]} : vector<8x512xf32> to vector<8x128xf32>
    %186 = arith.addf %185, %9 : vector<8x128xf32>
    %187 = arith.negf %186 : vector<8x128xf32>
    %188 = math.exp %187 : vector<8x128xf32>
    %cst_53 = arith.constant 1.000000e+00 : f32
    %189 = vector.broadcast %cst_53 : f32 to vector<8x128xf32>
    %190 = arith.addf %189, %188 : vector<8x128xf32>
    %191 = arith.divf %189, %190 : vector<8x128xf32>
    %192 = vector.extract_strided_slice %184 {offsets = [0, 128], sizes = [8, 128], strides = [1, 1]} : vector<8x512xf32> to vector<8x128xf32>
    %193 = arith.addf %192, %12 : vector<8x128xf32>
    %194 = arith.negf %193 : vector<8x128xf32>
    %195 = math.exp %194 : vector<8x128xf32>
    %cst_54 = arith.constant 1.000000e+00 : f32
    %196 = vector.broadcast %cst_54 : f32 to vector<8x128xf32>
    %197 = arith.addf %196, %195 : vector<8x128xf32>
    %198 = arith.divf %196, %197 : vector<8x128xf32>
    %199 = vector.extract_strided_slice %184 {offsets = [0, 256], sizes = [8, 128], strides = [1, 1]} : vector<8x512xf32> to vector<8x128xf32>
    %200 = arith.addf %199, %15 : vector<8x128xf32>
    %201 = vector.extract_strided_slice %184 {offsets = [0, 384], sizes = [8, 128], strides = [1, 1]} : vector<8x512xf32> to vector<8x128xf32>
    %202 = arith.addf %201, %18 : vector<8x128xf32>
    %203 = arith.mulf %191, %202 : vector<8x128xf32>
    %204 = arith.addf %200, %203 : vector<8x128xf32>
    %205 = math.tanh %204 : vector<8x128xf32>
    %cst_55 = arith.constant 1.000000e+00 : f32
    %206 = vector.broadcast %cst_55 : f32 to vector<8x128xf32>
    %207 = arith.subf %206, %198 : vector<8x128xf32>
    %208 = arith.mulf %207, %205 : vector<8x128xf32>
    %209 = arith.mulf %198, %146 : vector<8x128xf32>
    %210 = arith.addf %208, %209 : vector<8x128xf32>
    %211 = arith.index_cast %150 : i32 to index
    %c0_56 = arith.constant 0 : index
    %212 = vector.load %arg9[%211, %c0_56] : memref<64x128xf32, #tpu.memory_space<vmem>>, vector<8x128xf32>
    tpu.vector_store %arg9[%211, %c0_56], %210 {strides = array<i32>} : memref<64x128xf32, #tpu.memory_space<vmem>>, vector<8x128xf32>,
    %c3_i32 = arith.constant 3 : i32
    %c8_i32_57 = arith.constant 8 : i32
    %213 = arith.muli %c3_i32, %c8_i32_57 : i32
    %214 = tpu.assume_multiple %213, 8 : i32
    %215 = arith.index_cast %214 : i32 to index
    %c0_58 = arith.constant 0 : index
    %216 = vector.load %arg8[%215, %c0_58] : memref<64x384xf32, #tpu.memory_space<vmem>>, vector<8x384xf32>
    %c0_59 = arith.constant 0 : index
    %c0_60 = arith.constant 0 : index
    %217 = vector.load %arg2[%c0_59, %c0_60] : memref<128x384xf32, #tpu.memory_space<vmem>>, vector<128x384xf32>
    %cst_61 = arith.constant dense<0.000000e+00> : vector<8x384xf32>
    %218 = tpu.matmul %181, %217, %cst_61 {dimension_numbers = #tpu.dot_dimension_numbers<[1], [0], [0], [1], [0, 0, 1, 1], [], []>} : vector<8x128xf32>, vector<128x384xf32>, vector<8x384xf32> -> vector<8x384xf32>
    %219 = vector.extract_strided_slice %216 {offsets = [0, 0], sizes = [8, 128], strides = [1, 1]} : vector<8x384xf32> to vector<8x128xf32>
    %220 = vector.extract_strided_slice %218 {offsets = [0, 0], sizes = [8, 128], strides = [1, 1]} : vector<8x384xf32> to vector<8x128xf32>
    %221 = arith.addf %219, %220 : vector<8x128xf32>
    %222 = arith.negf %221 : vector<8x128xf32>
    %223 = math.exp %222 : vector<8x128xf32>
    %cst_62 = arith.constant 1.000000e+00 : f32
    %224 = vector.broadcast %cst_62 : f32 to vector<8x128xf32>
    %225 = arith.addf %224, %223 : vector<8x128xf32>
    %226 = arith.divf %224, %225 : vector<8x128xf32>
    %227 = vector.extract_strided_slice %216 {offsets = [0, 128], sizes = [8, 128], strides = [1, 1]} : vector<8x384xf32> to vector<8x128xf32>
    %228 = vector.extract_strided_slice %218 {offsets = [0, 128], sizes = [8, 128], strides = [1, 1]} : vector<8x384xf32> to vector<8x128xf32>
    %229 = arith.addf %227, %228 : vector<8x128xf32>
    %230 = arith.negf %229 : vector<8x128xf32>
    %231 = math.exp %230 : vector<8x128xf32>
    %cst_63 = arith.constant 1.000000e+00 : f32
    %232 = vector.broadcast %cst_63 : f32 to vector<8x128xf32>
    %233 = arith.addf %232, %231 : vector<8x128xf32>
    %234 = arith.divf %232, %233 : vector<8x128xf32>
    %235 = vector.extract_strided_slice %216 {offsets = [0, 256], sizes = [8, 128], strides = [1, 1]} : vector<8x384xf32> to vector<8x128xf32>
    %236 = vector.extract_strided_slice %218 {offsets = [0, 256], sizes = [8, 128], strides = [1, 1]} : vector<8x384xf32> to vector<8x128xf32>
    %237 = arith.addf %236, %6 : vector<8x128xf32>
    %238 = arith.mulf %226, %237 : vector<8x128xf32>
    %239 = arith.addf %235, %238 : vector<8x128xf32>
    %240 = math.tanh %239 : vector<8x128xf32>
    %cst_64 = arith.constant 1.000000e+00 : f32
    %241 = vector.broadcast %cst_64 : f32 to vector<8x128xf32>
    %242 = arith.subf %241, %234 : vector<8x128xf32>
    %243 = arith.mulf %242, %240 : vector<8x128xf32>
    %244 = arith.mulf %234, %181 : vector<8x128xf32>
    %245 = arith.addf %243, %244 : vector<8x128xf32>
    %246 = tpu.concatenate %245, %210 in 1 : vector<8x128xf32>, vector<8x128xf32> -> vector<8x256xf32>
    %c0_65 = arith.constant 0 : index
    %c0_66 = arith.constant 0 : index
    %247 = vector.load %arg3[%c0_65, %c0_66] : memref<256x512xf32, #tpu.memory_space<vmem>>, vector<256x512xf32>
    %cst_67 = arith.constant dense<0.000000e+00> : vector<8x512xf32>
    %248 = tpu.matmul %246, %247, %cst_67 {dimension_numbers = #tpu.dot_dimension_numbers<[1], [0], [0], [1], [0, 0, 1, 1], [], []>} : vector<8x256xf32>, vector<256x512xf32>, vector<8x512xf32> -> vector<8x512xf32>
    %249 = vector.extract_strided_slice %248 {offsets = [0, 0], sizes = [8, 128], strides = [1, 1]} : vector<8x512xf32> to vector<8x128xf32>
    %250 = arith.addf %249, %9 : vector<8x128xf32>
    %251 = arith.negf %250 : vector<8x128xf32>
    %252 = math.exp %251 : vector<8x128xf32>
    %cst_68 = arith.constant 1.000000e+00 : f32
    %253 = vector.broadcast %cst_68 : f32 to vector<8x128xf32>
    %254 = arith.addf %253, %252 : vector<8x128xf32>
    %255 = arith.divf %253, %254 : vector<8x128xf32>
    %256 = vector.extract_strided_slice %248 {offsets = [0, 128], sizes = [8, 128], strides = [1, 1]} : vector<8x512xf32> to vector<8x128xf32>
    %257 = arith.addf %256, %12 : vector<8x128xf32>
    %258 = arith.negf %257 : vector<8x128xf32>
    %259 = math.exp %258 : vector<8x128xf32>
    %cst_69 = arith.constant 1.000000e+00 : f32
    %260 = vector.broadcast %cst_69 : f32 to vector<8x128xf32>
    %261 = arith.addf %260, %259 : vector<8x128xf32>
    %262 = arith.divf %260, %261 : vector<8x128xf32>
    %263 = vector.extract_strided_slice %248 {offsets = [0, 256], sizes = [8, 128], strides = [1, 1]} : vector<8x512xf32> to vector<8x128xf32>
    %264 = arith.addf %263, %15 : vector<8x128xf32>
    %265 = vector.extract_strided_slice %248 {offsets = [0, 384], sizes = [8, 128], strides = [1, 1]} : vector<8x512xf32> to vector<8x128xf32>
    %266 = arith.addf %265, %18 : vector<8x128xf32>
    %267 = arith.mulf %255, %266 : vector<8x128xf32>
    %268 = arith.addf %264, %267 : vector<8x128xf32>
    %269 = math.tanh %268 : vector<8x128xf32>
    %cst_70 = arith.constant 1.000000e+00 : f32
    %270 = vector.broadcast %cst_70 : f32 to vector<8x128xf32>
    %271 = arith.subf %270, %262 : vector<8x128xf32>
    %272 = arith.mulf %271, %269 : vector<8x128xf32>
    %273 = arith.mulf %262, %210 : vector<8x128xf32>
    %274 = arith.addf %272, %273 : vector<8x128xf32>
    %275 = arith.index_cast %214 : i32 to index
    %c0_71 = arith.constant 0 : index
    %276 = vector.load %arg9[%275, %c0_71] : memref<64x128xf32, #tpu.memory_space<vmem>>, vector<8x128xf32>
    tpu.vector_store %arg9[%275, %c0_71], %274 {strides = array<i32>} : memref<64x128xf32, #tpu.memory_space<vmem>>, vector<8x128xf32>,
    %c4_i32 = arith.constant 4 : i32
    %c8_i32_72 = arith.constant 8 : i32
    %277 = arith.muli %c4_i32, %c8_i32_72 : i32
    %278 = tpu.assume_multiple %277, 8 : i32
    %279 = arith.index_cast %278 : i32 to index
    %c0_73 = arith.constant 0 : index
    %280 = vector.load %arg8[%279, %c0_73] : memref<64x384xf32, #tpu.memory_space<vmem>>, vector<8x384xf32>
    %c0_74 = arith.constant 0 : index
    %c0_75 = arith.constant 0 : index
    %281 = vector.load %arg2[%c0_74, %c0_75] : memref<128x384xf32, #tpu.memory_space<vmem>>, vector<128x384xf32>
    %cst_76 = arith.constant dense<0.000000e+00> : vector<8x384xf32>
    %282 = tpu.matmul %245, %281, %cst_76 {dimension_numbers = #tpu.dot_dimension_numbers<[1], [0], [0], [1], [0, 0, 1, 1], [], []>} : vector<8x128xf32>, vector<128x384xf32>, vector<8x384xf32> -> vector<8x384xf32>
    %283 = vector.extract_strided_slice %280 {offsets = [0, 0], sizes = [8, 128], strides = [1, 1]} : vector<8x384xf32> to vector<8x128xf32>
    %284 = vector.extract_strided_slice %282 {offsets = [0, 0], sizes = [8, 128], strides = [1, 1]} : vector<8x384xf32> to vector<8x128xf32>
    %285 = arith.addf %283, %284 : vector<8x128xf32>
    %286 = arith.negf %285 : vector<8x128xf32>
    %287 = math.exp %286 : vector<8x128xf32>
    %cst_77 = arith.constant 1.000000e+00 : f32
    %288 = vector.broadcast %cst_77 : f32 to vector<8x128xf32>
    %289 = arith.addf %288, %287 : vector<8x128xf32>
    %290 = arith.divf %288, %289 : vector<8x128xf32>
    %291 = vector.extract_strided_slice %280 {offsets = [0, 128], sizes = [8, 128], strides = [1, 1]} : vector<8x384xf32> to vector<8x128xf32>
    %292 = vector.extract_strided_slice %282 {offsets = [0, 128], sizes = [8, 128], strides = [1, 1]} : vector<8x384xf32> to vector<8x128xf32>
    %293 = arith.addf %291, %292 : vector<8x128xf32>
    %294 = arith.negf %293 : vector<8x128xf32>
    %295 = math.exp %294 : vector<8x128xf32>
    %cst_78 = arith.constant 1.000000e+00 : f32
    %296 = vector.broadcast %cst_78 : f32 to vector<8x128xf32>
    %297 = arith.addf %296, %295 : vector<8x128xf32>
    %298 = arith.divf %296, %297 : vector<8x128xf32>
    %299 = vector.extract_strided_slice %280 {offsets = [0, 256], sizes = [8, 128], strides = [1, 1]} : vector<8x384xf32> to vector<8x128xf32>
    %300 = vector.extract_strided_slice %282 {offsets = [0, 256], sizes = [8, 128], strides = [1, 1]} : vector<8x384xf32> to vector<8x128xf32>
    %301 = arith.addf %300, %6 : vector<8x128xf32>
    %302 = arith.mulf %290, %301 : vector<8x128xf32>
    %303 = arith.addf %299, %302 : vector<8x128xf32>
    %304 = math.tanh %303 : vector<8x128xf32>
    %cst_79 = arith.constant 1.000000e+00 : f32
    %305 = vector.broadcast %cst_79 : f32 to vector<8x128xf32>
    %306 = arith.subf %305, %298 : vector<8x128xf32>
    %307 = arith.mulf %306, %304 : vector<8x128xf32>
    %308 = arith.mulf %298, %245 : vector<8x128xf32>
    %309 = arith.addf %307, %308 : vector<8x128xf32>
    %310 = tpu.concatenate %309, %274 in 1 : vector<8x128xf32>, vector<8x128xf32> -> vector<8x256xf32>
    %c0_80 = arith.constant 0 : index
    %c0_81 = arith.constant 0 : index
    %311 = vector.load %arg3[%c0_80, %c0_81] : memref<256x512xf32, #tpu.memory_space<vmem>>, vector<256x512xf32>
    %cst_82 = arith.constant dense<0.000000e+00> : vector<8x512xf32>
    %312 = tpu.matmul %310, %311, %cst_82 {dimension_numbers = #tpu.dot_dimension_numbers<[1], [0], [0], [1], [0, 0, 1, 1], [], []>} : vector<8x256xf32>, vector<256x512xf32>, vector<8x512xf32> -> vector<8x512xf32>
    %313 = vector.extract_strided_slice %312 {offsets = [0, 0], sizes = [8, 128], strides = [1, 1]} : vector<8x512xf32> to vector<8x128xf32>
    %314 = arith.addf %313, %9 : vector<8x128xf32>
    %315 = arith.negf %314 : vector<8x128xf32>
    %316 = math.exp %315 : vector<8x128xf32>
    %cst_83 = arith.constant 1.000000e+00 : f32
    %317 = vector.broadcast %cst_83 : f32 to vector<8x128xf32>
    %318 = arith.addf %317, %316 : vector<8x128xf32>
    %319 = arith.divf %317, %318 : vector<8x128xf32>
    %320 = vector.extract_strided_slice %312 {offsets = [0, 128], sizes = [8, 128], strides = [1, 1]} : vector<8x512xf32> to vector<8x128xf32>
    %321 = arith.addf %320, %12 : vector<8x128xf32>
    %322 = arith.negf %321 : vector<8x128xf32>
    %323 = math.exp %322 : vector<8x128xf32>
    %cst_84 = arith.constant 1.000000e+00 : f32
    %324 = vector.broadcast %cst_84 : f32 to vector<8x128xf32>
    %325 = arith.addf %324, %323 : vector<8x128xf32>
    %326 = arith.divf %324, %325 : vector<8x128xf32>
    %327 = vector.extract_strided_slice %312 {offsets = [0, 256], sizes = [8, 128], strides = [1, 1]} : vector<8x512xf32> to vector<8x128xf32>
    %328 = arith.addf %327, %15 : vector<8x128xf32>
    %329 = vector.extract_strided_slice %312 {offsets = [0, 384], sizes = [8, 128], strides = [1, 1]} : vector<8x512xf32> to vector<8x128xf32>
    %330 = arith.addf %329, %18 : vector<8x128xf32>
    %331 = arith.mulf %319, %330 : vector<8x128xf32>
    %332 = arith.addf %328, %331 : vector<8x128xf32>
    %333 = math.tanh %332 : vector<8x128xf32>
    %cst_85 = arith.constant 1.000000e+00 : f32
    %334 = vector.broadcast %cst_85 : f32 to vector<8x128xf32>
    %335 = arith.subf %334, %326 : vector<8x128xf32>
    %336 = arith.mulf %335, %333 : vector<8x128xf32>
    %337 = arith.mulf %326, %274 : vector<8x128xf32>
    %338 = arith.addf %336, %337 : vector<8x128xf32>
    %339 = arith.index_cast %278 : i32 to index
    %c0_86 = arith.constant 0 : index
    %340 = vector.load %arg9[%339, %c0_86] : memref<64x128xf32, #tpu.memory_space<vmem>>, vector<8x128xf32>
    tpu.vector_store %arg9[%339, %c0_86], %338 {strides = array<i32>} : memref<64x128xf32, #tpu.memory_space<vmem>>, vector<8x128xf32>,
    %c5_i32 = arith.constant 5 : i32
    %c8_i32_87 = arith.constant 8 : i32
    %341 = arith.muli %c5_i32, %c8_i32_87 : i32
    %342 = tpu.assume_multiple %341, 8 : i32
    %343 = arith.index_cast %342 : i32 to index
    %c0_88 = arith.constant 0 : index
    %344 = vector.load %arg8[%343, %c0_88] : memref<64x384xf32, #tpu.memory_space<vmem>>, vector<8x384xf32>
    %c0_89 = arith.constant 0 : index
    %c0_90 = arith.constant 0 : index
    %345 = vector.load %arg2[%c0_89, %c0_90] : memref<128x384xf32, #tpu.memory_space<vmem>>, vector<128x384xf32>
    %cst_91 = arith.constant dense<0.000000e+00> : vector<8x384xf32>
    %346 = tpu.matmul %309, %345, %cst_91 {dimension_numbers = #tpu.dot_dimension_numbers<[1], [0], [0], [1], [0, 0, 1, 1], [], []>} : vector<8x128xf32>, vector<128x384xf32>, vector<8x384xf32> -> vector<8x384xf32>
    %347 = vector.extract_strided_slice %344 {offsets = [0, 0], sizes = [8, 128], strides = [1, 1]} : vector<8x384xf32> to vector<8x128xf32>
    %348 = vector.extract_strided_slice %346 {offsets = [0, 0], sizes = [8, 128], strides = [1, 1]} : vector<8x384xf32> to vector<8x128xf32>
    %349 = arith.addf %347, %348 : vector<8x128xf32>
    %350 = arith.negf %349 : vector<8x128xf32>
    %351 = math.exp %350 : vector<8x128xf32>
    %cst_92 = arith.constant 1.000000e+00 : f32
    %352 = vector.broadcast %cst_92 : f32 to vector<8x128xf32>
    %353 = arith.addf %352, %351 : vector<8x128xf32>
    %354 = arith.divf %352, %353 : vector<8x128xf32>
    %355 = vector.extract_strided_slice %344 {offsets = [0, 128], sizes = [8, 128], strides = [1, 1]} : vector<8x384xf32> to vector<8x128xf32>
    %356 = vector.extract_strided_slice %346 {offsets = [0, 128], sizes = [8, 128], strides = [1, 1]} : vector<8x384xf32> to vector<8x128xf32>
    %357 = arith.addf %355, %356 : vector<8x128xf32>
    %358 = arith.negf %357 : vector<8x128xf32>
    %359 = math.exp %358 : vector<8x128xf32>
    %cst_93 = arith.constant 1.000000e+00 : f32
    %360 = vector.broadcast %cst_93 : f32 to vector<8x128xf32>
    %361 = arith.addf %360, %359 : vector<8x128xf32>
    %362 = arith.divf %360, %361 : vector<8x128xf32>
    %363 = vector.extract_strided_slice %344 {offsets = [0, 256], sizes = [8, 128], strides = [1, 1]} : vector<8x384xf32> to vector<8x128xf32>
    %364 = vector.extract_strided_slice %346 {offsets = [0, 256], sizes = [8, 128], strides = [1, 1]} : vector<8x384xf32> to vector<8x128xf32>
    %365 = arith.addf %364, %6 : vector<8x128xf32>
    %366 = arith.mulf %354, %365 : vector<8x128xf32>
    %367 = arith.addf %363, %366 : vector<8x128xf32>
    %368 = math.tanh %367 : vector<8x128xf32>
    %cst_94 = arith.constant 1.000000e+00 : f32
    %369 = vector.broadcast %cst_94 : f32 to vector<8x128xf32>
    %370 = arith.subf %369, %362 : vector<8x128xf32>
    %371 = arith.mulf %370, %368 : vector<8x128xf32>
    %372 = arith.mulf %362, %309 : vector<8x128xf32>
    %373 = arith.addf %371, %372 : vector<8x128xf32>
    %374 = tpu.concatenate %373, %338 in 1 : vector<8x128xf32>, vector<8x128xf32> -> vector<8x256xf32>
    %c0_95 = arith.constant 0 : index
    %c0_96 = arith.constant 0 : index
    %375 = vector.load %arg3[%c0_95, %c0_96] : memref<256x512xf32, #tpu.memory_space<vmem>>, vector<256x512xf32>
    %cst_97 = arith.constant dense<0.000000e+00> : vector<8x512xf32>
    %376 = tpu.matmul %374, %375, %cst_97 {dimension_numbers = #tpu.dot_dimension_numbers<[1], [0], [0], [1], [0, 0, 1, 1], [], []>} : vector<8x256xf32>, vector<256x512xf32>, vector<8x512xf32> -> vector<8x512xf32>
    %377 = vector.extract_strided_slice %376 {offsets = [0, 0], sizes = [8, 128], strides = [1, 1]} : vector<8x512xf32> to vector<8x128xf32>
    %378 = arith.addf %377, %9 : vector<8x128xf32>
    %379 = arith.negf %378 : vector<8x128xf32>
    %380 = math.exp %379 : vector<8x128xf32>
    %cst_98 = arith.constant 1.000000e+00 : f32
    %381 = vector.broadcast %cst_98 : f32 to vector<8x128xf32>
    %382 = arith.addf %381, %380 : vector<8x128xf32>
    %383 = arith.divf %381, %382 : vector<8x128xf32>
    %384 = vector.extract_strided_slice %376 {offsets = [0, 128], sizes = [8, 128], strides = [1, 1]} : vector<8x512xf32> to vector<8x128xf32>
    %385 = arith.addf %384, %12 : vector<8x128xf32>
    %386 = arith.negf %385 : vector<8x128xf32>
    %387 = math.exp %386 : vector<8x128xf32>
    %cst_99 = arith.constant 1.000000e+00 : f32
    %388 = vector.broadcast %cst_99 : f32 to vector<8x128xf32>
    %389 = arith.addf %388, %387 : vector<8x128xf32>
    %390 = arith.divf %388, %389 : vector<8x128xf32>
    %391 = vector.extract_strided_slice %376 {offsets = [0, 256], sizes = [8, 128], strides = [1, 1]} : vector<8x512xf32> to vector<8x128xf32>
    %392 = arith.addf %391, %15 : vector<8x128xf32>
    %393 = vector.extract_strided_slice %376 {offsets = [0, 384], sizes = [8, 128], strides = [1, 1]} : vector<8x512xf32> to vector<8x128xf32>
    %394 = arith.addf %393, %18 : vector<8x128xf32>
    %395 = arith.mulf %383, %394 : vector<8x128xf32>
    %396 = arith.addf %392, %395 : vector<8x128xf32>
    %397 = math.tanh %396 : vector<8x128xf32>
    %cst_100 = arith.constant 1.000000e+00 : f32
    %398 = vector.broadcast %cst_100 : f32 to vector<8x128xf32>
    %399 = arith.subf %398, %390 : vector<8x128xf32>
    %400 = arith.mulf %399, %397 : vector<8x128xf32>
    %401 = arith.mulf %390, %338 : vector<8x128xf32>
    %402 = arith.addf %400, %401 : vector<8x128xf32>
    %403 = arith.index_cast %342 : i32 to index
    %c0_101 = arith.constant 0 : index
    %404 = vector.load %arg9[%403, %c0_101] : memref<64x128xf32, #tpu.memory_space<vmem>>, vector<8x128xf32>
    tpu.vector_store %arg9[%403, %c0_101], %402 {strides = array<i32>} : memref<64x128xf32, #tpu.memory_space<vmem>>, vector<8x128xf32>,
    %c6_i32 = arith.constant 6 : i32
    %c8_i32_102 = arith.constant 8 : i32
    %405 = arith.muli %c6_i32, %c8_i32_102 : i32
    %406 = tpu.assume_multiple %405, 8 : i32
    %407 = arith.index_cast %406 : i32 to index
    %c0_103 = arith.constant 0 : index
    %408 = vector.load %arg8[%407, %c0_103] : memref<64x384xf32, #tpu.memory_space<vmem>>, vector<8x384xf32>
    %c0_104 = arith.constant 0 : index
    %c0_105 = arith.constant 0 : index
    %409 = vector.load %arg2[%c0_104, %c0_105] : memref<128x384xf32, #tpu.memory_space<vmem>>, vector<128x384xf32>
    %cst_106 = arith.constant dense<0.000000e+00> : vector<8x384xf32>
    %410 = tpu.matmul %373, %409, %cst_106 {dimension_numbers = #tpu.dot_dimension_numbers<[1], [0], [0], [1], [0, 0, 1, 1], [], []>} : vector<8x128xf32>, vector<128x384xf32>, vector<8x384xf32> -> vector<8x384xf32>
    %411 = vector.extract_strided_slice %408 {offsets = [0, 0], sizes = [8, 128], strides = [1, 1]} : vector<8x384xf32> to vector<8x128xf32>
    %412 = vector.extract_strided_slice %410 {offsets = [0, 0], sizes = [8, 128], strides = [1, 1]} : vector<8x384xf32> to vector<8x128xf32>
    %413 = arith.addf %411, %412 : vector<8x128xf32>
    %414 = arith.negf %413 : vector<8x128xf32>
    %415 = math.exp %414 : vector<8x128xf32>
    %cst_107 = arith.constant 1.000000e+00 : f32
    %416 = vector.broadcast %cst_107 : f32 to vector<8x128xf32>
    %417 = arith.addf %416, %415 : vector<8x128xf32>
    %418 = arith.divf %416, %417 : vector<8x128xf32>
    %419 = vector.extract_strided_slice %408 {offsets = [0, 128], sizes = [8, 128], strides = [1, 1]} : vector<8x384xf32> to vector<8x128xf32>
    %420 = vector.extract_strided_slice %410 {offsets = [0, 128], sizes = [8, 128], strides = [1, 1]} : vector<8x384xf32> to vector<8x128xf32>
    %421 = arith.addf %419, %420 : vector<8x128xf32>
    %422 = arith.negf %421 : vector<8x128xf32>
    %423 = math.exp %422 : vector<8x128xf32>
    %cst_108 = arith.constant 1.000000e+00 : f32
    %424 = vector.broadcast %cst_108 : f32 to vector<8x128xf32>
    %425 = arith.addf %424, %423 : vector<8x128xf32>
    %426 = arith.divf %424, %425 : vector<8x128xf32>
    %427 = vector.extract_strided_slice %408 {offsets = [0, 256], sizes = [8, 128], strides = [1, 1]} : vector<8x384xf32> to vector<8x128xf32>
    %428 = vector.extract_strided_slice %410 {offsets = [0, 256], sizes = [8, 128], strides = [1, 1]} : vector<8x384xf32> to vector<8x128xf32>
    %429 = arith.addf %428, %6 : vector<8x128xf32>
    %430 = arith.mulf %418, %429 : vector<8x128xf32>
    %431 = arith.addf %427, %430 : vector<8x128xf32>
    %432 = math.tanh %431 : vector<8x128xf32>
    %cst_109 = arith.constant 1.000000e+00 : f32
    %433 = vector.broadcast %cst_109 : f32 to vector<8x128xf32>
    %434 = arith.subf %433, %426 : vector<8x128xf32>
    %435 = arith.mulf %434, %432 : vector<8x128xf32>
    %436 = arith.mulf %426, %373 : vector<8x128xf32>
    %437 = arith.addf %435, %436 : vector<8x128xf32>
    %438 = tpu.concatenate %437, %402 in 1 : vector<8x128xf32>, vector<8x128xf32> -> vector<8x256xf32>
    %c0_110 = arith.constant 0 : index
    %c0_111 = arith.constant 0 : index
    %439 = vector.load %arg3[%c0_110, %c0_111] : memref<256x512xf32, #tpu.memory_space<vmem>>, vector<256x512xf32>
    %cst_112 = arith.constant dense<0.000000e+00> : vector<8x512xf32>
    %440 = tpu.matmul %438, %439, %cst_112 {dimension_numbers = #tpu.dot_dimension_numbers<[1], [0], [0], [1], [0, 0, 1, 1], [], []>} : vector<8x256xf32>, vector<256x512xf32>, vector<8x512xf32> -> vector<8x512xf32>
    %441 = vector.extract_strided_slice %440 {offsets = [0, 0], sizes = [8, 128], strides = [1, 1]} : vector<8x512xf32> to vector<8x128xf32>
    %442 = arith.addf %441, %9 : vector<8x128xf32>
    %443 = arith.negf %442 : vector<8x128xf32>
    %444 = math.exp %443 : vector<8x128xf32>
    %cst_113 = arith.constant 1.000000e+00 : f32
    %445 = vector.broadcast %cst_113 : f32 to vector<8x128xf32>
    %446 = arith.addf %445, %444 : vector<8x128xf32>
    %447 = arith.divf %445, %446 : vector<8x128xf32>
    %448 = vector.extract_strided_slice %440 {offsets = [0, 128], sizes = [8, 128], strides = [1, 1]} : vector<8x512xf32> to vector<8x128xf32>
    %449 = arith.addf %448, %12 : vector<8x128xf32>
    %450 = arith.negf %449 : vector<8x128xf32>
    %451 = math.exp %450 : vector<8x128xf32>
    %cst_114 = arith.constant 1.000000e+00 : f32
    %452 = vector.broadcast %cst_114 : f32 to vector<8x128xf32>
    %453 = arith.addf %452, %451 : vector<8x128xf32>
    %454 = arith.divf %452, %453 : vector<8x128xf32>
    %455 = vector.extract_strided_slice %440 {offsets = [0, 256], sizes = [8, 128], strides = [1, 1]} : vector<8x512xf32> to vector<8x128xf32>
    %456 = arith.addf %455, %15 : vector<8x128xf32>
    %457 = vector.extract_strided_slice %440 {offsets = [0, 384], sizes = [8, 128], strides = [1, 1]} : vector<8x512xf32> to vector<8x128xf32>
    %458 = arith.addf %457, %18 : vector<8x128xf32>
    %459 = arith.mulf %447, %458 : vector<8x128xf32>
    %460 = arith.addf %456, %459 : vector<8x128xf32>
    %461 = math.tanh %460 : vector<8x128xf32>
    %cst_115 = arith.constant 1.000000e+00 : f32
    %462 = vector.broadcast %cst_115 : f32 to vector<8x128xf32>
    %463 = arith.subf %462, %454 : vector<8x128xf32>
    %464 = arith.mulf %463, %461 : vector<8x128xf32>
    %465 = arith.mulf %454, %402 : vector<8x128xf32>
    %466 = arith.addf %464, %465 : vector<8x128xf32>
    %467 = arith.index_cast %406 : i32 to index
    %c0_116 = arith.constant 0 : index
    %468 = vector.load %arg9[%467, %c0_116] : memref<64x128xf32, #tpu.memory_space<vmem>>, vector<8x128xf32>
    tpu.vector_store %arg9[%467, %c0_116], %466 {strides = array<i32>} : memref<64x128xf32, #tpu.memory_space<vmem>>, vector<8x128xf32>,
    %c7_i32 = arith.constant 7 : i32
    %c8_i32_117 = arith.constant 8 : i32
    %469 = arith.muli %c7_i32, %c8_i32_117 : i32
    %470 = tpu.assume_multiple %469, 8 : i32
    %471 = arith.index_cast %470 : i32 to index
    %c0_118 = arith.constant 0 : index
    %472 = vector.load %arg8[%471, %c0_118] : memref<64x384xf32, #tpu.memory_space<vmem>>, vector<8x384xf32>
    %c0_119 = arith.constant 0 : index
    %c0_120 = arith.constant 0 : index
    %473 = vector.load %arg2[%c0_119, %c0_120] : memref<128x384xf32, #tpu.memory_space<vmem>>, vector<128x384xf32>
    %cst_121 = arith.constant dense<0.000000e+00> : vector<8x384xf32>
    %474 = tpu.matmul %437, %473, %cst_121 {dimension_numbers = #tpu.dot_dimension_numbers<[1], [0], [0], [1], [0, 0, 1, 1], [], []>} : vector<8x128xf32>, vector<128x384xf32>, vector<8x384xf32> -> vector<8x384xf32>
    %475 = vector.extract_strided_slice %472 {offsets = [0, 0], sizes = [8, 128], strides = [1, 1]} : vector<8x384xf32> to vector<8x128xf32>
    %476 = vector.extract_strided_slice %474 {offsets = [0, 0], sizes = [8, 128], strides = [1, 1]} : vector<8x384xf32> to vector<8x128xf32>
    %477 = arith.addf %475, %476 : vector<8x128xf32>
    %478 = arith.negf %477 : vector<8x128xf32>
    %479 = math.exp %478 : vector<8x128xf32>
    %cst_122 = arith.constant 1.000000e+00 : f32
    %480 = vector.broadcast %cst_122 : f32 to vector<8x128xf32>
    %481 = arith.addf %480, %479 : vector<8x128xf32>
    %482 = arith.divf %480, %481 : vector<8x128xf32>
    %483 = vector.extract_strided_slice %472 {offsets = [0, 128], sizes = [8, 128], strides = [1, 1]} : vector<8x384xf32> to vector<8x128xf32>
    %484 = vector.extract_strided_slice %474 {offsets = [0, 128], sizes = [8, 128], strides = [1, 1]} : vector<8x384xf32> to vector<8x128xf32>
    %485 = arith.addf %483, %484 : vector<8x128xf32>
    %486 = arith.negf %485 : vector<8x128xf32>
    %487 = math.exp %486 : vector<8x128xf32>
    %cst_123 = arith.constant 1.000000e+00 : f32
    %488 = vector.broadcast %cst_123 : f32 to vector<8x128xf32>
    %489 = arith.addf %488, %487 : vector<8x128xf32>
    %490 = arith.divf %488, %489 : vector<8x128xf32>
    %491 = vector.extract_strided_slice %472 {offsets = [0, 256], sizes = [8, 128], strides = [1, 1]} : vector<8x384xf32> to vector<8x128xf32>
    %492 = vector.extract_strided_slice %474 {offsets = [0, 256], sizes = [8, 128], strides = [1, 1]} : vector<8x384xf32> to vector<8x128xf32>
    %493 = arith.addf %492, %6 : vector<8x128xf32>
    %494 = arith.mulf %482, %493 : vector<8x128xf32>
    %495 = arith.addf %491, %494 : vector<8x128xf32>
    %496 = math.tanh %495 : vector<8x128xf32>
    %cst_124 = arith.constant 1.000000e+00 : f32
    %497 = vector.broadcast %cst_124 : f32 to vector<8x128xf32>
    %498 = arith.subf %497, %490 : vector<8x128xf32>
    %499 = arith.mulf %498, %496 : vector<8x128xf32>
    %500 = arith.mulf %490, %437 : vector<8x128xf32>
    %501 = arith.addf %499, %500 : vector<8x128xf32>
    %502 = tpu.concatenate %501, %466 in 1 : vector<8x128xf32>, vector<8x128xf32> -> vector<8x256xf32>
    %c0_125 = arith.constant 0 : index
    %c0_126 = arith.constant 0 : index
    %503 = vector.load %arg3[%c0_125, %c0_126] : memref<256x512xf32, #tpu.memory_space<vmem>>, vector<256x512xf32>
    %cst_127 = arith.constant dense<0.000000e+00> : vector<8x512xf32>
    %504 = tpu.matmul %502, %503, %cst_127 {dimension_numbers = #tpu.dot_dimension_numbers<[1], [0], [0], [1], [0, 0, 1, 1], [], []>} : vector<8x256xf32>, vector<256x512xf32>, vector<8x512xf32> -> vector<8x512xf32>
    %505 = vector.extract_strided_slice %504 {offsets = [0, 0], sizes = [8, 128], strides = [1, 1]} : vector<8x512xf32> to vector<8x128xf32>
    %506 = arith.addf %505, %9 : vector<8x128xf32>
    %507 = arith.negf %506 : vector<8x128xf32>
    %508 = math.exp %507 : vector<8x128xf32>
    %cst_128 = arith.constant 1.000000e+00 : f32
    %509 = vector.broadcast %cst_128 : f32 to vector<8x128xf32>
    %510 = arith.addf %509, %508 : vector<8x128xf32>
    %511 = arith.divf %509, %510 : vector<8x128xf32>
    %512 = vector.extract_strided_slice %504 {offsets = [0, 128], sizes = [8, 128], strides = [1, 1]} : vector<8x512xf32> to vector<8x128xf32>
    %513 = arith.addf %512, %12 : vector<8x128xf32>
    %514 = arith.negf %513 : vector<8x128xf32>
    %515 = math.exp %514 : vector<8x128xf32>
    %cst_129 = arith.constant 1.000000e+00 : f32
    %516 = vector.broadcast %cst_129 : f32 to vector<8x128xf32>
    %517 = arith.addf %516, %515 : vector<8x128xf32>
    %518 = arith.divf %516, %517 : vector<8x128xf32>
    %519 = vector.extract_strided_slice %504 {offsets = [0, 256], sizes = [8, 128], strides = [1, 1]} : vector<8x512xf32> to vector<8x128xf32>
    %520 = arith.addf %519, %15 : vector<8x128xf32>
    %521 = vector.extract_strided_slice %504 {offsets = [0, 384], sizes = [8, 128], strides = [1, 1]} : vector<8x512xf32> to vector<8x128xf32>
    %522 = arith.addf %521, %18 : vector<8x128xf32>
    %523 = arith.mulf %511, %522 : vector<8x128xf32>
    %524 = arith.addf %520, %523 : vector<8x128xf32>
    %525 = math.tanh %524 : vector<8x128xf32>
    %cst_130 = arith.constant 1.000000e+00 : f32
    %526 = vector.broadcast %cst_130 : f32 to vector<8x128xf32>
    %527 = arith.subf %526, %518 : vector<8x128xf32>
    %528 = arith.mulf %527, %525 : vector<8x128xf32>
    %529 = arith.mulf %518, %466 : vector<8x128xf32>
    %530 = arith.addf %528, %529 : vector<8x128xf32>
    %531 = arith.index_cast %470 : i32 to index
    %c0_131 = arith.constant 0 : index
    %532 = vector.load %arg9[%531, %c0_131] : memref<64x128xf32, #tpu.memory_space<vmem>>, vector<8x128xf32>
    tpu.vector_store %arg9[%531, %c0_131], %530 {strides = array<i32>} : memref<64x128xf32, #tpu.memory_space<vmem>>, vector<8x128xf32>,
    %c8_i32_132 = arith.constant 8 : i32
    %c0_133 = arith.constant 0 : index
    %c0_134 = arith.constant 0 : index
    %533 = vector.load %arg9[%c0_133, %c0_134] : memref<64x128xf32, #tpu.memory_space<vmem>>, vector<64x128xf32>
    %c0_135 = arith.constant 0 : index
    %c0_136 = arith.constant 0 : index
    %534 = vector.load %arg5[%c0_135, %c0_136] : memref<128x4xf32, #tpu.memory_space<vmem>>, vector<128x4xf32>
    %cst_137 = arith.constant dense<0.000000e+00> : vector<64x4xf32>
    %535 = tpu.matmul %533, %534, %cst_137 {dimension_numbers = #tpu.dot_dimension_numbers<[1], [0], [0], [1], [0, 0, 1, 1], [], []>} : vector<64x128xf32>, vector<128x4xf32>, vector<64x4xf32> -> vector<64x4xf32>
    %c0_138 = arith.constant 0 : index
    %c0_139 = arith.constant 0 : index
    %536 = vector.load %arg6[%c0_138, %c0_139] : memref<1x4xf32, #tpu.memory_space<vmem>>, vector<1x4xf32>
    %537 = vector.broadcast %536 : vector<1x4xf32> to vector<64x4xf32>
    %538 = arith.addf %535, %537 : vector<64x4xf32>
    %539 = math.tanh %538 : vector<64x4xf32>
    %c0_140 = arith.constant 0 : index
    %c0_141 = arith.constant 0 : index
    %540 = vector.load %arg7[%c0_140, %c0_141] : memref<64x4xf32, #tpu.memory_space<vmem>>, vector<64x4xf32>
    tpu.vector_store %arg7[%c0_140, %c0_141], %539 {strides = array<i32>} : memref<64x4xf32, #tpu.memory_space<vmem>>, vector<64x4xf32>,
    return
  }
}

</mosaic_0001>

<bundles_post_ra>
// kernel: baseline_forward.1
= control target key start
LH: loop header
LB: loop body
LE: loop exit
PB: predicated region body
PF: predicated region fallthrough
CT: control target
= control target key end

     0   :  { %vm65_vm0 = vcmask 1040384   ;;  %vm40_vm1 = vcmask 72704   ;;  %vm6895_vm2 = vmmov 1   ;;  %v11008_v3 = vmov 0.0   ;;  %s11000_s1 = inlined_call_operand.vmem [shape: f32[9,384], index: 1, kind: input, shape index: {}]   ;;  %s11001_s0 = inlined_call_operand.vmem [shape: f32[64,9], index: 0, kind: input, shape index: {}]   ;;  %s11002_s2 = inlined_call_operand.vmem [shape: f32[128,384], index: 2, kind: input, shape index: {}]   ;;  %s11003_s3 = inlined_call_operand.vmem [shape: f32[256,512], index: 3, kind: input, shape index: {}]   ;;  %s11004_s4 = inlined_call_operand.vmem [shape: f32[8,128], index: 4, kind: input, shape index: {}]   ;;  %s11005_s5 = inlined_call_operand.vmem [shape: f32[128,4], index: 5, kind: input, shape index: {}]   ;;  %s11006_s6 = inlined_call_operand.vmem [shape: f32[1,4], index: 6, kind: input, shape index: {}]   ;;  %s11007_s7 = inlined_call_operand.vmem [shape: f32[64,4], index: 7, kind: output, shape index: {}]  }
   0x1   :  { %v36_v0 = vld [vmem:[%s11000_s1 + $0x10] sm:$0xff]  ;;  %v39_v1 = vld [vmem:[%s11000_s1 + $0x28] sm:$0x1]  ;;  %vm6945_vm3 = vmpackc.low %vm65_vm0, %vm6895_vm2  ;;  %139 = vmatprep.mubr.f32.mxu0 %v11008_v3  ;;  %vm6898_vm4 = vmmov 0   ;;  %vm4581_vm5 = vcmask 31744  }
   0x2   :  { %v5174_v4 = vpack.c.bf16 %v39_v1, %v36_v0  ;;  %v6953_v5 = vld [vmem:[%s11001_s0] sm:$0xff]  ;;  %v349_v6 = vld [vmem:[%s11002_s2 + $0x8] sm:$0xff]  ;;  %v351_v9 = vld [vmem:[%s11002_s2 + $0x18] sm:$0xff] }
   0x3   :  { %4832 = vmatprep.mubr.msk.f32.mxu1 %vm40_vm1, %v6953_v5  ;;  %v352_v7 = vld [vmem:[%s11002_s2 + $0x20] sm:$0xff]  ;;  %v355_v11 = vld [vmem:[%s11002_s2 + $0x38] sm:$0xff]  ;;  %v358_v12 = vld [vmem:[%s11002_s2 + $0x50] sm:$0xff] }
   0x4   :  { %v348_v8 = vld [vmem:[%s11002_s2] sm:$0xff]  ;;  %5176 = vmatprep.subr.msk.bf16.mxu1 %vm6945_vm3, %v5174_v4  ;;  %v6971_v10 = vpack.c.bf16 %v352_v7, %v349_v6  ;;  %v6984_v13 = vld [vmem:[%s11001_s0 + $0x8] sm:$0xff]  ;;  %v6989_v15 = vpack.c.bf16 %v358_v12, %v355_v11  ;;  %v354_v16 = vld [vmem:[%s11002_s2 + $0x30] sm:$0xff]  ;;  %v11010_v7 = vmov 0.0|0.0  }
   0x5   :  { %5179 = vmatpush3.bf16.msk.msra.mxu1 %vm6945_vm3, %v5174_v4  ;;  %v6986_v14 = vpack.c.bf16 %v351_v9, %v348_v8  ;;  %v357_v17 = vld [vmem:[%s11002_s2 + $0x48] sm:$0xff]  ;;  %v364_v19 = vld [vmem:[%s11002_s2 + $0x80] sm:$0xff]  ;;  %v7011_v21 = vld [vmem:[%s11001_s0 + $0x10] sm:$0xff] }
   0x6   :  { %5181 = vmatprep.subr.bf16.mxu1 %v6971_v10  ;;  %v361_v18 = vld [vmem:[%s11002_s2 + $0x68] sm:$0xff]  ;;  %v7006_v20 = vpack.c.bf16 %v357_v17, %v354_v16  ;;  %v7016_v22 = vld [vmem:[%s11001_s0 + $0x18] sm:$0xff]  ;;  %v360_v24 = vld [vmem:[%s11002_s2 + $0x60] sm:$0xff] }
   0x7   :  { %v7019_v23 = vpack.c.bf16 %v364_v19, %v361_v18  ;;  %v363_v25 = vld [vmem:[%s11002_s2 + $0x78] sm:$0xff]  ;;  %v370_v27 = vld [vmem:[%s11002_s2 + $0xb0] sm:$0xff]  ;;  %v7038_v28 = vld [vmem:[%s11001_s0 + $0x20] sm:$0xff] }
   0x8   :  { %4833 = vmatmul.mubr.msk.f32.vlgmr.msra.gmra.mrb[0].mxu1 %vm40_vm1, %v6984_v13  ;;  %v367_v26 = vld [vmem:[%s11002_s2 + $0x98] sm:$0xff]  ;;  %v366_v29 = vld [vmem:[%s11002_s2 + $0x90] sm:$0xff]  ;;  %v7046_v30 = vpack.c.bf16 %v363_v25, %v360_v24  ;;  %v369_v31 = vld [vmem:[%s11002_s2 + $0xa8] sm:$0xff] }
   0x9   :  { %5183 = vmatpush1.bf16.msra.mxu1 %v6986_v14  ;;  %4835 = vmatprep.mubr.msk.f32.mxu1 %vm40_vm1, %v7011_v21  ;;  %v7056_v32 = vld [vmem:[%s11001_s0 + $0x28] sm:$0xff]  ;;  %v7062_v34 = vpack.c.bf16 %v370_v27, %v367_v26  ;;  %v7070_v36 = vld [vmem:[%s11001_s0 + $0x30] sm:$0xff]  ;;  %v38_v37 = vld [vmem:[%s11000_s1 + $0x20] sm:$0x1]  ;;  %v7087_v43 = vpack.c.bf16 %v369_v31, %v366_v29 }
   0xa   :  { %5185 = vmatprep.subr.bf16.mxu1 %v6989_v15  ;;  %v35_v33 = vld [vmem:[%s11000_s1 + $0x8] sm:$0xff]  ;;  %v376_v38 = vld [vmem:[%s11002_s2 + $0xe0] sm:$0xff]  ;;  %v37_v41 = vld [vmem:[%s11000_s1 + $0x18] sm:$0x1] }
   0xb   :  { %v373_v35 = vld [vmem:[%s11002_s2 + $0xc8] sm:$0xff]  ;;  %v5168_v39 = vpack.c.bf16 %v38_v37, %v35_v33  ;;  %v34_v40 = vld [vmem:[%s11000_s1] sm:$0xff]  ;;  %v7094_v44 = vld [vmem:[%s11001_s0 + $0x38] sm:$0xff] }
   0xc   :  { %4836 = vmatmul.mubr.msk.f32.gmra.mrb[2].mxu1 %vm40_vm1, %v7016_v22  ;;  %v5171_v42 = vpack.c.bf16 %v37_v41, %v34_v40  ;;  %v7097_v45 = vpack.c.bf16 %v376_v38, %v373_v35  ;;  %v372_v46 = vld [vmem:[%s11002_s2 + $0xc0] sm:$0xff]  ;;  %v375_v47 = vld [vmem:[%s11002_s2 + $0xd8] sm:$0xff]  ;;  %v382_v49 = vld [vmem:[%s11002_s2 + $0x110] sm:$0xff] }
   0xd   :  { %5187 = vmatpush1.bf16.msra.mxu1 %v7006_v20  ;;  %4838 = vmatprep.mubr.msk.f32.mxu1 %vm40_vm1, %v7038_v28  ;;  %v379_v48 = vld [vmem:[%s11002_s2 + $0xf8] sm:$0xff]  ;;  %v7118_v50 = vpack.c.bf16 %v375_v47, %v372_v46  ;;  %v378_v52 = vld [vmem:[%s11002_s2 + $0xf0] sm:$0xff]  ;;  %v381_v53 = vld [vmem:[%s11002_s2 + $0x108] sm:$0xff] }
   0xe   :  { %5189 = vmatprep.subr.bf16.mxu1 %v7019_v23  ;;  %5170 = vmatprep.subr.msk.bf16.mxu0 %vm6945_vm3, %v5168_v39  ;;  %v7122_v51 = vpack.c.bf16 %v382_v49, %v379_v48  ;;  %v385_v54 = vld [vmem:[%s11002_s2 + $0x128] sm:$0xff]  ;;  %v388_v55 = vld [vmem:[%s11002_s2 + $0x140] sm:$0xff]  ;;  %v7140_v56 = vpack.c.bf16 %v381_v53, %v378_v52  ;;  %v387_v59 = vld [vmem:[%s11002_s2 + $0x138] sm:$0xff] }
   0xf   :  { %5173 = vmatpush1.bf16.msk.msra.mxu0 %vm6945_vm3, %v5171_v42  ;;  %v7143_v57 = vpack.c.bf16 %v388_v55, %v385_v54  ;;  %v384_v58 = vld [vmem:[%s11002_s2 + $0x120] sm:$0xff]  ;;  %v391_v60 = vld [vmem:[%s11002_s2 + $0x158] sm:$0xff]  ;;  %v394_v61 = vld [vmem:[%s11002_s2 + $0x170] sm:$0xff] }
  0x10   :  { %4839 = vmatmul.mubr.msk.f32.gmra.mrb[4].mxu1 %vm40_vm1, %v7056_v32  ;;  %v7161_v62 = vpack.c.bf16 %v387_v59, %v384_v58  ;;  %v7164_v63 = vpack.c.bf16 %v394_v61, %v391_v60  ;;  %v390_v0 = vld [vmem:[%s11002_s2 + $0x150] sm:$0xff]  ;;  %v393_v1 = vld [vmem:[%s11002_s2 + $0x168] sm:$0xff]  ;;  %v356_v8 = vld [vmem:[%s11002_s2 + $0x40] sm:$0xff] }
  0x11   :  { %5191 = vmatpush1.bf16.msra.mxu1 %v7046_v30  ;;  %4841 = vmatprep.mubr.msk.f32.mxu1 %vm40_vm1, %v7070_v36  ;;  %v7176_v2 = vpack.c.bf16 %v393_v1, %v390_v0  ;;  %v350_v4 = vld [vmem:[%s11002_s2 + $0x10] sm:$0xff]  ;;  %v359_v9 = vld [vmem:[%s11002_s2 + $0x58] sm:$0xff]  ;;  %v368_v17 = vld [vmem:[%s11002_s2 + $0xa0] sm:$0xff] }
  0x12   :  { %5193 = vmatprep.subr.bf16.mxu1 %v7062_v34  ;;  %4603 = vmatmul.mubr.msk.f32.vlgmr.msra.gmra.mrb[0].mxu0 %vm40_vm1, %v6953_v5  ;;  %v353_v5 = vld [vmem:[%s11002_s2 + $0x28] sm:$0xff]  ;;  %v7203_v11 = vpack.c.bf16 %v359_v9, %v356_v8  ;;  %v362_v12 = vld [vmem:[%s11002_s2 + $0x70] sm:$0xff]  ;;  %v371_v18 = vld [vmem:[%s11002_s2 + $0xb8] sm:$0xff] }
  0x13   :  { %145 = vmatprep.mubr.f32.mxu0 %v11008_v3  ;;  %v7189_v6 = vpack.c.bf16 %v353_v5, %v350_v4  ;;  %v7231_v19 = vpack.c.bf16 %v371_v18, %v368_v17  ;;  %v380_v25 = vld [vmem:[%s11002_s2 + $0x100] sm:$0xff]  ;;  %v383_v26 = vld [vmem:[%s11002_s2 + $0x118] sm:$0xff]  ;;  %v389_v29 = vld [vmem:[%s11002_s2 + $0x148] sm:$0xff] }
  0x14   :  { %4842 = vmatmul.mubr.msk.f32.gmra.mrb[6].mxu1 %vm40_vm1, %v7094_v44  ;;  %v7254_v27 = vpack.c.bf16 %v383_v26, %v380_v25  ;;  %v395_v33 = vld [vmem:[%s11002_s2 + $0x178] sm:$0xff]  ;;  %v564_v37 = vld [vmem:[%s11003_s3 + $0x28] sm:$0xff]  ;;  %v559_v41 = vld [vmem:[%s11003_s3] sm:$0xff] }
  0x15   :  { %5195 = vmatpush1.bf16.msra.mxu1 %v7087_v43  ;;  %460 = vmatprep.mubr.f32.mxu1 %v11008_v3  ;;  %v562_v38 = vld [vmem:[%s11003_s3 + $0x18] sm:$0xff]  ;;  %v563_v42 = vld [vmem:[%s11003_s3 + $0x20] sm:$0xff]  ;;  %v561_v47 = vld [vmem:[%s11003_s3 + $0x10] sm:$0xff] }
  0x16   :  { %5197 = vmatprep.subr.bf16.mxu1 %v7097_v45  ;;  %4604 = vmatmul.mubr.msk.f32.gmra.mrb[2].mxu0 %vm40_vm1, %v6984_v13  ;;  %v365_v13 = vld [vmem:[%s11002_s2 + $0x88] sm:$0xff]  ;;  %v566_v40 = vld [vmem:[%s11003_s3 + $0x38] sm:$0xff]  ;;  %v7302_v46 = vpack.c.bf16 %v563_v42, %v559_v41  ;;  %v565_v48 = vld [vmem:[%s11003_s3 + $0x30] sm:$0xff] }
  0x17   :  { %151 = vmatprep.mubr.f32.mxu0 %v11008_v3  ;;  %v7218_v16 = vpack.c.bf16 %v365_v13, %v362_v12  ;;  %v7311_v49 = vpack.c.bf16 %v565_v48, %v561_v47  ;;  %v568_v52 = vld [vmem:[%s11003_s3 + $0x48] sm:$0xff]  ;;  %v570_v54 = vld [vmem:[%s11003_s3 + $0x58] sm:$0xff]  ;;  %v567_v59 = vld [vmem:[%s11003_s3 + $0x40] sm:$0xff] }
  0x18   :  { %v572_v53 = vld [vmem:[%s11003_s3 + $0x68] sm:$0xff]  ;;  %v574_v58 = vld [vmem:[%s11003_s3 + $0x78] sm:$0xff]  ;;  %v571_v60 = vld [vmem:[%s11003_s3 + $0x60] sm:$0xff] }
  0x19   :  { %5199 = vmatpush1.bf16.msra.mxu1 %v7118_v50  ;;  %v7324_v55 = vpack.c.bf16 %v572_v53, %v568_v52  ;;  %v7336_v61 = vpack.c.bf16 %v574_v58, %v570_v54  ;;  %v7338_v0 = vpack.c.bf16 %v571_v60, %v567_v59  ;;  %v569_v1 = vld [vmem:[%s11003_s3 + $0x50] sm:$0xff]  ;;  %v576_v8 = vld [vmem:[%s11003_s3 + $0x88] sm:$0xff]  ;;  %v578_v12 = vld [vmem:[%s11003_s3 + $0x98] sm:$0xff] }
  0x1a   :  { %5201 = vmatprep.subr.bf16.mxu1 %v7122_v51  ;;  %4605 = vmatmul.mubr.msk.f32.gmra.mrb[4].mxu0 %vm40_vm1, %v7011_v21  ;;  %v374_v21 = vld [vmem:[%s11002_s2 + $0xd0] sm:$0xff]  ;;  %v580_v9 = vld [vmem:[%s11003_s3 + $0xa8] sm:$0xff]  ;;  %v582_v17 = vld [vmem:[%s11003_s3 + $0xb8] sm:$0xff] }
  0x1b   :  { %157 = vmatprep.mubr.f32.mxu0 %v11008_v3  ;;  %v573_v4 = vld [vmem:[%s11003_s3 + $0x70] sm:$0xff]  ;;  %v7360_v13 = vpack.c.bf16 %v580_v9, %v576_v8  ;;  %v575_v18 = vld [vmem:[%s11003_s3 + $0x80] sm:$0xff]  ;;  %v592_v54 = vld [vmem:[%s11003_s3 + $0x108] sm:$0xff] }
  0x1c   :  { %v7347_v5 = vpack.c.bf16 %v573_v4, %v569_v1  ;;  %v577_v26 = vld [vmem:[%s11003_s3 + $0x90] sm:$0xff]  ;;  %v587_v41 = vld [vmem:[%s11003_s3 + $0xe0] sm:$0xff]  ;;  %v596_v58 = vld [vmem:[%s11003_s3 + $0x128] sm:$0xff] }
  0x1d   :  { %5203 = vmatpush1.bf16.msra.mxu1 %v7140_v56  ;;  %v585_v48 = vld [vmem:[%s11003_s3 + $0xd0] sm:$0xff]  ;;  %v594_v59 = vld [vmem:[%s11003_s3 + $0x118] sm:$0xff]  ;;  %v7433_v60 = vpack.c.bf16 %v596_v58, %v592_v54  ;;  %v591_v4 = vld [vmem:[%s11003_s3 + $0x100] sm:$0xff] }
  0x1e   :  { %5205 = vmatprep.subr.bf16.mxu1 %v7143_v57  ;;  %4606 = vmatmul.mubr.msk.f32.gmra.mrb[6].mxu0 %vm40_vm1, %v7016_v22  ;;  %v377_v22 = vld [vmem:[%s11002_s2 + $0xe8] sm:$0xff]  ;;  %v589_v52 = vld [vmem:[%s11003_s3 + $0xf0] sm:$0xff]  ;;  %v598_v1 = vld [vmem:[%s11003_s3 + $0x138] sm:$0xff] }
  0x1f   :  { %163 = vmatprep.mubr.f32.mxu0 %v11008_v3  ;;  %v7244_v24 = vpack.c.bf16 %v377_v22, %v374_v21  ;;  %v579_v21 = vld [vmem:[%s11003_s3 + $0xa0] sm:$0xff]  ;;  %v7372_v22 = vpack.c.bf16 %v582_v17, %v578_v12  ;;  %v7419_v53 = vpack.c.bf16 %v589_v52, %v585_v48  ;;  %v7444_v9 = vpack.c.bf16 %v598_v1, %v594_v59  ;;  %v593_v17 = vld [vmem:[%s11003_s3 + $0x110] sm:$0xff]  ;;  %v608_v59 = vld [vmem:[%s11003_s3 + $0x188] sm:$0xff] }
  0x20   :  { %v7374_v25 = vpack.c.bf16 %v579_v21, %v575_v18  ;;  %v595_v8 = vld [vmem:[%s11003_s3 + $0x120] sm:$0xff]  ;;  %v597_v18 = vld [vmem:[%s11003_s3 + $0x130] sm:$0xff]  ;;  %v612_v1 = vld [vmem:[%s11003_s3 + $0x1a8] sm:$0xff] }
  0x21   :  { %5207 = vmatpush1.bf16.msra.mxu1 %v7161_v62  ;;  %v7446_v12 = vpack.c.bf16 %v595_v8, %v591_v4  ;;  %v7455_v21 = vpack.c.bf16 %v597_v18, %v593_v17  ;;  %v601_v52 = vld [vmem:[%s11003_s3 + $0x150] sm:$0xff]  ;;  %v610_v4 = vld [vmem:[%s11003_s3 + $0x198] sm:$0xff]  ;;  %v7505_v8 = vpack.c.bf16 %v612_v1, %v608_v59  ;;  %v607_v18 = vld [vmem:[%s11003_s3 + $0x180] sm:$0xff] }
  0x22   :  { %5209 = vmatprep.subr.bf16.mxu1 %v7164_v63  ;;  %4607 = vmatmul.mubr.msk.f32.gmra.mrb[8].mxu0 %vm40_vm1, %v7038_v28  ;;  %v386_v28 = vld [vmem:[%s11002_s2 + $0x130] sm:$0xff]  ;;  %v614_v17 = vld [vmem:[%s11003_s3 + $0x1b8] sm:$0xff] }
  0x23   :  { %169 = vmatprep.mubr.f32.mxu0 %v11008_v3  ;;  %v7264_v31 = vpack.c.bf16 %v389_v29, %v386_v28  ;;  %v581_v28 = vld [vmem:[%s11003_s3 + $0xb0] sm:$0xff]  ;;  %11199 = vst [vmem:[#allocation4_spill] sm:$0xff] %v7505_v8  ;;  %v618_v59 = vld [vmem:[%s11003_s3 + $0x1d8] sm:$0xff] }
  0x24   :  { %v7383_v29 = vpack.c.bf16 %v581_v28, %v577_v26  ;;  %v600_v26 = vld [vmem:[%s11003_s3 + $0x148] sm:$0xff]  ;;  %v605_v54 = vld [vmem:[%s11003_s3 + $0x170] sm:$0xff] }
  0x25   :  { %5211 = vmatpush1.bf16.msra.mxu1 %v7176_v2  ;;  %v604_v28 = vld [vmem:[%s11003_s3 + $0x168] sm:$0xff]  ;;  %v7491_v58 = vpack.c.bf16 %v605_v54, %v601_v52 }
  0x26   :  { %5212 = vmatprep.subr.bf16.mxu1 %v11010_v7  ;;  %4608 = vmatmul.mubr.msk.f32.gmra.mrb[10].mxu0 %vm40_vm1, %v7056_v32  ;;  %v392_v32 = vld [vmem:[%s11002_s2 + $0x160] sm:$0xff]  ;;  %v616_v52 = vld [vmem:[%s11003_s3 + $0x1c8] sm:$0xff] }
  0x27   :  { %175 = vmatprep.mubr.f32.mxu0 %v11008_v3  ;;  %v7274_v35 = vpack.c.bf16 %v395_v33, %v392_v32  ;;  %v584_v32 = vld [vmem:[%s11003_s3 + $0xc8] sm:$0xff] }
  0x28   :  { %461 = vmatmul.mubr.f32.vlgmr.msra.gmra.mrb[8].mxu1 %v11008_v3  ;;  %v588_v33 = vld [vmem:[%s11003_s3 + $0xe8] sm:$0xff] }
  0x29   :  { %5214 = vmatpush3.bf16.msra.mxu1 %v7189_v6  ;;  %4876 = vmatprep.mubr.msk.f32.mxu1 %vm6898_vm4, %v11008_v3  ;;  %v620_v54 = vld [vmem:[%s11003_s3 + $0x1e8] sm:$0xff] }
  0x2a   :  { %5215 = vmatprep.subr.bf16.mxu1 %v11010_v7  ;;  %4609 = vmatmul.mubr.msk.f32.gmra.mrb[12].mxu0 %vm40_vm1, %v7070_v36  ;;  %v560_v36 = vld [vmem:[%s11003_s3 + $0x8] sm:$0xff]  ;;  %v7541_v1 = vpack.c.bf16 %v620_v54, %v616_v52  ;;  %v621_v52 = vld [vmem:[%s11003_s3 + $0x1f0] sm:$0xff] }
  0x2b   :  { %181 = vmatprep.mubr.f32.mxu0 %v11008_v3  ;;  %v7289_v39 = vpack.c.bf16 %v564_v37, %v560_v36  ;;  %v586_v36 = vld [vmem:[%s11003_s3 + $0xd8] sm:$0xff]  ;;  %v7397_v37 = vpack.c.bf16 %v588_v33, %v584_v32  ;;  %v7469_v33 = vpack.c.bf16 %v604_v28, %v600_v26  ;;  %v611_v26 = vld [vmem:[%s11003_s3 + $0x1a0] sm:$0xff]  ;;  %v7516_v28 = vpack.c.bf16 %v614_v17, %v610_v4 }
  0x2c   :  { %v602_v32 = vld [vmem:[%s11003_s3 + $0x158] sm:$0xff]  ;;  %11203 = vst [vmem:[#allocation8_spill] sm:$0xff] %v7541_v1  ;;  %v615_v17 = vld [vmem:[%s11003_s3 + $0x1c0] sm:$0xff] }
  0x2d   :  { %5217 = vmatpush3.bf16.msra.mxu1 %v7203_v11  ;;  %5237 = vmatprep.subr.bf16.mxu0 %v7289_v39  ;;  %11200 = vst [vmem:[#allocation5_spill] sm:$0xff] %v7516_v28  ;;  %v622_v4 = vld [vmem:[%s11003_s3 + $0x1f8] sm:$0xff] }
  0x2e   :  { %5218 = vmatprep.subr.bf16.mxu1 %v11010_v7  ;;  %4610 = vmatmul.mubr.msk.f32.gmra.mrb[14].mxu0 %vm40_vm1, %v7094_v44  ;;  %v7300_v44 = vpack.c.bf16 %v566_v40, %v562_v38  ;;  %v590_v38 = vld [vmem:[%s11003_s3 + $0xf8] sm:$0xff]  ;;  %v583_v40 = vld [vmem:[%s11003_s3 + $0xc0] sm:$0xff] }
  0x2f   :  { %751 = vmatprep.mubr.f32.mxu0 %v11008_v3  ;;  %5239 = vmatpush1.bf16.msra.mxu0 %v7302_v46  ;;  %v7408_v42 = vpack.c.bf16 %v590_v38, %v586_v36  ;;  %v7410_v47 = vpack.c.bf16 %v587_v41, %v583_v40  ;;  %v606_v36 = vld [vmem:[%s11003_s3 + $0x178] sm:$0xff]  ;;  %v599_v38 = vld [vmem:[%s11003_s3 + $0x140] sm:$0xff] }
  0x30   :  { %5241 = vmatprep.subr.bf16.mxu0 %v7324_v55  ;;  %v603_v40 = vld [vmem:[%s11003_s3 + $0x160] sm:$0xff]  ;;  %v7480_v41 = vpack.c.bf16 %v606_v36, %v602_v32  ;;  %v7518_v32 = vpack.c.bf16 %v611_v26, %v607_v18  ;;  %v609_v36 = vld [vmem:[%s11003_s3 + $0x190] sm:$0xff]  ;;  %v7552_v26 = vpack.c.bf16 %v622_v4, %v618_v59  ;;  %v624_v59 = vld [vmem:[%s11003_s3 + $0x208] sm:$0xff] }
  0x31   :  { %5220 = vmatpush3.bf16.msra.mxu1 %v7218_v16  ;;  %v7482_v48 = vpack.c.bf16 %v603_v40, %v599_v38  ;;  %v613_v38 = vld [vmem:[%s11003_s3 + $0x1b0] sm:$0xff]  ;;  %v619_v18 = vld [vmem:[%s11003_s3 + $0x1e0] sm:$0xff]  ;;  %v628_v4 = vld [vmem:[%s11003_s3 + $0x228] sm:$0xff] }
  0x32   :  { %5221 = vmatprep.subr.bf16.mxu1 %v11010_v7  ;;  %11201 = vst [vmem:[#allocation6_spill] sm:$0xff] %v7518_v32  ;;  %v7527_v40 = vpack.c.bf16 %v613_v38, %v609_v36  ;;  %11204 = vst [vmem:[#allocation9_spill] sm:$0xff] %v7552_v26  ;;  %v7554_v36 = vpack.c.bf16 %v619_v18, %v615_v17  ;;  %v617_v38 = vld [vmem:[%s11003_s3 + $0x1d0] sm:$0xff]  ;;  %v626_v17 = vld [vmem:[%s11003_s3 + $0x218] sm:$0xff]  ;;  %v7577_v18 = vpack.c.bf16 %v628_v4, %v624_v59 }
  0x33   :  { %5243 = vmatpush1.bf16.msra.mxu0 %v7338_v0  ;;  %v7563_v54 = vpack.c.bf16 %v621_v52, %v617_v38  ;;  %v630_v38 = vld [vmem:[%s11003_s3 + $0x238] sm:$0xff]  ;;  %v623_v52 = vld [vmem:[%s11003_s3 + $0x200] sm:$0xff]  ;;  %v625_v59 = vld [vmem:[%s11003_s3 + $0x210] sm:$0xff] }
  0x34   :  { %5245 = vmatprep.subr.bf16.mxu0 %v7360_v13  ;;  %11202 = vst [vmem:[#allocation7_spill] sm:$0xff] %v7527_v40  ;;  %11205 = vst [vmem:[#allocation10_spill] sm:$0xff] %v7554_v36  ;;  %v629_v4 = vld [vmem:[%s11003_s3 + $0x230] sm:$0xff] }
  0x35   :  { %5223 = vmatpush3.bf16.msra.mxu1 %v7231_v19  ;;  %11206 = vst [vmem:[#allocation11_spill] sm:$0xff] %v7563_v54  ;;  %11207 = vst [vmem:[#allocation12_spill] sm:$0xff] %v7577_v18 }
  0x36   :  { %5224 = vmatprep.subr.bf16.mxu1 %v11010_v7 }
  0x37   :  { %5247 = vmatpush1.bf16.msra.mxu0 %v7374_v25 }
  0x38   :  { %5249 = vmatprep.subr.bf16.mxu0 %v7397_v37 }
  0x39   :  { %5226 = vmatpush3.bf16.msra.mxu1 %v7244_v24 }
  0x3a   :  { %5227 = vmatprep.subr.bf16.mxu1 %v11010_v7 }
  0x3b   :  { %5251 = vmatpush1.bf16.msra.mxu0 %v7410_v47 }
  0x3c   :  { %5253 = vmatprep.subr.bf16.mxu0 %v7433_v60 }
  0x3d   :  { %5229 = vmatpush3.bf16.msra.mxu1 %v7254_v27 }
  0x3e   :  { %5230 = vmatprep.subr.bf16.mxu1 %v11010_v7 }
  0x3f   :  { %5255 = vmatpush1.bf16.msra.mxu0 %v7446_v12 }
  0x40   :  { %5257 = vmatprep.subr.bf16.mxu0 %v7469_v33 }
  0x41   :  { %5232 = vmatpush3.bf16.msra.mxu1 %v7264_v31 }
  0x42   :  { %5233 = vmatprep.subr.bf16.mxu1 %v11010_v7  ;;  %v7588_v7 = vpack.c.bf16 %v630_v38, %v626_v17  ;;  %v636_v17 = vld [vmem:[%s11003_s3 + $0x268] sm:$0xff]  ;;  %v634_v38 = vld [vmem:[%s11003_s3 + $0x258] sm:$0xff] }
  0x43   :  { %5259 = vmatpush1.bf16.msra.mxu0 %v7482_v48 }
  0x44   :  { %5261 = vmatprep.subr.bf16.mxu0 %v7505_v8  ;;  %11208 = vst [vmem:[#allocation13_spill] sm:$0xff] %v7588_v7 }
  0x45   :  { %5235 = vmatpush3.bf16.msra.mxu1 %v7274_v35 }
  0x46   :  { %5301 = vmatprep.subr.bf16.mxu1 %v7300_v44 }
  0x47   :  { %5263 = vmatpush1.bf16.msra.mxu0 %v7518_v32 }
  0x48   :  { %4877 = vmatmul.mubr.f32.vlgmr.msra.gmra.mrb[10].mxu1 %v11008_v3  ;;  %5265 = vmatprep.subr.bf16.mxu0 %v7541_v1 }
  0x49   :  { %822 = vmatprep.mubr.f32.mxu1 %v11008_v3  ;;  %5303 = vmatpush1.bf16.msra.mxu1 %v7311_v49  ;;  %v627_v3 = vld [vmem:[%s11003_s3 + $0x220] sm:$0xff] }
  0x4a   :  { %5305 = vmatprep.subr.bf16.mxu1 %v7336_v61 }
  0x4b   :  { %5267 = vmatpush1.bf16.msra.mxu0 %v7554_v36  ;;  %v7590_v36 = vpack.c.bf16 %v627_v3, %v623_v52  ;;  %v632_v3 = vld [vmem:[%s11003_s3 + $0x248] sm:$0xff] }
  0x4c   :  { %5269 = vmatprep.subr.bf16.mxu0 %v7577_v18  ;;  %v7613_v52 = vpack.c.bf16 %v636_v17, %v632_v3  ;;  %v633_v3 = vld [vmem:[%s11003_s3 + $0x250] sm:$0xff] }
  0x4d   :  { %5307 = vmatpush1.bf16.msra.mxu1 %v7347_v5  ;;  %11209 = vst [vmem:[#allocation14_spill] sm:$0xff] %v7590_v36  ;;  %v637_v17 = vld [vmem:[%s11003_s3 + $0x270] sm:$0xff] }
  0x4e   :  { %5309 = vmatprep.subr.bf16.mxu1 %v7372_v22  ;;  %11211 = vst [vmem:[#allocation16_spill] sm:$0xff] %v7613_v52 }
  0x4f   :  { %5271 = vmatpush1.bf16.msra.mxu0 %v7590_v36  ;;  %v635_v36 = vld [vmem:[%s11003_s3 + $0x260] sm:$0xff] }
  0x50   :  { %5273 = vmatprep.subr.bf16.mxu0 %v7613_v52 }
  0x51   :  { %5311 = vmatpush1.bf16.msra.mxu1 %v7383_v29 }
  0x52   :  { %5313 = vmatprep.subr.bf16.mxu1 %v7408_v42 }
  0x55   :  { %5315 = vmatpush1.bf16.msra.mxu1 %v7419_v53 }
  0x56   :  { %5317 = vmatprep.subr.bf16.mxu1 %v7444_v9 }
  0x59   :  { %5319 = vmatpush1.bf16.msra.mxu1 %v7455_v21 }
  0x5a   :  { %5321 = vmatprep.subr.bf16.mxu1 %v7480_v41 }
  0x5d   :  { %5323 = vmatpush1.bf16.msra.mxu1 %v7491_v58 }
  0x5e   :  { %5325 = vmatprep.subr.bf16.mxu1 %v7516_v28 }
  0x61   :  { %5327 = vmatpush1.bf16.msra.mxu1 %v7527_v40 }
  0x62   :  { %5329 = vmatprep.subr.bf16.mxu1 %v7552_v26  ;;  %v658_v26 = vld [vmem:[%s11003_s3 + $0x318] sm:$0xff] }
  0x65   :  { %5331 = vmatpush1.bf16.msra.mxu1 %v7563_v54  ;;  %v7599_v54 = vpack.c.bf16 %v629_v4, %v625_v59  ;;  %v638_v59 = vld [vmem:[%s11003_s3 + $0x278] sm:$0xff]  ;;  %v631_v4 = vld [vmem:[%s11003_s3 + $0x240] sm:$0xff] }
  0x66   :  { %5333 = vmatprep.subr.bf16.mxu1 %v7588_v7  ;;  %v7624_v7 = vpack.c.bf16 %v638_v59, %v634_v38  ;;  %v7626_v18 = vpack.c.bf16 %v635_v36, %v631_v4  ;;  %v640_v36 = vld [vmem:[%s11003_s3 + $0x288] sm:$0xff]  ;;  %v642_v59 = vld [vmem:[%s11003_s3 + $0x298] sm:$0xff] }
  0x67   :  { %11210 = vst [vmem:[#allocation15_spill] sm:$0xff] %v7599_v54  ;;  %v644_v38 = vld [vmem:[%s11003_s3 + $0x2a8] sm:$0xff] }
  0x68   :  { %11212 = vst [vmem:[#allocation17_spill] sm:$0xff] %v7624_v7  ;;  %11213 = vst [vmem:[#allocation18_spill] sm:$0xff] %v7626_v18  ;;  %5275 = vmatpush1.bf16.msra.mxu0 %v7626_v18  ;;  %v7649_v4 = vpack.c.bf16 %v644_v38, %v640_v36  ;;  %v643_v18 = vld [vmem:[%s11003_s3 + $0x2a0] sm:$0xff]  ;;  %v641_v36 = vld [vmem:[%s11003_s3 + $0x290] sm:$0xff] }
  0x69   :  { %5335 = vmatpush1.bf16.msra.mxu1 %v7599_v54  ;;  %v7635_v54 = vpack.c.bf16 %v637_v17, %v633_v3  ;;  %v646_v3 = vld [vmem:[%s11003_s3 + $0x2b8] sm:$0xff]  ;;  %v639_v17 = vld [vmem:[%s11003_s3 + $0x280] sm:$0xff]  ;;  %v645_v38 = vld [vmem:[%s11003_s3 + $0x2b0] sm:$0xff] }
  0x6a   :  { %5337 = vmatprep.subr.bf16.mxu1 %v7624_v7  ;;  %11215 = vst [vmem:[#allocation20_spill] sm:$0xff] %v7649_v4  ;;  %v7660_v7 = vpack.c.bf16 %v646_v3, %v642_v59  ;;  %v7662_v52 = vpack.c.bf16 %v643_v18, %v639_v17  ;;  %5277 = vmatprep.subr.bf16.mxu0 %v7649_v4  ;;  %v648_v18 = vld [vmem:[%s11003_s3 + $0x2c8] sm:$0xff]  ;;  %v650_v3 = vld [vmem:[%s11003_s3 + $0x2d8] sm:$0xff] }
  0x6b   :  { %11214 = vst [vmem:[#allocation19_spill] sm:$0xff] %v7635_v54  ;;  %v652_v59 = vld [vmem:[%s11003_s3 + $0x2e8] sm:$0xff] }
  0x6c   :  { %11216 = vst [vmem:[#allocation21_spill] sm:$0xff] %v7660_v7  ;;  %11217 = vst [vmem:[#allocation22_spill] sm:$0xff] %v7662_v52  ;;  %5279 = vmatpush1.bf16.msra.mxu0 %v7662_v52  ;;  %v7685_v17 = vpack.c.bf16 %v652_v59, %v648_v18  ;;  %v653_v18 = vld [vmem:[%s11003_s3 + $0x2f0] sm:$0xff] }
  0x6d   :  { %5339 = vmatpush1.bf16.msra.mxu1 %v7635_v54  ;;  %v7671_v54 = vpack.c.bf16 %v645_v38, %v641_v36  ;;  %v654_v36 = vld [vmem:[%s11003_s3 + $0x2f8] sm:$0xff]  ;;  %v647_v38 = vld [vmem:[%s11003_s3 + $0x2c0] sm:$0xff] }
  0x6e   :  { %5341 = vmatprep.subr.bf16.mxu1 %v7660_v7  ;;  %11219 = vst [vmem:[#allocation24_spill] sm:$0xff] %v7685_v17  ;;  %v7693_v52 = vpack.c.bf16 %v654_v36, %v650_v3  ;;  %v651_v7 = vld [vmem:[%s11003_s3 + $0x2e0] sm:$0xff]  ;;  %5281 = vmatprep.subr.bf16.mxu0 %v7685_v17  ;;  %v656_v3 = vld [vmem:[%s11003_s3 + $0x308] sm:$0xff] }
  0x6f   :  { %11218 = vst [vmem:[#allocation23_spill] sm:$0xff] %v7671_v54  ;;  %v7705_v59 = vpack.c.bf16 %v651_v7, %v647_v38  ;;  %v660_v36 = vld [vmem:[%s11003_s3 + $0x328] sm:$0xff]  ;;  %v655_v38 = vld [vmem:[%s11003_s3 + $0x300] sm:$0xff] }
  0x70   :  { %11220 = vst [vmem:[#allocation25_spill] sm:$0xff] %v7693_v52  ;;  %v7721_v7 = vpack.c.bf16 %v660_v36, %v656_v3  ;;  %v657_v3 = vld [vmem:[%s11003_s3 + $0x310] sm:$0xff] }
  0x71   :  { %5343 = vmatpush1.bf16.msra.mxu1 %v7671_v54  ;;  %v649_v54 = vld [vmem:[%s11003_s3 + $0x2d0] sm:$0xff]  ;;  %11221 = vst [vmem:[#allocation26_spill] sm:$0xff] %v7705_v59  ;;  %5283 = vmatpush1.bf16.msra.mxu0 %v7705_v59 }
  0x72   :  { %v7707_v4 = vpack.c.bf16 %v653_v18, %v649_v54  ;;  %5345 = vmatprep.subr.bf16.mxu1 %v7693_v52  ;;  %11223 = vst [vmem:[#allocation28_spill] sm:$0xff] %v7721_v7  ;;  %v662_v54 = vld [vmem:[%s11003_s3 + $0x338] sm:$0xff]  ;;  %v659_v18 = vld [vmem:[%s11003_s3 + $0x320] sm:$0xff]  ;;  %v661_v36 = vld [vmem:[%s11003_s3 + $0x330] sm:$0xff]  ;;  %5285 = vmatprep.subr.bf16.mxu0 %v7721_v7 }
  0x73   :  { %v7732_v52 = vpack.c.bf16 %v662_v54, %v658_v26  ;;  %v7734_v17 = vpack.c.bf16 %v659_v18, %v655_v38  ;;  %v664_v26 = vld [vmem:[%s11003_s3 + $0x348] sm:$0xff]  ;;  %v666_v38 = vld [vmem:[%s11003_s3 + $0x358] sm:$0xff] }
  0x74   :  { %11222 = vst [vmem:[#allocation27_spill] sm:$0xff] %v7707_v4  ;;  %v668_v54 = vld [vmem:[%s11003_s3 + $0x368] sm:$0xff] }
  0x75   :  { %5347 = vmatpush1.bf16.msra.mxu1 %v7707_v4  ;;  %11224 = vst [vmem:[#allocation29_spill] sm:$0xff] %v7732_v52  ;;  %11225 = vst [vmem:[#allocation30_spill] sm:$0xff] %v7734_v17  ;;  %v7743_v4 = vpack.c.bf16 %v661_v36, %v657_v3  ;;  %5287 = vmatpush1.bf16.msra.mxu0 %v7734_v17  ;;  %v7757_v18 = vpack.c.bf16 %v668_v54, %v664_v26  ;;  %v670_v3 = vld [vmem:[%s11003_s3 + $0x378] sm:$0xff]  ;;  %v663_v36 = vld [vmem:[%s11003_s3 + $0x340] sm:$0xff] }
  0x76   :  { %5349 = vmatprep.subr.bf16.mxu1 %v7732_v52  ;;  %v667_v52 = vld [vmem:[%s11003_s3 + $0x360] sm:$0xff]  ;;  %v7768_v7 = vpack.c.bf16 %v670_v3, %v666_v38  ;;  %v665_v26 = vld [vmem:[%s11003_s3 + $0x350] sm:$0xff]  ;;  %v674_v38 = vld [vmem:[%s11003_s3 + $0x398] sm:$0xff] }
  0x77   :  { %11226 = vst [vmem:[#allocation31_spill] sm:$0xff] %v7743_v4  ;;  %11227 = vst [vmem:[#allocation32_spill] sm:$0xff] %v7757_v18  ;;  %v7770_v59 = vpack.c.bf16 %v667_v52, %v663_v36  ;;  %v669_v54 = vld [vmem:[%s11003_s3 + $0x370] sm:$0xff]  ;;  %5289 = vmatprep.subr.bf16.mxu0 %v7757_v18  ;;  %v676_v52 = vld [vmem:[%s11003_s3 + $0x3a8] sm:$0xff] }
  0x78   :  { %11228 = vst [vmem:[#allocation33_spill] sm:$0xff] %v7768_v7  ;;  %v7782_v17 = vpack.c.bf16 %v669_v54, %v665_v26  ;;  %v678_v3 = vld [vmem:[%s11003_s3 + $0x3b8] sm:$0xff]  ;;  %v671_v26 = vld [vmem:[%s11003_s3 + $0x380] sm:$0xff]  ;;  %v673_v18 = vld [vmem:[%s11003_s3 + $0x390] sm:$0xff] }
  0x79   :  { %5351 = vmatpush1.bf16.msra.mxu1 %v7743_v4  ;;  %11229 = vst [vmem:[#allocation34_spill] sm:$0xff] %v7770_v59  ;;  %v672_v4 = vld [vmem:[%s11003_s3 + $0x388] sm:$0xff]  ;;  %v7796_v1 = vpack.c.bf16 %v678_v3, %v674_v38  ;;  %v675_v54 = vld [vmem:[%s11003_s3 + $0x3a0] sm:$0xff]  ;;  %5291 = vmatpush1.bf16.msra.mxu0 %v7770_v59 }
  0x7a   :  { %11230 = vst [vmem:[#allocation35_spill] sm:$0xff] %v7782_v17  ;;  %5353 = vmatprep.subr.bf16.mxu1 %v7768_v7  ;;  %v7794_v36 = vpack.c.bf16 %v676_v52, %v672_v4  ;;  %v7809_v4 = vpack.c.bf16 %v675_v54, %v671_v26  ;;  %v677_v52 = vld [vmem:[%s11003_s3 + $0x3b0] sm:$0xff]  ;;  %v680_v38 = vld [vmem:[%s11003_s3 + $0x3c8] sm:$0xff]  ;;  %v682_v54 = vld [vmem:[%s11003_s3 + $0x3d8] sm:$0xff] }
  0x7b   :  { %11232 = vst [vmem:[#allocation37_spill] sm:$0xff] %v7796_v1  ;;  %v684_v3 = vld [vmem:[%s11003_s3 + $0x3e8] sm:$0xff]  ;;  %v7822_v59 = vpack.c.bf16 %v677_v52, %v673_v18  ;;  %v679_v7 = vld [vmem:[%s11003_s3 + $0x3c0] sm:$0xff]  ;;  %v681_v52 = vld [vmem:[%s11003_s3 + $0x3d0] sm:$0xff] }
  0x7c   :  { %11231 = vst [vmem:[#allocation36_spill] sm:$0xff] %v7794_v36  ;;  %11233 = vst [vmem:[#allocation38_spill] sm:$0xff] %v7809_v4  ;;  %5293 = vmatprep.subr.bf16.mxu0 %v7794_v36  ;;  %v7824_v26 = vpack.c.bf16 %v684_v3, %v680_v38  ;;  %v683_v18 = vld [vmem:[%s11003_s3 + $0x3e0] sm:$0xff]  ;;  %v685_v38 = vld [vmem:[%s11003_s3 + $0x3f0] sm:$0xff] }
  0x7d   :  { %5355 = vmatpush1.bf16.msra.mxu1 %v7782_v17  ;;  %11234 = vst [vmem:[#allocation39_spill] sm:$0xff] %v7822_v59  ;;  %v686_v17 = vld [vmem:[%s11003_s3 + $0x3f8] sm:$0xff]  ;;  %5295 = vmatpush1.bf16.msra.mxu0 %v7809_v4  ;;  %v7848_v3 = vpack.c.bf16 %v683_v18, %v679_v7 }
  0x7e   :  { %5357 = vmatprep.subr.bf16.mxu1 %v7796_v1  ;;  %11235 = vst [vmem:[#allocation40_spill] sm:$0xff] %v7824_v26  ;;  %v7835_v40 = vpack.c.bf16 %v686_v17, %v682_v54  ;;  %v7850_v17 = vpack.c.bf16 %v685_v38, %v681_v52  ;;  %5297 = vmatprep.subr.bf16.mxu0 %v7824_v26  ;;  %v11239_v54 = vmov 0.0|0.0  }
  0x7f   :  { %11237 = vst [vmem:[#allocation42_spill] sm:$0xff] %v7848_v3 }
  0x80   :  { %11236 = vst [vmem:[#allocation41_spill] sm:$0xff] %v7835_v40  ;;  %11238 = vst [vmem:[#allocation43_spill] sm:$0xff] %v7850_v17 }
  0x81   :  { %5359 = vmatpush1.bf16.msra.mxu1 %v7822_v59  ;;  %5299 = vmatpush1.bf16.msra.mxu0 %v7848_v3 }
  0x82   :  { %5361 = vmatprep.subr.bf16.mxu1 %v7835_v40  ;;  %5365 = vmatprep.subr.bf16.mxu0 %v6971_v10 }
  0x85   :  { %5363 = vmatpush1.bf16.msra.mxu1 %v7850_v17 }
  0x86   :  { %5396 = vmatprep.subr.bf16.mxu1 %v11239_v54 }
  0xdb   :  { %v7858_v1 = vpop.f32.mrb[0].mxu1 }
  0xdc   :  { %11240 = vst [vmem:[#allocation44_spill] sm:$0xff] %v7858_v1  ;;  %v254_v4 = vpop.f32.mrb[1].mxu1 }
  0xdf   :  { %v7860_v59 = vpop.f32.mrb[2].mxu1 }
  0xe0   :  { %11241 = vst [vmem:[#allocation45_spill] sm:$0xff] %v7860_v59  ;;  %v7862_v7 = vpop.f32.mrb[3].mxu1 }
  0xe1   :  { %11242 = vst [vmem:[#allocation46_spill] sm:$0xff] %v7862_v7 }
  0xe3   :  { %v7864_v18 = vpop.f32.mrb[4].mxu1 }
  0xe4   :  { %11243 = vst [vmem:[#allocation47_spill] sm:$0xff] %v7864_v18  ;;  %v7866_v52 = vpop.f32.mrb[5].mxu1 }
  0xe5   :  { %11244 = vst [vmem:[#allocation48_spill] sm:$0xff] %v7866_v52  ;;  %v141_v17 = vpop.f32.mrb[0].mxu0 }
  0xe6   :  { %v143_v40 = vpop.f32.mrb[1].mxu0 }
  0xe7   :  { %v7868_v38 = vpop.f32.mrb[6].mxu1 }
  0xe8   :  { %11245 = vst [vmem:[#allocation49_spill] sm:$0xff] %v7868_v38  ;;  %v7870_v3 = vpop.f32.mrb[7].mxu1  ;;  %v7875_v38 = vld [vmem:[%s11004_s4] ss:$0 sm:$0xff] }
  0xe9   :  { %11246 = vst [vmem:[#allocation50_spill] sm:$0xff] %v7870_v3 }
  0xfb   :  { %v462_v10 = vpop.f32.mrb[8].mxu1 }
  0xfc   :  { %v537_v26 = vadd.f32 %v462_v10, %v141_v17  ;;  %v464_v36 = vpop.f32.mrb[9].mxu1 }
  0xfd   :  { %v544_v32 = vadd.f32 %v464_v36, %v143_v40 }
  0xfe   :  { %v4625_v1 = vmul.f32 -1.442695, %v537_v26 }
  0xff   :  { %v4626_v28 = vmul.f32 -1.442695, %v544_v32 }
 0x100   :  { %6704 = vpow2.f32 %v4625_v1 }
 0x101   :  { %6706 = vpow2.f32 %v4626_v28 }
 0x10a   :  { %v6705_v59 = vpop.eup %6704 }
 0x10b   :  { %v541_v7 = vadd.f32 1.0, %v6705_v59  ;;  %v6707_v18 = vpop.eup %6706 }
 0x10c   :  { %v548_v3 = vadd.f32 1.0, %v6707_v18 }
 0x10d   :  { %6708 = vrcp.f32 %v541_v7 }
 0x10e   :  { %6710 = vrcp.f32 %v548_v3 }
 0x117   :  { %v6709_v10 = vpop.eup %6708 }
 0x118   :  { %v6711_v32 = vpop.eup %6710 }
 0x119   :  { %v555_v28 = vsub.f32 1.0, %v6711_v32  ;;  %v557_v26 = vmul.f32 0.0, %v6711_v32 }
 0x11b   :  { %v533_v52 = vpop.f32.mrb[10].mxu1 }
 0x11c   :  { %v551_v8 = vadd.f32 %v7875_v38, %v533_v52  ;;  %v4878_v17 = vpop.f32.mrb[11].mxu1 }
 0x11e   :  { %v552_v40 = vmul.f32 %v6709_v10, %v551_v8  ;;  %v11247_v8 = vmov 0.0  }
 0x120   :  { %v553_v1 = vadd.f32 %v552_v40, %v254_v4  ;;  %v8000_v4 = vld [vmem:[%s11004_s4 + $0x2] ss:$0 sm:$0xff] }
 0x122   :  { %6712 = vtanh.f32 %v553_v1 }
 0x12c   :  { %v6713_v59 = vpop.eup %6712 }
 0x12d   :  { %v556_v36 = vmul.f32 %v6713_v59, %v555_v28  ;;  %v8006_v28 = vld [vmem:[%s11004_s4 + $0x4] ss:$0 sm:$0xff] }
 0x12f   :  { %v7878_v7 = vadd.f32 %v557_v26, %v556_v36  ;;  %v8011_v36 = vld [vmem:[%s11004_s4 + $0x3] ss:$0 sm:$0xff] }
 0x131   :  { %752 = vmatmul.mubr.f32.vlgmr.msra.gmra.mrb[16].mxu0 %v7878_v7  ;;  %823 = vmatmul.mubr.f32.vlgmr.msra.gmra.mrb[12].mxu1 %v7878_v7 }
 0x132   :  { %5367 = vmatpush1.bf16.msra.mxu0 %v6986_v14  ;;  %5398 = vmatpush3.bf16.msra.mxu1 %v7189_v6  ;;  %v11248_v14 = vld [vmem:[#allocation4_spill] sm:$0xff]  ;;  %v11263_v6 = vld [vmem:[#allocation19_spill] sm:$0xff] }
 0x133   :  { %5369 = vmatprep.subr.bf16.mxu0 %v6989_v15  ;;  %5399 = vmatprep.subr.bf16.mxu1 %v11239_v54  ;;  %v11249_v15 = vld [vmem:[#allocation5_spill] sm:$0xff] }
 0x134   :  { %971 = vmatprep.mubr.f32.mxu0 %v11247_v8  ;;  %4911 = vmatprep.mubr.msk.f32.mxu1 %vm6898_vm4, %v11247_v8 }
 0x136   :  { %5371 = vmatpush1.bf16.msra.mxu0 %v7006_v20  ;;  %5401 = vmatpush3.bf16.msra.mxu1 %v7203_v11  ;;  %v11250_v20 = vld [vmem:[#allocation6_spill] sm:$0xff]  ;;  %v11264_v11 = vld [vmem:[#allocation20_spill] sm:$0xff] }
 0x137   :  { %5373 = vmatprep.subr.bf16.mxu0 %v7019_v23  ;;  %5402 = vmatprep.subr.bf16.mxu1 %v11239_v54  ;;  %v11251_v23 = vld [vmem:[#allocation7_spill] sm:$0xff] }
 0x13a   :  { %5375 = vmatpush1.bf16.msra.mxu0 %v7046_v30  ;;  %5404 = vmatpush3.bf16.msra.mxu1 %v7218_v16  ;;  %v11252_v30 = vld [vmem:[#allocation8_spill] sm:$0xff]  ;;  %v11265_v16 = vld [vmem:[#allocation21_spill] sm:$0xff] }
 0x13b   :  { %5377 = vmatprep.subr.bf16.mxu0 %v7062_v34  ;;  %5405 = vmatprep.subr.bf16.mxu1 %v11239_v54  ;;  %v11253_v34 = vld [vmem:[#allocation9_spill] sm:$0xff] }
 0x13e   :  { %5379 = vmatpush1.bf16.msra.mxu0 %v7087_v43  ;;  %5407 = vmatpush3.bf16.msra.mxu1 %v7231_v19  ;;  %v11254_v43 = vld [vmem:[#allocation10_spill] sm:$0xff] }
 0x13f   :  { %5381 = vmatprep.subr.bf16.mxu0 %v7097_v45  ;;  %5408 = vmatprep.subr.bf16.mxu1 %v11239_v54  ;;  %v11255_v45 = vld [vmem:[#allocation11_spill] sm:$0xff]  ;;  %v11266_v19 = vld [vmem:[#allocation22_spill] sm:$0xff] }
 0x142   :  { %5383 = vmatpush1.bf16.msra.mxu0 %v7118_v50  ;;  %5410 = vmatpush3.bf16.msra.mxu1 %v7244_v24  ;;  %v11256_v50 = vld [vmem:[#allocation12_spill] sm:$0xff]  ;;  %v11267_v24 = vld [vmem:[#allocation23_spill] sm:$0xff] }
 0x143   :  { %5385 = vmatprep.subr.bf16.mxu0 %v7122_v51  ;;  %5411 = vmatprep.subr.bf16.mxu1 %v11239_v54  ;;  %v11257_v51 = vld [vmem:[#allocation13_spill] sm:$0xff] }
 0x146   :  { %5387 = vmatpush1.bf16.msra.mxu0 %v7140_v56  ;;  %5413 = vmatpush3.bf16.msra.mxu1 %v7254_v27  ;;  %v11258_v56 = vld [vmem:[#allocation14_spill] sm:$0xff]  ;;  %v11268_v27 = vld [vmem:[#allocation24_spill] sm:$0xff] }
 0x147   :  { %5389 = vmatprep.subr.bf16.mxu0 %v7143_v57  ;;  %5414 = vmatprep.subr.bf16.mxu1 %v11239_v54  ;;  %v11259_v57 = vld [vmem:[#allocation15_spill] sm:$0xff] }
 0x14a   :  { %5391 = vmatpush1.bf16.msra.mxu0 %v7161_v62  ;;  %5416 = vmatpush3.bf16.msra.mxu1 %v7264_v31  ;;  %v11260_v62 = vld [vmem:[#allocation16_spill] sm:$0xff]  ;;  %v11269_v31 = vld [vmem:[#allocation25_spill] sm:$0xff] }
 0x14b   :  { %5393 = vmatprep.subr.bf16.mxu0 %v7164_v63  ;;  %5417 = vmatprep.subr.bf16.mxu1 %v11239_v54  ;;  %v11261_v63 = vld [vmem:[#allocation17_spill] sm:$0xff] }
 0x14e   :  { %5395 = vmatpush1.bf16.msra.mxu0 %v7176_v2  ;;  %5419 = vmatpush3.bf16.msra.mxu1 %v7274_v35  ;;  %v11262_v2 = vld [vmem:[#allocation18_spill] sm:$0xff] }
 0x14f   :  { %5421 = vmatprep.subr.bf16.mxu0 %v7289_v39  ;;  %5485 = vmatprep.subr.bf16.mxu1 %v7300_v44  ;;  %v11270_v35 = vld [vmem:[#allocation26_spill] sm:$0xff]  ;;  %v11271_v39 = vld [vmem:[#allocation27_spill] sm:$0xff]  ;;  %v11272_v44 = vld [vmem:[#allocation28_spill] sm:$0xff] }
 0x151   :  { %972 = vmatmul.mubr.f32.vlgmr.msra.gmra.mrb[2].mxu0 %v7878_v7  ;;  %4912 = vmatmul.mubr.f32.vlgmr.msra.gmra.mrb[14].mxu1 %v7878_v7 }
 0x152   :  { %5423 = vmatpush1.bf16.msra.mxu0 %v7302_v46  ;;  %5487 = vmatpush1.bf16.msra.mxu1 %v7311_v49  ;;  %v11273_v46 = vld [vmem:[#allocation29_spill] sm:$0xff]  ;;  %v11274_v49 = vld [vmem:[#allocation30_spill] sm:$0xff] }
 0x153   :  { %5425 = vmatprep.subr.bf16.mxu0 %v7324_v55  ;;  %5489 = vmatprep.subr.bf16.mxu1 %v7336_v61  ;;  %v11275_v55 = vld [vmem:[#allocation31_spill] sm:$0xff]  ;;  %v11276_v61 = vld [vmem:[#allocation32_spill] sm:$0xff] }
 0x156   :  { %5427 = vmatpush1.bf16.msra.mxu0 %v7338_v0  ;;  %5491 = vmatpush1.bf16.msra.mxu1 %v7347_v5  ;;  %v11277_v0 = vld [vmem:[#allocation33_spill] sm:$0xff]  ;;  %v11278_v5 = vld [vmem:[#allocation34_spill] sm:$0xff] }
 0x157   :  { %5429 = vmatprep.subr.bf16.mxu0 %v7360_v13  ;;  %5493 = vmatprep.subr.bf16.mxu1 %v7372_v22  ;;  %v11279_v13 = vld [vmem:[#allocation35_spill] sm:$0xff]  ;;  %v11280_v22 = vld [vmem:[#allocation36_spill] sm:$0xff] }
 0x15a   :  { %5431 = vmatpush1.bf16.msra.mxu0 %v7374_v25  ;;  %5495 = vmatpush1.bf16.msra.mxu1 %v7383_v29  ;;  %v11281_v25 = vld [vmem:[#allocation37_spill] sm:$0xff]  ;;  %v11282_v29 = vld [vmem:[#allocation38_spill] sm:$0xff] }
 0x15b   :  { %5433 = vmatprep.subr.bf16.mxu0 %v7397_v37  ;;  %5497 = vmatprep.subr.bf16.mxu1 %v7408_v42  ;;  %v11283_v37 = vld [vmem:[#allocation39_spill] sm:$0xff]  ;;  %v11284_v42 = vld [vmem:[#allocation40_spill] sm:$0xff] }
 0x15e   :  { %5435 = vmatpush1.bf16.msra.mxu0 %v7410_v47  ;;  %5499 = vmatpush1.bf16.msra.mxu1 %v7419_v53  ;;  %v11285_v47 = vld [vmem:[#allocation41_spill] sm:$0xff]  ;;  %v11286_v53 = vld [vmem:[#allocation42_spill] sm:$0xff] }
 0x15f   :  { %5437 = vmatprep.subr.bf16.mxu0 %v7433_v60  ;;  %5501 = vmatprep.subr.bf16.mxu1 %v7444_v9  ;;  %v11287_v60 = vld [vmem:[#allocation43_spill] sm:$0xff]  ;;  %v1372_v9 = vld [vmem:[%s11002_s2 + $0x8] sm:$0xff] }
 0x162   :  { %5439 = vmatpush1.bf16.msra.mxu0 %v7446_v12  ;;  %5503 = vmatpush1.bf16.msra.mxu1 %v7455_v21  ;;  %v1375_v12 = vld [vmem:[%s11002_s2 + $0x20] sm:$0xff] }
 0x163   :  { %5441 = vmatprep.subr.bf16.mxu0 %v7469_v33  ;;  %5505 = vmatprep.subr.bf16.mxu1 %v7480_v41  ;;  %v7988_v21 = vpack.c.bf16 %v1375_v12, %v1372_v9  ;;  %v7994_v33 = vld [vmem:[%s11004_s4 + $0x1] ss:$0 sm:$0xff]  ;;  %v1380_v9 = vld [vmem:[%s11002_s2 + $0x48] sm:$0xff]  ;;  %v1382_v12 = vld [vmem:[%s11002_s2 + $0x58] sm:$0xff] }
 0x166   :  { %5443 = vmatpush1.bf16.msra.mxu0 %v7482_v48  ;;  %5507 = vmatpush1.bf16.msra.mxu1 %v7491_v58 }
 0x167   :  { %5445 = vmatprep.subr.bf16.mxu0 %v11248_v14  ;;  %5509 = vmatprep.subr.bf16.mxu1 %v11249_v15 }
 0x16a   :  { %5447 = vmatpush1.bf16.msra.mxu0 %v11250_v20  ;;  %5511 = vmatpush1.bf16.msra.mxu1 %v11251_v23 }
 0x16b   :  { %5449 = vmatprep.subr.bf16.mxu0 %v11252_v30  ;;  %5513 = vmatprep.subr.bf16.mxu1 %v11253_v34 }
 0x16e   :  { %5451 = vmatpush1.bf16.msra.mxu0 %v11254_v43  ;;  %5515 = vmatpush1.bf16.msra.mxu1 %v11255_v45 }
 0x16f   :  { %5453 = vmatprep.subr.bf16.mxu0 %v11256_v50  ;;  %5517 = vmatprep.subr.bf16.mxu1 %v11257_v51 }
 0x172   :  { %5455 = vmatpush1.bf16.msra.mxu0 %v11258_v56  ;;  %5519 = vmatpush1.bf16.msra.mxu1 %v11259_v57 }
 0x173   :  { %5457 = vmatprep.subr.bf16.mxu0 %v11260_v62  ;;  %5521 = vmatprep.subr.bf16.mxu1 %v11261_v63 }
 0x176   :  { %5459 = vmatpush1.bf16.msra.mxu0 %v11262_v2  ;;  %5523 = vmatpush1.bf16.msra.mxu1 %v11263_v6 }
 0x177   :  { %5461 = vmatprep.subr.bf16.mxu0 %v11264_v11  ;;  %5525 = vmatprep.subr.bf16.mxu1 %v11265_v16 }
 0x17a   :  { %5463 = vmatpush1.bf16.msra.mxu0 %v11266_v19  ;;  %5527 = vmatpush1.bf16.msra.mxu1 %v11267_v24 }
 0x17b   :  { %5465 = vmatprep.subr.bf16.mxu0 %v11268_v27  ;;  %5529 = vmatprep.subr.bf16.mxu1 %v11269_v31 }
 0x17e   :  { %5467 = vmatpush1.bf16.msra.mxu0 %v11270_v35  ;;  %5531 = vmatpush1.bf16.msra.mxu1 %v11271_v39  ;;  %v11289_v39 = vld [vmem:[#allocation44_spill] sm:$0xff] }
 0x17f   :  { %5469 = vmatprep.subr.bf16.mxu0 %v11272_v44  ;;  %5533 = vmatprep.subr.bf16.mxu1 %v11273_v46 }
 0x182   :  { %5471 = vmatpush1.bf16.msra.mxu0 %v11274_v49  ;;  %5535 = vmatpush1.bf16.msra.mxu1 %v11275_v55  ;;  %v1371_v49 = vld [vmem:[%s11002_s2] sm:$0xff] }
 0x183   :  { %5473 = vmatprep.subr.bf16.mxu0 %v11276_v61  ;;  %5537 = vmatprep.subr.bf16.mxu1 %v11277_v0  ;;  %v1374_v61 = vld [vmem:[%s11002_s2 + $0x18] sm:$0xff]  ;;  %v1376_v0 = vld [vmem:[%s11002_s2 + $0x28] sm:$0xff] }
 0x186   :  { %5475 = vmatpush1.bf16.msra.mxu0 %v11278_v5  ;;  %5539 = vmatpush1.bf16.msra.mxu1 %v11279_v13  ;;  %v1378_v13 = vld [vmem:[%s11002_s2 + $0x38] sm:$0xff] }
 0x187   :  { %5477 = vmatprep.subr.bf16.mxu0 %v11280_v22  ;;  %5541 = vmatprep.subr.bf16.mxu1 %v11281_v25  ;;  %v1381_v22 = vld [vmem:[%s11002_s2 + $0x50] sm:$0xff] }
 0x18a   :  { %5479 = vmatpush1.bf16.msra.mxu0 %v11282_v29  ;;  %5543 = vmatpush1.bf16.msra.mxu1 %v11283_v37  ;;  %v8040_v37 = vpack.c.bf16 %v1374_v61, %v1371_v49  ;;  %v1407_v61 = vld [vmem:[%s11002_s2 + $0x120] sm:$0xff] }
 0x18b   :  { %5481 = vmatprep.subr.bf16.mxu0 %v11284_v42  ;;  %5545 = vmatprep.subr.bf16.mxu1 %v11285_v47  ;;  %v1377_v47 = vld [vmem:[%s11002_s2 + $0x30] sm:$0xff] }
 0x18e   :  { %5483 = vmatpush1.bf16.msra.mxu0 %v11286_v53  ;;  %5547 = vmatpush1.bf16.msra.mxu1 %v11287_v60  ;;  %v8049_v60 = vpack.c.bf16 %v1381_v22, %v1378_v13  ;;  %v1412_v13 = vld [vmem:[%s11002_s2 + $0x148] sm:$0xff]  ;;  %v1414_v22 = vld [vmem:[%s11002_s2 + $0x158] sm:$0xff] }
 0x18f   :  { %5580 = vmatprep.subr.bf16.mxu1 %v11239_v54  ;;  %5549 = vmatprep.subr.bf16.mxu0 %v7988_v21 }
 0x204   :  { %v753_v41 = vpop.f32.mrb[16].mxu0  ;;  %v824_v48 = vpop.f32.mrb[12].mxu1 }
 0x205   :  { %v829_v58 = vadd.f32 %v7994_v33, %v753_v41  ;;  %v755_v3 = vpop.f32.mrb[17].mxu0  ;;  %v826_v18 = vpop.f32.mrb[13].mxu1  ;;  %v843_v15 = vadd.f32 %v8011_v36, %v824_v48  ;;  %v1384_v41 = vld [vmem:[%s11002_s2 + $0x68] sm:$0xff]  ;;  %v1387_v48 = vld [vmem:[%s11002_s2 + $0x80] sm:$0xff] }
 0x206   :  { %v836_v17 = vadd.f32 %v8000_v4, %v755_v3  ;;  %v844_v26 = vadd.f32 %v8006_v28, %v826_v18  ;;  %v1383_v18 = vld [vmem:[%s11002_s2 + $0x60] sm:$0xff] }
 0x207   :  { %v4627_v52 = vmul.f32 -1.442695, %v829_v58  ;;  %v8070_v58 = vpack.c.bf16 %v1380_v9, %v1377_v47  ;;  %v1413_v9 = vld [vmem:[%s11002_s2 + $0x150] sm:$0xff] }
 0x208   :  { %v4628_v10 = vmul.f32 -1.442695, %v836_v17  ;;  %v1386_v17 = vld [vmem:[%s11002_s2 + $0x78] sm:$0xff] }
 0x209   :  { %6714 = vpow2.f32 %v4627_v52  ;;  %v8079_v52 = vpack.c.bf16 %v1387_v48, %v1384_v41  ;;  %v1415_v41 = vld [vmem:[%s11002_s2 + $0x160] sm:$0xff]  ;;  %v1418_v48 = vld [vmem:[%s11002_s2 + $0x178] sm:$0xff] }
 0x20a   :  { %6716 = vpow2.f32 %v4628_v10  ;;  %v1385_v10 = vld [vmem:[%s11002_s2 + $0x70] sm:$0xff] }
 0x213   :  { %v6715_v40 = vpop.eup %6714 }
 0x214   :  { %v833_v1 = vadd.f32 1.0, %v6715_v40  ;;  %v6717_v32 = vpop.eup %6716  ;;  %v1388_v40 = vld [vmem:[%s11002_s2 + $0x88] sm:$0xff] }
 0x215   :  { %v840_v59 = vadd.f32 1.0, %v6717_v32  ;;  %v1393_v32 = vld [vmem:[%s11002_s2 + $0xb0] sm:$0xff] }
 0x216   :  { %6718 = vrcp.f32 %v833_v1  ;;  %v1390_v1 = vld [vmem:[%s11002_s2 + $0x98] sm:$0xff] }
 0x217   :  { %6720 = vrcp.f32 %v840_v59  ;;  %v8101_v59 = vpack.c.bf16 %v1386_v17, %v1383_v18  ;;  %v8237_v17 = vpack.c.bf16 %v1418_v48, %v1415_v41  ;;  %v1602_v41 = vld [vmem:[%s11003_s3 + $0xa0] sm:$0xff] }
 0x220   :  { %v6719_v14 = vpop.eup %6718 }
 0x221   :  { %v845_v20 = vmul.f32 %v6719_v14, %v844_v26  ;;  %v6721_v56 = vpop.eup %6720  ;;  %v8103_v26 = vpack.c.bf16 %v1388_v40, %v1385_v10  ;;  %v1389_v14 = vld [vmem:[%s11002_s2 + $0x90] sm:$0xff]  ;;  %v1583_v10 = vld [vmem:[%s11003_s3 + $0x8] sm:$0xff] }
 0x222   :  { %v848_v57 = vsub.f32 1.0, %v6721_v56  ;;  %v850_v2 = vmul.f32 0.0, %v6721_v56  ;;  %v1587_v40 = vld [vmem:[%s11003_s3 + $0x28] sm:$0xff] }
 0x223   :  { %v846_v23 = vadd.f32 %v845_v20, %v843_v15  ;;  %v8110_v15 = vpack.c.bf16 %v1393_v32, %v1390_v1  ;;  %v1392_v20 = vld [vmem:[%s11002_s2 + $0xa8] sm:$0xff]  ;;  %v1585_v1 = vld [vmem:[%s11003_s3 + $0x18] sm:$0xff]  ;;  %v8254_v32 = vpack.c.bf16 %v1587_v40, %v1583_v10  ;;  %v1600_v40 = vld [vmem:[%s11003_s3 + $0x90] sm:$0xff] }
 0x224   :  { %v973_v30 = vpop.f32.mrb[2].mxu0  ;;  %v1044_v34 = vpop.f32.mrb[14].mxu1 }
 0x225   :  { %6722 = vtanh.f32 %v846_v23  ;;  %v4629_v43 = vmul.f32 -1.442695, %v973_v30  ;;  %v975_v45 = vpop.f32.mrb[3].mxu0  ;;  %v4913_v50 = vpop.f32.mrb[15].mxu1  ;;  %v1062_v27 = vadd.f32 %v7875_v38, %v1044_v34  ;;  %v1373_v38 = vld [vmem:[%s11002_s2 + $0x10] sm:$0xff]  ;;  %v1391_v23 = vld [vmem:[%s11002_s2 + $0xa0] sm:$0xff] }
 0x226   :  { %v4630_v51 = vmul.f32 -1.442695, %v975_v45  ;;  %v8042_v42 = vpack.c.bf16 %v1376_v0, %v1373_v38  ;;  %v1394_v30 = vld [vmem:[%s11002_s2 + $0xb8] sm:$0xff]  ;;  %v1396_v34 = vld [vmem:[%s11002_s2 + $0xc8] sm:$0xff]  ;;  %v8129_v45 = vpack.c.bf16 %v1392_v20, %v1389_v14  ;;  %v1582_v20 = vld [vmem:[%s11003_s3] sm:$0xff] }
 0x227   :  { %6724 = vpow2.f32 %v4629_v43  ;;  %v1399_v43 = vld [vmem:[%s11002_s2 + $0xe0] sm:$0xff]  ;;  %v8131_v50 = vpack.c.bf16 %v1394_v30, %v1391_v23  ;;  %v1410_v0 = vld [vmem:[%s11002_s2 + $0x138] sm:$0xff] }
 0x228   :  { %6726 = vpow2.f32 %v4630_v51  ;;  %v1395_v51 = vld [vmem:[%s11002_s2 + $0xc0] sm:$0xff]  ;;  %v8138_v56 = vpack.c.bf16 %v1399_v43, %v1396_v34  ;;  %v1589_v14 = vld [vmem:[%s11003_s3 + $0x38] sm:$0xff]  ;;  %v1584_v43 = vld [vmem:[%s11003_s3 + $0x10] sm:$0xff] }
 0x229   :  { %v1586_v23 = vld [vmem:[%s11003_s3 + $0x20] sm:$0xff]  ;;  %v8265_v30 = vpack.c.bf16 %v1589_v14, %v1585_v1  ;;  %v1604_v1 = vld [vmem:[%s11003_s3 + $0xb0] sm:$0xff] }
 0x22a   :  { %v8267_v34 = vpack.c.bf16 %v1586_v23, %v1582_v20  ;;  %v8348_v14 = vpack.c.bf16 %v1604_v1, %v1600_v40  ;;  %v1607_v20 = vld [vmem:[%s11003_s3 + $0xc8] sm:$0xff]  ;;  %v1618_v40 = vld [vmem:[%s11003_s3 + $0x120] sm:$0xff] }
 0x22b   :  { %v1611_v23 = vld [vmem:[%s11003_s3 + $0xe8] sm:$0xff] }
 0x22f   :  { %v6723_v62 = vpop.eup %6722 }
 0x230   :  { %v849_v63 = vmul.f32 %v6723_v62, %v848_v57  ;;  %v1398_v57 = vld [vmem:[%s11002_s2 + $0xd8] sm:$0xff]  ;;  %v1397_v62 = vld [vmem:[%s11002_s2 + $0xd0] sm:$0xff] }
 0x231   :  { %v6725_v6 = vpop.eup %6724 }
 0x232   :  { %v1052_v11 = vadd.f32 1.0, %v6725_v6  ;;  %v8015_v16 = vadd.f32 %v850_v2, %v849_v63  ;;  %v6727_v19 = vpop.eup %6726  ;;  %v1400_v63 = vld [vmem:[%s11002_s2 + $0xe8] sm:$0xff]  ;;  %v1402_v2 = vld [vmem:[%s11002_s2 + $0xf8] sm:$0xff]  ;;  %v1405_v6 = vld [vmem:[%s11002_s2 + $0x110] sm:$0xff] }
 0x233   :  { %v1059_v24 = vadd.f32 1.0, %v6727_v19  ;;  %v8159_v19 = vpack.c.bf16 %v1400_v63, %v1397_v62  ;;  %v1591_v62 = vld [vmem:[%s11003_s3 + $0x48] sm:$0xff] }
 0x234   :  { %11288 = vst [vmem:[#allocation4_spill] sm:$0xff] %v8015_v16  ;;  %6728 = vrcp.f32 %v1052_v11  ;;  %1262 = vmatprep.mubr.f32.mxu0 %v8015_v16  ;;  %1333 = vmatprep.mubr.f32.mxu1 %v8015_v16  ;;  %v8157_v11 = vpack.c.bf16 %v1398_v57, %v1395_v51  ;;  %v1588_v51 = vld [vmem:[%s11003_s3 + $0x30] sm:$0xff]  ;;  %v1595_v63 = vld [vmem:[%s11003_s3 + $0x68] sm:$0xff] }
 0x235   :  { %6730 = vrcp.f32 %v1059_v24  ;;  %v1401_v24 = vld [vmem:[%s11002_s2 + $0xf0] sm:$0xff]  ;;  %v8276_v57 = vpack.c.bf16 %v1588_v51, %v1584_v43  ;;  %v1609_v43 = vld [vmem:[%s11003_s3 + $0xd8] sm:$0xff]  ;;  %v8362_v51 = vpack.c.bf16 %v1611_v23, %v1607_v20 }
 0x236   :  { %v1616_v23 = vld [vmem:[%s11003_s3 + $0x110] sm:$0xff] }
 0x23e   :  { %v6729_v31 = vpop.eup %6728 }
 0x23f   :  { %v1063_v35 = vmul.f32 %v6729_v31, %v1062_v27  ;;  %v6731_v46 = vpop.eup %6730  ;;  %v8166_v27 = vpack.c.bf16 %v1405_v6, %v1402_v2  ;;  %v1404_v31 = vld [vmem:[%s11002_s2 + $0x108] sm:$0xff]  ;;  %v1593_v2 = vld [vmem:[%s11003_s3 + $0x58] sm:$0xff]  ;;  %v8290_v6 = vpack.c.bf16 %v1595_v63, %v1591_v62  ;;  %v1606_v63 = vld [vmem:[%s11003_s3 + $0xc0] sm:$0xff] }
 0x240   :  { %v1066_v55 = vsub.f32 1.0, %v6731_v46  ;;  %v1068_v29 = vmul.f32 %v6731_v46, %v7878_v7  ;;  %v1379_v7 = vld [vmem:[%s11002_s2 + $0x40] sm:$0xff]  ;;  %v8185_v49 = vpack.c.bf16 %v1404_v31, %v1401_v24  ;;  %v1597_v24 = vld [vmem:[%s11003_s3 + $0x78] sm:$0xff] }
 0x241   :  { %v1064_v44 = vadd.f32 %v11289_v39, %v1063_v35  ;;  %v8072_v3 = vpack.c.bf16 %v1382_v12, %v1379_v7  ;;  %v1403_v35 = vld [vmem:[%s11002_s2 + $0x100] sm:$0xff]  ;;  %v1406_v39 = vld [vmem:[%s11002_s2 + $0x118] sm:$0xff]  ;;  %v1416_v12 = vld [vmem:[%s11002_s2 + $0x168] sm:$0xff] }
 0x242   :  { %v1411_v46 = vld [vmem:[%s11002_s2 + $0x140] sm:$0xff]  ;;  %v8235_v18 = vpack.c.bf16 %v1416_v12, %v1413_v9  ;;  %v1605_v9 = vld [vmem:[%s11003_s3 + $0xb8] sm:$0xff] }
 0x243   :  { %6732 = vtanh.f32 %v1064_v44  ;;  %v1408_v44 = vld [vmem:[%s11002_s2 + $0x128] sm:$0xff]  ;;  %v1590_v31 = vld [vmem:[%s11003_s3 + $0x40] sm:$0xff]  ;;  %v1613_v62 = vld [vmem:[%s11003_s3 + $0xf8] sm:$0xff] }
 0x244   :  { %v8194_v38 = vpack.c.bf16 %v1411_v46, %v1408_v44  ;;  %v1592_v46 = vld [vmem:[%s11003_s3 + $0x50] sm:$0xff]  ;;  %v1598_v12 = vld [vmem:[%s11003_s3 + $0x80] sm:$0xff] }
 0x245   :  { %v8339_v10 = vpack.c.bf16 %v1602_v41, %v1598_v12  ;;  %v1621_v12 = vld [vmem:[%s11003_s3 + $0x138] sm:$0xff]  ;;  %v1614_v41 = vld [vmem:[%s11003_s3 + $0x100] sm:$0xff] }
 0x246   :  { %v8411_v20 = vpack.c.bf16 %v1618_v40, %v1614_v41  ;;  %v1624_v40 = vld [vmem:[%s11003_s3 + $0x150] sm:$0xff] }
 0x248   :  { %11291 = vst [vmem:[#allocation6_spill] sm:$0xff] %v8411_v20 }
 0x24d   :  { %v6733_v5 = vpop.eup %6732 }
 0x24e   :  { %v1067_v25 = vmul.f32 %v6733_v5, %v1066_v55  ;;  %v8187_v55 = vpack.c.bf16 %v1406_v39, %v1403_v35  ;;  %v1409_v5 = vld [vmem:[%s11002_s2 + $0x130] sm:$0xff]  ;;  %v1594_v35 = vld [vmem:[%s11003_s3 + $0x60] sm:$0xff]  ;;  %v8301_v39 = vpack.c.bf16 %v1597_v24, %v1593_v2  ;;  %v8373_v24 = vpack.c.bf16 %v1613_v62, %v1609_v43 }
 0x24f   :  { %v8215_v47 = vpack.c.bf16 %v1412_v13, %v1409_v5  ;;  %v8303_v44 = vpack.c.bf16 %v1594_v35, %v1590_v31  ;;  %v1599_v5 = vld [vmem:[%s11003_s3 + $0x88] sm:$0xff]  ;;  %v1610_v2 = vld [vmem:[%s11003_s3 + $0xe0] sm:$0xff]  ;;  %v1608_v35 = vld [vmem:[%s11003_s3 + $0xd0] sm:$0xff] }
 0x250   :  { %v8047_v53 = vadd.f32 %v1068_v29, %v1067_v25  ;;  %v1417_v25 = vld [vmem:[%s11002_s2 + $0x170] sm:$0xff]  ;;  %v8213_v29 = vpack.c.bf16 %v1410_v0, %v1407_v61  ;;  %v1603_v13 = vld [vmem:[%s11003_s3 + $0xa8] sm:$0xff]  ;;  %v8375_v31 = vpack.c.bf16 %v1610_v2, %v1606_v63 }
 0x251   :  { %v8222_v7 = vpack.c.bf16 %v1417_v25, %v1414_v22  ;;  %v1596_v61 = vld [vmem:[%s11003_s3 + $0x70] sm:$0xff]  ;;  %v1601_v22 = vld [vmem:[%s11003_s3 + $0x98] sm:$0xff]  ;;  %v8326_v25 = vpack.c.bf16 %v1603_v13, %v1599_v5  ;;  %v1615_v5 = vld [vmem:[%s11003_s3 + $0x108] sm:$0xff] }
 0x252   :  { %1263 = vmatmul.mubr.f32.vlgmr.msra.gmra.mrb[18].mxu0 %v8047_v53  ;;  %1334 = vmatmul.mubr.f32.vlgmr.msra.gmra.mrb[16].mxu1 %v8047_v53  ;;  %v8312_v0 = vpack.c.bf16 %v1596_v61, %v1592_v46  ;;  %v8337_v48 = vpack.c.bf16 %v1605_v9, %v1601_v22  ;;  %v1612_v46 = vld [vmem:[%s11003_s3 + $0xf0] sm:$0xff]  ;;  %v1619_v13 = vld [vmem:[%s11003_s3 + $0x128] sm:$0xff]  ;;  %v1617_v22 = vld [vmem:[%s11003_s3 + $0x118] sm:$0xff] }
 0x253   :  { %5551 = vmatpush1.bf16.msra.mxu0 %v8040_v37  ;;  %5582 = vmatpush3.bf16.msra.mxu1 %v8042_v42  ;;  %v8384_v61 = vpack.c.bf16 %v1612_v46, %v1608_v35  ;;  %v8398_v9 = vpack.c.bf16 %v1619_v13, %v1615_v5  ;;  %v8409_v1 = vpack.c.bf16 %v1621_v12, %v1617_v22  ;;  %v1620_v43 = vld [vmem:[%s11003_s3 + $0x130] sm:$0xff]  ;;  %v1623_v63 = vld [vmem:[%s11003_s3 + $0x148] sm:$0xff]  ;;  %v1625_v35 = vld [vmem:[%s11003_s3 + $0x158] sm:$0xff] }
 0x254   :  { %5553 = vmatprep.subr.bf16.mxu0 %v8049_v60  ;;  %5583 = vmatprep.subr.bf16.mxu1 %v11239_v54  ;;  %v8420_v62 = vpack.c.bf16 %v1620_v43, %v1616_v23  ;;  %v1627_v2 = vld [vmem:[%s11003_s3 + $0x168] sm:$0xff]  ;;  %v1629_v5 = vld [vmem:[%s11003_s3 + $0x178] sm:$0xff]  ;;  %v1622_v13 = vld [vmem:[%s11003_s3 + $0x140] sm:$0xff] }
 0x255   :  { %1483 = vmatprep.mubr.f32.mxu0 %v11247_v8  ;;  %4946 = vmatprep.mubr.msk.f32.mxu1 %vm6898_vm4, %v11247_v8  ;;  %11290 = vst [vmem:[#allocation5_spill] sm:$0xff] %v8409_v1  ;;  %v8434_v46 = vpack.c.bf16 %v1627_v2, %v1623_v63  ;;  %v1626_v22 = vld [vmem:[%s11003_s3 + $0x160] sm:$0xff]  ;;  %v8445_v12 = vpack.c.bf16 %v1629_v5, %v1625_v35  ;;  %v1628_v23 = vld [vmem:[%s11003_s3 + $0x170] sm:$0xff]  ;;  %v1631_v63 = vld [vmem:[%s11003_s3 + $0x188] sm:$0xff] }
 0x256   :  { %11292 = vst [vmem:[#allocation7_spill] sm:$0xff] %v8420_v62  ;;  %v8447_v41 = vpack.c.bf16 %v1626_v22, %v1622_v13  ;;  %v8456_v43 = vpack.c.bf16 %v1628_v23, %v1624_v40  ;;  %v1635_v2 = vld [vmem:[%s11003_s3 + $0x1a8] sm:$0xff]  ;;  %v1633_v35 = vld [vmem:[%s11003_s3 + $0x198] sm:$0xff]  ;;  %v1630_v22 = vld [vmem:[%s11003_s3 + $0x180] sm:$0xff] }
 0x257   :  { %5555 = vmatpush1.bf16.msra.mxu0 %v8070_v58  ;;  %5585 = vmatpush3.bf16.msra.mxu1 %v8072_v3  ;;  %11293 = vst [vmem:[#allocation8_spill] sm:$0xff] %v8434_v46  ;;  %11294 = vst [vmem:[#allocation9_spill] sm:$0xff] %v8445_v12  ;;  %v8470_v5 = vpack.c.bf16 %v1635_v2, %v1631_v63  ;;  %v1637_v13 = vld [vmem:[%s11003_s3 + $0x1b8] sm:$0xff]  ;;  %v1634_v40 = vld [vmem:[%s11003_s3 + $0x1a0] sm:$0xff] }
 0x258   :  { %5557 = vmatprep.subr.bf16.mxu0 %v8079_v52  ;;  %5586 = vmatprep.subr.bf16.mxu1 %v11239_v54  ;;  %11295 = vst [vmem:[#allocation10_spill] sm:$0xff] %v8447_v41  ;;  %11296 = vst [vmem:[#allocation11_spill] sm:$0xff] %v8456_v43  ;;  %v8481_v23 = vpack.c.bf16 %v1637_v13, %v1633_v35  ;;  %v1632_v63 = vld [vmem:[%s11003_s3 + $0x190] sm:$0xff]  ;;  %v1639_v35 = vld [vmem:[%s11003_s3 + $0x1c8] sm:$0xff] }
 0x259   :  { %11297 = vst [vmem:[#allocation12_spill] sm:$0xff] %v8470_v5  ;;  %v1636_v2 = vld [vmem:[%s11003_s3 + $0x1b0] sm:$0xff]  ;;  %v1643_v13 = vld [vmem:[%s11003_s3 + $0x1e8] sm:$0xff] }
 0x25a   :  { %11298 = vst [vmem:[#allocation13_spill] sm:$0xff] %v8481_v23 }
 0x25b   :  { %5559 = vmatpush1.bf16.msra.mxu0 %v8101_v59  ;;  %5588 = vmatpush3.bf16.msra.mxu1 %v8103_v26 }
 0x25c   :  { %5561 = vmatprep.subr.bf16.mxu0 %v8110_v15  ;;  %5589 = vmatprep.subr.bf16.mxu1 %v11239_v54 }
 0x25f   :  { %5563 = vmatpush1.bf16.msra.mxu0 %v8129_v45  ;;  %5591 = vmatpush3.bf16.msra.mxu1 %v8131_v50 }
 0x260   :  { %5565 = vmatprep.subr.bf16.mxu0 %v8138_v56  ;;  %5592 = vmatprep.subr.bf16.mxu1 %v11239_v54 }
 0x263   :  { %5567 = vmatpush1.bf16.msra.mxu0 %v8157_v11  ;;  %5594 = vmatpush3.bf16.msra.mxu1 %v8159_v19 }
 0x264   :  { %5569 = vmatprep.subr.bf16.mxu0 %v8166_v27  ;;  %5595 = vmatprep.subr.bf16.mxu1 %v11239_v54 }
 0x267   :  { %5571 = vmatpush1.bf16.msra.mxu0 %v8185_v49  ;;  %5597 = vmatpush3.bf16.msra.mxu1 %v8187_v55 }
 0x268   :  { %5573 = vmatprep.subr.bf16.mxu0 %v8194_v38  ;;  %5598 = vmatprep.subr.bf16.mxu1 %v11239_v54 }
 0x26b   :  { %5575 = vmatpush1.bf16.msra.mxu0 %v8213_v29  ;;  %5600 = vmatpush3.bf16.msra.mxu1 %v8215_v47 }
 0x26c   :  { %5577 = vmatprep.subr.bf16.mxu0 %v8222_v7  ;;  %5601 = vmatprep.subr.bf16.mxu1 %v11239_v54 }
 0x26f   :  { %5579 = vmatpush1.bf16.msra.mxu0 %v8235_v18  ;;  %5603 = vmatpush3.bf16.msra.mxu1 %v8237_v17 }
 0x270   :  { %5605 = vmatprep.subr.bf16.mxu0 %v8254_v32  ;;  %5669 = vmatprep.subr.bf16.mxu1 %v8265_v30 }
 0x272   :  { %1484 = vmatmul.mubr.f32.vlgmr.msra.gmra.mrb[4].mxu0 %v8047_v53  ;;  %4947 = vmatmul.mubr.f32.vlgmr.msra.gmra.mrb[18].mxu1 %v8047_v53 }
 0x273   :  { %5607 = vmatpush1.bf16.msra.mxu0 %v8267_v34  ;;  %5671 = vmatpush1.bf16.msra.mxu1 %v8276_v57 }
 0x274   :  { %5609 = vmatprep.subr.bf16.mxu0 %v8290_v6  ;;  %5673 = vmatprep.subr.bf16.mxu1 %v8301_v39 }
 0x277   :  { %5611 = vmatpush1.bf16.msra.mxu0 %v8303_v44  ;;  %5675 = vmatpush1.bf16.msra.mxu1 %v8312_v0 }
 0x278   :  { %5613 = vmatprep.subr.bf16.mxu0 %v8326_v25  ;;  %5677 = vmatprep.subr.bf16.mxu1 %v8337_v48 }
 0x27b   :  { %5615 = vmatpush1.bf16.msra.mxu0 %v8339_v10  ;;  %5679 = vmatpush1.bf16.msra.mxu1 %v8348_v14 }
 0x27c   :  { %5617 = vmatprep.subr.bf16.mxu0 %v8362_v51  ;;  %5681 = vmatprep.subr.bf16.mxu1 %v8373_v24 }
 0x27f   :  { %5619 = vmatpush1.bf16.msra.mxu0 %v8375_v31  ;;  %5683 = vmatpush1.bf16.msra.mxu1 %v8384_v61 }
 0x280   :  { %5621 = vmatprep.subr.bf16.mxu0 %v8398_v9  ;;  %5685 = vmatprep.subr.bf16.mxu1 %v8409_v1 }
 0x283   :  { %5623 = vmatpush1.bf16.msra.mxu0 %v8411_v20  ;;  %5687 = vmatpush1.bf16.msra.mxu1 %v8420_v62 }
 0x284   :  { %5625 = vmatprep.subr.bf16.mxu0 %v8434_v46  ;;  %5689 = vmatprep.subr.bf16.mxu1 %v8445_v12  ;;  %v1696_v46 = vld [vmem:[%s11003_s3 + $0x390] sm:$0xff] }
 0x287   :  { %5627 = vmatpush1.bf16.msra.mxu0 %v8447_v41  ;;  %5691 = vmatpush1.bf16.msra.mxu1 %v8456_v43  ;;  %v8483_v41 = vpack.c.bf16 %v1634_v40, %v1630_v22  ;;  %v8492_v43 = vpack.c.bf16 %v1636_v2, %v1632_v63  ;;  %v1641_v22 = vld [vmem:[%s11003_s3 + $0x1d8] sm:$0xff]  ;;  %v8506_v40 = vpack.c.bf16 %v1643_v13, %v1639_v35  ;;  %v1638_v2 = vld [vmem:[%s11003_s3 + $0x1c0] sm:$0xff]  ;;  %v1640_v35 = vld [vmem:[%s11003_s3 + $0x1d0] sm:$0xff] }
 0x288   :  { %5629 = vmatprep.subr.bf16.mxu0 %v8470_v5  ;;  %5693 = vmatprep.subr.bf16.mxu1 %v8481_v23  ;;  %v1645_v63 = vld [vmem:[%s11003_s3 + $0x1f8] sm:$0xff]  ;;  %v1644_v13 = vld [vmem:[%s11003_s3 + $0x1f0] sm:$0xff] }
 0x289   :  { %11299 = vst [vmem:[#allocation14_spill] sm:$0xff] %v8483_v41  ;;  %11300 = vst [vmem:[#allocation15_spill] sm:$0xff] %v8492_v43  ;;  %v8517_v23 = vpack.c.bf16 %v1645_v63, %v1641_v22  ;;  %v1651_v22 = vld [vmem:[%s11003_s3 + $0x228] sm:$0xff]  ;;  %v1649_v63 = vld [vmem:[%s11003_s3 + $0x218] sm:$0xff] }
 0x28a   :  { %11301 = vst [vmem:[#allocation16_spill] sm:$0xff] %v8506_v40 }
 0x28b   :  { %5631 = vmatpush1.bf16.msra.mxu0 %v8483_v41  ;;  %5695 = vmatpush1.bf16.msra.mxu1 %v8492_v43  ;;  %v1642_v41 = vld [vmem:[%s11003_s3 + $0x1e0] sm:$0xff]  ;;  %11302 = vst [vmem:[#allocation17_spill] sm:$0xff] %v8517_v23  ;;  %v8528_v43 = vpack.c.bf16 %v1644_v13, %v1640_v35  ;;  %v1653_v35 = vld [vmem:[%s11003_s3 + $0x238] sm:$0xff] }
 0x28c   :  { %v8519_v5 = vpack.c.bf16 %v1642_v41, %v1638_v2  ;;  %5633 = vmatprep.subr.bf16.mxu0 %v8506_v40  ;;  %5697 = vmatprep.subr.bf16.mxu1 %v8517_v23  ;;  %v1647_v41 = vld [vmem:[%s11003_s3 + $0x208] sm:$0xff]  ;;  %v1646_v13 = vld [vmem:[%s11003_s3 + $0x200] sm:$0xff]  ;;  %v8553_v23 = vpack.c.bf16 %v1653_v35, %v1649_v63  ;;  %v1657_v35 = vld [vmem:[%s11003_s3 + $0x258] sm:$0xff] }
 0x28d   :  { %11304 = vst [vmem:[#allocation19_spill] sm:$0xff] %v8528_v43  ;;  %v8542_v2 = vpack.c.bf16 %v1651_v22, %v1647_v41  ;;  %v1648_v41 = vld [vmem:[%s11003_s3 + $0x210] sm:$0xff]  ;;  %v1659_v63 = vld [vmem:[%s11003_s3 + $0x268] sm:$0xff] }
 0x28e   :  { %11303 = vst [vmem:[#allocation18_spill] sm:$0xff] %v8519_v5  ;;  %11306 = vst [vmem:[#allocation21_spill] sm:$0xff] %v8553_v23  ;;  %v1652_v22 = vld [vmem:[%s11003_s3 + $0x230] sm:$0xff] }
 0x28f   :  { %5635 = vmatpush1.bf16.msra.mxu0 %v8519_v5  ;;  %5699 = vmatpush1.bf16.msra.mxu1 %v8528_v43  ;;  %11305 = vst [vmem:[#allocation20_spill] sm:$0xff] %v8542_v2  ;;  %v1650_v5 = vld [vmem:[%s11003_s3 + $0x220] sm:$0xff]  ;;  %v8564_v43 = vpack.c.bf16 %v1652_v22, %v1648_v41  ;;  %v1661_v41 = vld [vmem:[%s11003_s3 + $0x278] sm:$0xff] }
 0x290   :  { %v8555_v40 = vpack.c.bf16 %v1650_v5, %v1646_v13  ;;  %5637 = vmatprep.subr.bf16.mxu0 %v8542_v2  ;;  %5701 = vmatprep.subr.bf16.mxu1 %v8553_v23  ;;  %v1655_v5 = vld [vmem:[%s11003_s3 + $0x248] sm:$0xff]  ;;  %v1654_v22 = vld [vmem:[%s11003_s3 + $0x240] sm:$0xff]  ;;  %v8589_v23 = vpack.c.bf16 %v1661_v41, %v1657_v35  ;;  %v1665_v41 = vld [vmem:[%s11003_s3 + $0x298] sm:$0xff] }
 0x291   :  { %11308 = vst [vmem:[#allocation23_spill] sm:$0xff] %v8564_v43  ;;  %v8578_v13 = vpack.c.bf16 %v1659_v63, %v1655_v5  ;;  %v1656_v5 = vld [vmem:[%s11003_s3 + $0x250] sm:$0xff]  ;;  %v1667_v35 = vld [vmem:[%s11003_s3 + $0x2a8] sm:$0xff] }
 0x292   :  { %11307 = vst [vmem:[#allocation22_spill] sm:$0xff] %v8555_v40  ;;  %11310 = vst [vmem:[#allocation25_spill] sm:$0xff] %v8589_v23  ;;  %v1660_v63 = vld [vmem:[%s11003_s3 + $0x270] sm:$0xff] }
 0x293   :  { %5639 = vmatpush1.bf16.msra.mxu0 %v8555_v40  ;;  %5703 = vmatpush1.bf16.msra.mxu1 %v8564_v43  ;;  %11309 = vst [vmem:[#allocation24_spill] sm:$0xff] %v8578_v13  ;;  %v1658_v40 = vld [vmem:[%s11003_s3 + $0x260] sm:$0xff]  ;;  %v8600_v43 = vpack.c.bf16 %v1660_v63, %v1656_v5  ;;  %v1669_v5 = vld [vmem:[%s11003_s3 + $0x2b8] sm:$0xff] }
 0x294   :  { %v8591_v2 = vpack.c.bf16 %v1658_v40, %v1654_v22  ;;  %5641 = vmatprep.subr.bf16.mxu0 %v8578_v13  ;;  %5705 = vmatprep.subr.bf16.mxu1 %v8589_v23  ;;  %v1663_v40 = vld [vmem:[%s11003_s3 + $0x288] sm:$0xff]  ;;  %v1662_v63 = vld [vmem:[%s11003_s3 + $0x280] sm:$0xff]  ;;  %v8625_v23 = vpack.c.bf16 %v1669_v5, %v1665_v41  ;;  %v1673_v5 = vld [vmem:[%s11003_s3 + $0x2d8] sm:$0xff] }
 0x295   :  { %11312 = vst [vmem:[#allocation27_spill] sm:$0xff] %v8600_v43  ;;  %v8614_v22 = vpack.c.bf16 %v1667_v35, %v1663_v40  ;;  %v1664_v40 = vld [vmem:[%s11003_s3 + $0x290] sm:$0xff]  ;;  %v1675_v41 = vld [vmem:[%s11003_s3 + $0x2e8] sm:$0xff] }
 0x296   :  { %11311 = vst [vmem:[#allocation26_spill] sm:$0xff] %v8591_v2  ;;  %11314 = vst [vmem:[#allocation29_spill] sm:$0xff] %v8625_v23  ;;  %v1668_v35 = vld [vmem:[%s11003_s3 + $0x2b0] sm:$0xff] }
 0x297   :  { %5643 = vmatpush1.bf16.msra.mxu0 %v8591_v2  ;;  %5707 = vmatpush1.bf16.msra.mxu1 %v8600_v43  ;;  %11313 = vst [vmem:[#allocation28_spill] sm:$0xff] %v8614_v22  ;;  %v1666_v2 = vld [vmem:[%s11003_s3 + $0x2a0] sm:$0xff]  ;;  %v8636_v43 = vpack.c.bf16 %v1668_v35, %v1664_v40  ;;  %v1677_v40 = vld [vmem:[%s11003_s3 + $0x2f8] sm:$0xff] }
 0x298   :  { %v8627_v13 = vpack.c.bf16 %v1666_v2, %v1662_v63  ;;  %5645 = vmatprep.subr.bf16.mxu0 %v8614_v22  ;;  %5709 = vmatprep.subr.bf16.mxu1 %v8625_v23  ;;  %v1671_v2 = vld [vmem:[%s11003_s3 + $0x2c8] sm:$0xff]  ;;  %v1670_v35 = vld [vmem:[%s11003_s3 + $0x2c0] sm:$0xff]  ;;  %v8661_v23 = vpack.c.bf16 %v1677_v40, %v1673_v5  ;;  %v1681_v40 = vld [vmem:[%s11003_s3 + $0x318] sm:$0xff] }
 0x299   :  { %11316 = vst [vmem:[#allocation31_spill] sm:$0xff] %v8636_v43  ;;  %v8650_v63 = vpack.c.bf16 %v1675_v41, %v1671_v2  ;;  %v1672_v2 = vld [vmem:[%s11003_s3 + $0x2d0] sm:$0xff]  ;;  %v1683_v5 = vld [vmem:[%s11003_s3 + $0x328] sm:$0xff] }
 0x29a   :  { %11315 = vst [vmem:[#allocation30_spill] sm:$0xff] %v8627_v13  ;;  %11318 = vst [vmem:[#allocation33_spill] sm:$0xff] %v8661_v23  ;;  %v1676_v41 = vld [vmem:[%s11003_s3 + $0x2f0] sm:$0xff] }
 0x29b   :  { %5647 = vmatpush1.bf16.msra.mxu0 %v8627_v13  ;;  %5711 = vmatpush1.bf16.msra.mxu1 %v8636_v43  ;;  %11317 = vst [vmem:[#allocation32_spill] sm:$0xff] %v8650_v63  ;;  %v1674_v13 = vld [vmem:[%s11003_s3 + $0x2e0] sm:$0xff]  ;;  %v8672_v43 = vpack.c.bf16 %v1676_v41, %v1672_v2  ;;  %v1685_v2 = vld [vmem:[%s11003_s3 + $0x338] sm:$0xff] }
 0x29c   :  { %v8663_v22 = vpack.c.bf16 %v1674_v13, %v1670_v35  ;;  %5649 = vmatprep.subr.bf16.mxu0 %v8650_v63  ;;  %5713 = vmatprep.subr.bf16.mxu1 %v8661_v23  ;;  %v1679_v13 = vld [vmem:[%s11003_s3 + $0x308] sm:$0xff]  ;;  %v1678_v41 = vld [vmem:[%s11003_s3 + $0x300] sm:$0xff]  ;;  %v8697_v23 = vpack.c.bf16 %v1685_v2, %v1681_v40  ;;  %v1689_v2 = vld [vmem:[%s11003_s3 + $0x358] sm:$0xff] }
 0x29d   :  { %11320 = vst [vmem:[#allocation35_spill] sm:$0xff] %v8672_v43  ;;  %v8686_v35 = vpack.c.bf16 %v1683_v5, %v1679_v13  ;;  %v1680_v13 = vld [vmem:[%s11003_s3 + $0x310] sm:$0xff]  ;;  %v1691_v40 = vld [vmem:[%s11003_s3 + $0x368] sm:$0xff] }
 0x29e   :  { %11319 = vst [vmem:[#allocation34_spill] sm:$0xff] %v8663_v22  ;;  %11322 = vst [vmem:[#allocation37_spill] sm:$0xff] %v8697_v23  ;;  %v1684_v5 = vld [vmem:[%s11003_s3 + $0x330] sm:$0xff] }
 0x29f   :  { %5651 = vmatpush1.bf16.msra.mxu0 %v8663_v22  ;;  %5715 = vmatpush1.bf16.msra.mxu1 %v8672_v43  ;;  %11321 = vst [vmem:[#allocation36_spill] sm:$0xff] %v8686_v35  ;;  %v1682_v22 = vld [vmem:[%s11003_s3 + $0x320] sm:$0xff]  ;;  %v8708_v43 = vpack.c.bf16 %v1684_v5, %v1680_v13  ;;  %v1693_v13 = vld [vmem:[%s11003_s3 + $0x378] sm:$0xff] }
 0x2a0   :  { %v8699_v63 = vpack.c.bf16 %v1682_v22, %v1678_v41  ;;  %5653 = vmatprep.subr.bf16.mxu0 %v8686_v35  ;;  %5717 = vmatprep.subr.bf16.mxu1 %v8697_v23  ;;  %v1687_v22 = vld [vmem:[%s11003_s3 + $0x348] sm:$0xff]  ;;  %v1686_v5 = vld [vmem:[%s11003_s3 + $0x340] sm:$0xff]  ;;  %v8733_v23 = vpack.c.bf16 %v1693_v13, %v1689_v2  ;;  %v1697_v2 = vld [vmem:[%s11003_s3 + $0x398] sm:$0xff] }
 0x2a1   :  { %11324 = vst [vmem:[#allocation39_spill] sm:$0xff] %v8708_v43  ;;  %v8722_v41 = vpack.c.bf16 %v1691_v40, %v1687_v22  ;;  %v1688_v22 = vld [vmem:[%s11003_s3 + $0x350] sm:$0xff]  ;;  %v1701_v13 = vld [vmem:[%s11003_s3 + $0x3b8] sm:$0xff] }
 0x2a2   :  { %11323 = vst [vmem:[#allocation38_spill] sm:$0xff] %v8699_v63  ;;  %11326 = vst [vmem:[#allocation41_spill] sm:$0xff] %v8733_v23  ;;  %v1692_v40 = vld [vmem:[%s11003_s3 + $0x370] sm:$0xff] }
 0x2a3   :  { %5655 = vmatpush1.bf16.msra.mxu0 %v8699_v63  ;;  %5719 = vmatpush1.bf16.msra.mxu1 %v8708_v43  ;;  %11325 = vst [vmem:[#allocation40_spill] sm:$0xff] %v8722_v41  ;;  %v1690_v63 = vld [vmem:[%s11003_s3 + $0x360] sm:$0xff]  ;;  %v1695_v43 = vld [vmem:[%s11003_s3 + $0x388] sm:$0xff]  ;;  %v8747_v12 = vpack.c.bf16 %v1692_v40, %v1688_v22  ;;  %v8762_v22 = vpack.c.bf16 %v1701_v13, %v1697_v2 }
 0x2a4   :  { %v8735_v35 = vpack.c.bf16 %v1690_v63, %v1686_v5  ;;  %5657 = vmatprep.subr.bf16.mxu0 %v8722_v41  ;;  %v1699_v63 = vld [vmem:[%s11003_s3 + $0x3a8] sm:$0xff]  ;;  %5721 = vmatprep.subr.bf16.mxu1 %v8733_v23  ;;  %v1694_v40 = vld [vmem:[%s11003_s3 + $0x380] sm:$0xff] }
 0x2a5   :  { %11328 = vst [vmem:[#allocation43_spill] sm:$0xff] %v8747_v12  ;;  %v8760_v5 = vpack.c.bf16 %v1699_v63, %v1695_v43  ;;  %11330 = vst [vmem:[#allocation51_spill] sm:$0xff] %v8762_v22  ;;  %v1698_v41 = vld [vmem:[%s11003_s3 + $0x3a0] sm:$0xff]  ;;  %v1700_v43 = vld [vmem:[%s11003_s3 + $0x3b0] sm:$0xff] }
 0x2a6   :  { %11327 = vst [vmem:[#allocation42_spill] sm:$0xff] %v8735_v35  ;;  %v8774_v23 = vpack.c.bf16 %v1698_v41, %v1694_v40  ;;  %v1703_v63 = vld [vmem:[%s11003_s3 + $0x3c8] sm:$0xff]  ;;  %v8787_v13 = vpack.c.bf16 %v1700_v43, %v1696_v46  ;;  %v1705_v40 = vld [vmem:[%s11003_s3 + $0x3d8] sm:$0xff]  ;;  %v1706_v46 = vld [vmem:[%s11003_s3 + $0x3e0] sm:$0xff] }
 0x2a7   :  { %5659 = vmatpush1.bf16.msra.mxu0 %v8735_v35  ;;  %11329 = vst [vmem:[#allocation44_spill] sm:$0xff] %v8760_v5  ;;  %5723 = vmatpush1.bf16.msra.mxu1 %v8747_v12  ;;  %v1707_v2 = vld [vmem:[%s11003_s3 + $0x3e8] sm:$0xff]  ;;  %v1709_v12 = vld [vmem:[%s11003_s3 + $0x3f8] sm:$0xff]  ;;  %v1702_v35 = vld [vmem:[%s11003_s3 + $0x3c0] sm:$0xff] }
 0x2a8   :  { %11331 = vst [vmem:[#allocation52_spill] sm:$0xff] %v8774_v23  ;;  %5661 = vmatprep.subr.bf16.mxu0 %v8760_v5  ;;  %5725 = vmatprep.subr.bf16.mxu1 %v8762_v22  ;;  %11332 = vst [vmem:[#allocation53_spill] sm:$0xff] %v8787_v13  ;;  %v8789_v41 = vpack.c.bf16 %v1707_v2, %v1703_v63  ;;  %v8800_v62 = vpack.c.bf16 %v1709_v12, %v1705_v40  ;;  %v1704_v43 = vld [vmem:[%s11003_s3 + $0x3d0] sm:$0xff] }
 0x2a9   :  { %v1708_v63 = vld [vmem:[%s11003_s3 + $0x3f0] sm:$0xff]  ;;  %v8812_v2 = vpack.c.bf16 %v1706_v46, %v1702_v35 }
 0x2aa   :  { %11333 = vst [vmem:[#allocation54_spill] sm:$0xff] %v8789_v41  ;;  %11334 = vst [vmem:[#allocation55_spill] sm:$0xff] %v8800_v62  ;;  %v8816_v12 = vpack.c.bf16 %v1708_v63, %v1704_v43 }
 0x2ab   :  { %5663 = vmatpush1.bf16.msra.mxu0 %v8774_v23  ;;  %11335 = vst [vmem:[#allocation56_spill] sm:$0xff] %v8812_v2  ;;  %5727 = vmatpush1.bf16.msra.mxu1 %v8787_v13 }
 0x2ac   :  { %5665 = vmatprep.subr.bf16.mxu0 %v8789_v41  ;;  %11336 = vst [vmem:[#allocation57_spill] sm:$0xff] %v8816_v12  ;;  %5729 = vmatprep.subr.bf16.mxu1 %v8800_v62 }
 0x2af   :  { %5667 = vmatpush1.bf16.msra.mxu0 %v8812_v2  ;;  %5731 = vmatpush1.bf16.msra.mxu1 %v8816_v12 }
 0x2b0   :  { %5733 = vmatprep.subr.bf16.mxu0 %v7988_v21  ;;  %5764 = vmatprep.subr.bf16.mxu1 %v11239_v54 }
 0x325   :  { %v1264_v40 = vpop.f32.mrb[18].mxu0  ;;  %v1335_v23 = vpop.f32.mrb[16].mxu1 }
 0x326   :  { %v1340_v35 = vadd.f32 %v7994_v33, %v1264_v40  ;;  %v1266_v46 = vpop.f32.mrb[19].mxu0  ;;  %v1337_v13 = vpop.f32.mrb[17].mxu1  ;;  %v1354_v20 = vadd.f32 %v8011_v36, %v1335_v23 }
 0x327   :  { %v1347_v43 = vadd.f32 %v8000_v4, %v1266_v46  ;;  %v1355_v21 = vadd.f32 %v8006_v28, %v1337_v13 }
 0x328   :  { %v4631_v22 = vmul.f32 -1.442695, %v1340_v35 }
 0x329   :  { %v4632_v63 = vmul.f32 -1.442695, %v1347_v43 }
 0x32a   :  { %6734 = vpow2.f32 %v4631_v22 }
 0x32b   :  { %6736 = vpow2.f32 %v4632_v63 }
 0x334   :  { %v6735_v62 = vpop.eup %6734 }
 0x335   :  { %v1344_v2 = vadd.f32 1.0, %v6735_v62  ;;  %v6737_v12 = vpop.eup %6736 }
 0x336   :  { %v1351_v41 = vadd.f32 1.0, %v6737_v12 }
 0x337   :  { %6738 = vrcp.f32 %v1344_v2 }
 0x338   :  { %6740 = vrcp.f32 %v1351_v41 }
 0x341   :  { %v6739_v5 = vpop.eup %6738 }
 0x342   :  { %v1356_v33 = vmul.f32 %v6739_v5, %v1355_v21  ;;  %v6741_v62 = vpop.eup %6740  ;;  %v8835_v5 = vld [vmem:[%s11004_s4] ss:$0 sm:$0xff] }
 0x343   :  { %v1359_v2 = vsub.f32 1.0, %v6741_v62  ;;  %v1361_v28 = vmul.f32 %v6741_v62, %v8015_v16 }
 0x344   :  { %v1357_v40 = vadd.f32 %v1356_v33, %v1354_v20 }
 0x345   :  { %v1485_v1 = vpop.f32.mrb[4].mxu0  ;;  %v1556_v35 = vpop.f32.mrb[18].mxu1 }
 0x346   :  { %6742 = vtanh.f32 %v1357_v40  ;;  %v4633_v4 = vmul.f32 -1.442695, %v1485_v1  ;;  %v1487_v22 = vpop.f32.mrb[5].mxu0  ;;  %v4948_v46 = vpop.f32.mrb[19].mxu1  ;;  %v1574_v41 = vadd.f32 %v8835_v5, %v1556_v35  ;;  %v11338_v40 = vld [vmem:[#allocation46_spill] sm:$0xff]  ;;  %v11380_v35 = vld [vmem:[#allocation52_spill] sm:$0xff] }
 0x347   :  { %v4634_v43 = vmul.f32 -1.442695, %v1487_v22 }
 0x348   :  { %6744 = vpow2.f32 %v4633_v4 }
 0x349   :  { %6746 = vpow2.f32 %v4634_v43 }
 0x350   :  { %v6743_v12 = vpop.eup %6742 }
 0x351   :  { %v1360_v63 = vmul.f32 %v6743_v12, %v1359_v2 }
 0x352   :  { %v6745_v13 = vpop.eup %6744 }
 0x353   :  { %v1564_v36 = vadd.f32 1.0, %v6745_v13  ;;  %v8828_v23 = vadd.f32 %v1361_v28, %v1360_v63  ;;  %v6747_v1 = vpop.eup %6746  ;;  %v11381_v63 = vld [vmem:[#allocation53_spill] sm:$0xff]  ;;  %v11382_v28 = vld [vmem:[#allocation54_spill] sm:$0xff]  ;;  %v11383_v13 = vld [vmem:[#allocation55_spill] sm:$0xff] }
 0x354   :  { %v1571_v20 = vadd.f32 1.0, %v6747_v1  ;;  %v11385_v1 = vld [vmem:[#allocation57_spill] sm:$0xff] }
 0x355   :  { %11337 = vst [vmem:[#allocation58_spill] sm:$0xff] %v8828_v23  ;;  %6748 = vrcp.f32 %v1564_v36  ;;  %1774 = vmatprep.mubr.f32.mxu0 %v8828_v23  ;;  %1845 = vmatprep.mubr.f32.mxu1 %v8828_v23  ;;  %v11384_v36 = vld [vmem:[#allocation56_spill] sm:$0xff] }
 0x356   :  { %6750 = vrcp.f32 %v1571_v20  ;;  %v2396_v20 = vld [vmem:[%s11002_s2 + $0x8] sm:$0xff] }
 0x35f   :  { %v6749_v21 = vpop.eup %6748 }
 0x360   :  { %v1575_v33 = vmul.f32 %v6749_v21, %v1574_v41  ;;  %v6751_v22 = vpop.eup %6750  ;;  %v2399_v41 = vld [vmem:[%s11002_s2 + $0x20] sm:$0xff] }
 0x361   :  { %v1578_v46 = vsub.f32 1.0, %v6751_v22  ;;  %v1580_v2 = vmul.f32 %v6751_v22, %v8047_v53  ;;  %v11341_v53 = vld [vmem:[#allocation7_spill] sm:$0xff]  ;;  %v8950_v21 = vpack.c.bf16 %v2399_v41, %v2396_v20 }
 0x362   :  { %v1576_v4 = vadd.f32 %v1575_v33, %v11338_v40 }
 0x364   :  { %6752 = vtanh.f32 %v1576_v4  ;;  %v8956_v4 = vld [vmem:[%s11004_s4 + $0x1] ss:$0 sm:$0xff] }
 0x36e   :  { %v6753_v43 = vpop.eup %6752 }
 0x36f   :  { %v1579_v62 = vmul.f32 %v6753_v43, %v1578_v46 }
 0x371   :  { %v8840_v12 = vadd.f32 %v1580_v2, %v1579_v62  ;;  %v8962_v2 = vld [vmem:[%s11004_s4 + $0x2] ss:$0 sm:$0xff] }
 0x373   :  { %1775 = vmatmul.mubr.f32.vlgmr.msra.gmra.mrb[20].mxu0 %v8840_v12  ;;  %1846 = vmatmul.mubr.f32.vlgmr.msra.gmra.mrb[20].mxu1 %v8840_v12 }
 0x374   :  { %5735 = vmatpush1.bf16.msra.mxu0 %v8040_v37  ;;  %5766 = vmatpush3.bf16.msra.mxu1 %v8042_v42  ;;  %v11339_v37 = vld [vmem:[#allocation5_spill] sm:$0xff]  ;;  %v11340_v42 = vld [vmem:[#allocation6_spill] sm:$0xff] }
 0x375   :  { %5737 = vmatprep.subr.bf16.mxu0 %v8049_v60  ;;  %5767 = vmatprep.subr.bf16.mxu1 %v11239_v54  ;;  %v11342_v60 = vld [vmem:[#allocation8_spill] sm:$0xff] }
 0x376   :  { %1995 = vmatprep.mubr.f32.mxu0 %v11247_v8  ;;  %4981 = vmatprep.mubr.msk.f32.mxu1 %vm6898_vm4, %v11247_v8 }
 0x378   :  { %5739 = vmatpush1.bf16.msra.mxu0 %v8070_v58  ;;  %5769 = vmatpush3.bf16.msra.mxu1 %v8072_v3  ;;  %v11343_v58 = vld [vmem:[#allocation9_spill] sm:$0xff]  ;;  %v11344_v3 = vld [vmem:[#allocation10_spill] sm:$0xff] }
 0x379   :  { %5741 = vmatprep.subr.bf16.mxu0 %v8079_v52  ;;  %5770 = vmatprep.subr.bf16.mxu1 %v11239_v54  ;;  %v11345_v52 = vld [vmem:[#allocation11_spill] sm:$0xff] }
 0x37c   :  { %5743 = vmatpush1.bf16.msra.mxu0 %v8101_v59  ;;  %5772 = vmatpush3.bf16.msra.mxu1 %v8103_v26  ;;  %v11346_v59 = vld [vmem:[#allocation12_spill] sm:$0xff]  ;;  %v11347_v26 = vld [vmem:[#allocation13_spill] sm:$0xff] }
 0x37d   :  { %5745 = vmatprep.subr.bf16.mxu0 %v8110_v15  ;;  %5773 = vmatprep.subr.bf16.mxu1 %v11239_v54  ;;  %v11348_v15 = vld [vmem:[#allocation14_spill] sm:$0xff] }
 0x380   :  { %5747 = vmatpush1.bf16.msra.mxu0 %v8129_v45  ;;  %5775 = vmatpush3.bf16.msra.mxu1 %v8131_v50  ;;  %v11349_v45 = vld [vmem:[#allocation15_spill] sm:$0xff]  ;;  %v11350_v50 = vld [vmem:[#allocation16_spill] sm:$0xff] }
 0x381   :  { %5749 = vmatprep.subr.bf16.mxu0 %v8138_v56  ;;  %5776 = vmatprep.subr.bf16.mxu1 %v11239_v54  ;;  %v11351_v56 = vld [vmem:[#allocation17_spill] sm:$0xff] }
 0x384   :  { %5751 = vmatpush1.bf16.msra.mxu0 %v8157_v11  ;;  %5778 = vmatpush3.bf16.msra.mxu1 %v8159_v19  ;;  %v11352_v11 = vld [vmem:[#allocation18_spill] sm:$0xff]  ;;  %v11353_v19 = vld [vmem:[#allocation19_spill] sm:$0xff] }
 0x385   :  { %5753 = vmatprep.subr.bf16.mxu0 %v8166_v27  ;;  %5779 = vmatprep.subr.bf16.mxu1 %v11239_v54  ;;  %v11354_v27 = vld [vmem:[#allocation20_spill] sm:$0xff] }
 0x388   :  { %5755 = vmatpush1.bf16.msra.mxu0 %v8185_v49  ;;  %5781 = vmatpush3.bf16.msra.mxu1 %v8187_v55  ;;  %v11355_v49 = vld [vmem:[#allocation21_spill] sm:$0xff]  ;;  %v11356_v55 = vld [vmem:[#allocation22_spill] sm:$0xff] }
 0x389   :  { %5757 = vmatprep.subr.bf16.mxu0 %v8194_v38  ;;  %5782 = vmatprep.subr.bf16.mxu1 %v11239_v54  ;;  %v11357_v38 = vld [vmem:[#allocation23_spill] sm:$0xff] }
 0x38c   :  { %5759 = vmatpush1.bf16.msra.mxu0 %v8213_v29  ;;  %5784 = vmatpush3.bf16.msra.mxu1 %v8215_v47  ;;  %v11358_v29 = vld [vmem:[#allocation24_spill] sm:$0xff]  ;;  %v11359_v47 = vld [vmem:[#allocation25_spill] sm:$0xff] }
 0x38d   :  { %5761 = vmatprep.subr.bf16.mxu0 %v8222_v7  ;;  %5785 = vmatprep.subr.bf16.mxu1 %v11239_v54  ;;  %v11360_v7 = vld [vmem:[#allocation26_spill] sm:$0xff] }
 0x390   :  { %5763 = vmatpush1.bf16.msra.mxu0 %v8235_v18  ;;  %5787 = vmatpush3.bf16.msra.mxu1 %v8237_v17  ;;  %v11361_v18 = vld [vmem:[#allocation27_spill] sm:$0xff]  ;;  %v11362_v17 = vld [vmem:[#allocation28_spill] sm:$0xff] }
 0x391   :  { %5789 = vmatprep.subr.bf16.mxu0 %v8254_v32  ;;  %5853 = vmatprep.subr.bf16.mxu1 %v8265_v30  ;;  %v11363_v32 = vld [vmem:[#allocation29_spill] sm:$0xff]  ;;  %v11364_v30 = vld [vmem:[#allocation30_spill] sm:$0xff] }
 0x393   :  { %1996 = vmatmul.mubr.f32.vlgmr.msra.gmra.mrb[6].mxu0 %v8840_v12  ;;  %4982 = vmatmul.mubr.f32.vlgmr.msra.gmra.mrb[22].mxu1 %v8840_v12 }
 0x394   :  { %5791 = vmatpush1.bf16.msra.mxu0 %v8267_v34  ;;  %5855 = vmatpush1.bf16.msra.mxu1 %v8276_v57  ;;  %v11365_v34 = vld [vmem:[#allocation31_spill] sm:$0xff]  ;;  %v11366_v57 = vld [vmem:[#allocation32_spill] sm:$0xff] }
 0x395   :  { %5793 = vmatprep.subr.bf16.mxu0 %v8290_v6  ;;  %5857 = vmatprep.subr.bf16.mxu1 %v8301_v39  ;;  %v11367_v6 = vld [vmem:[#allocation33_spill] sm:$0xff]  ;;  %v11368_v39 = vld [vmem:[#allocation34_spill] sm:$0xff] }
 0x398   :  { %5795 = vmatpush1.bf16.msra.mxu0 %v8303_v44  ;;  %5859 = vmatpush1.bf16.msra.mxu1 %v8312_v0  ;;  %v11369_v44 = vld [vmem:[#allocation35_spill] sm:$0xff]  ;;  %v11370_v0 = vld [vmem:[#allocation36_spill] sm:$0xff] }
 0x399   :  { %5797 = vmatprep.subr.bf16.mxu0 %v8326_v25  ;;  %5861 = vmatprep.subr.bf16.mxu1 %v8337_v48  ;;  %v11371_v25 = vld [vmem:[#allocation37_spill] sm:$0xff]  ;;  %v11372_v48 = vld [vmem:[#allocation38_spill] sm:$0xff] }
 0x39c   :  { %5799 = vmatpush1.bf16.msra.mxu0 %v8339_v10  ;;  %5863 = vmatpush1.bf16.msra.mxu1 %v8348_v14  ;;  %v11373_v10 = vld [vmem:[#allocation39_spill] sm:$0xff]  ;;  %v11374_v14 = vld [vmem:[#allocation40_spill] sm:$0xff] }
 0x39d   :  { %5801 = vmatprep.subr.bf16.mxu0 %v8362_v51  ;;  %5865 = vmatprep.subr.bf16.mxu1 %v8373_v24  ;;  %v11375_v51 = vld [vmem:[#allocation41_spill] sm:$0xff]  ;;  %v11376_v24 = vld [vmem:[#allocation42_spill] sm:$0xff] }
 0x3a0   :  { %5803 = vmatpush1.bf16.msra.mxu0 %v8375_v31  ;;  %5867 = vmatpush1.bf16.msra.mxu1 %v8384_v61  ;;  %v11377_v31 = vld [vmem:[#allocation43_spill] sm:$0xff]  ;;  %v11378_v61 = vld [vmem:[#allocation44_spill] sm:$0xff] }
 0x3a1   :  { %5805 = vmatprep.subr.bf16.mxu0 %v8398_v9  ;;  %5869 = vmatprep.subr.bf16.mxu1 %v11339_v37  ;;  %v11379_v9 = vld [vmem:[#allocation51_spill] sm:$0xff] }
 0x3a4   :  { %5807 = vmatpush1.bf16.msra.mxu0 %v11340_v42  ;;  %5871 = vmatpush1.bf16.msra.mxu1 %v11341_v53 }
 0x3a5   :  { %5809 = vmatprep.subr.bf16.mxu0 %v11342_v60  ;;  %5873 = vmatprep.subr.bf16.mxu1 %v11343_v58 }
 0x3a8   :  { %5811 = vmatpush1.bf16.msra.mxu0 %v11344_v3  ;;  %5875 = vmatpush1.bf16.msra.mxu1 %v11345_v52  ;;  %v8968_v52 = vld [vmem:[%s11004_s4 + $0x4] ss:$0 sm:$0xff] }
 0x3a9   :  { %5813 = vmatprep.subr.bf16.mxu0 %v11346_v59  ;;  %5877 = vmatprep.subr.bf16.mxu1 %v11347_v26 }
 0x3ac   :  { %5815 = vmatpush1.bf16.msra.mxu0 %v11348_v15  ;;  %5879 = vmatpush1.bf16.msra.mxu1 %v11349_v45  ;;  %v8974_v15 = vld [vmem:[%s11004_s4 + $0x3] ss:$0 sm:$0xff] }
 0x3ad   :  { %5817 = vmatprep.subr.bf16.mxu0 %v11350_v50  ;;  %5881 = vmatprep.subr.bf16.mxu1 %v11351_v56 }
 0x3b0   :  { %5819 = vmatpush1.bf16.msra.mxu0 %v11352_v11  ;;  %5883 = vmatpush1.bf16.msra.mxu1 %v11353_v19 }
 0x3b1   :  { %5821 = vmatprep.subr.bf16.mxu0 %v11354_v27  ;;  %5885 = vmatprep.subr.bf16.mxu1 %v11355_v49 }
 0x3b4   :  { %5823 = vmatpush1.bf16.msra.mxu0 %v11356_v55  ;;  %5887 = vmatpush1.bf16.msra.mxu1 %v11357_v38 }
 0x3b5   :  { %5825 = vmatprep.subr.bf16.mxu0 %v11358_v29  ;;  %5889 = vmatprep.subr.bf16.mxu1 %v11359_v47 }
 0x3b8   :  { %5827 = vmatpush1.bf16.msra.mxu0 %v11360_v7  ;;  %5891 = vmatpush1.bf16.msra.mxu1 %v11361_v18 }
 0x3b9   :  { %5829 = vmatprep.subr.bf16.mxu0 %v11362_v17  ;;  %5893 = vmatprep.subr.bf16.mxu1 %v11363_v32 }
 0x3bc   :  { %5831 = vmatpush1.bf16.msra.mxu0 %v11364_v30  ;;  %5895 = vmatpush1.bf16.msra.mxu1 %v11365_v34 }
 0x3bd   :  { %5833 = vmatprep.subr.bf16.mxu0 %v11366_v57  ;;  %5897 = vmatprep.subr.bf16.mxu1 %v11367_v6 }
 0x3c0   :  { %5835 = vmatpush1.bf16.msra.mxu0 %v11368_v39  ;;  %5899 = vmatpush1.bf16.msra.mxu1 %v11369_v44 }
 0x3c1   :  { %5837 = vmatprep.subr.bf16.mxu0 %v11370_v0  ;;  %5901 = vmatprep.subr.bf16.mxu1 %v11371_v25  ;;  %v11387_v25 = vld [vmem:[#allocation45_spill] sm:$0xff] }
 0x3c4   :  { %5839 = vmatpush1.bf16.msra.mxu0 %v11372_v48  ;;  %5903 = vmatpush1.bf16.msra.mxu1 %v11373_v10 }
 0x3c5   :  { %5841 = vmatprep.subr.bf16.mxu0 %v11374_v14  ;;  %5905 = vmatprep.subr.bf16.mxu1 %v11375_v51  ;;  %v2395_v14 = vld [vmem:[%s11002_s2] sm:$0xff] }
 0x3c8   :  { %5843 = vmatpush1.bf16.msra.mxu0 %v11376_v24  ;;  %5907 = vmatpush1.bf16.msra.mxu1 %v11377_v31  ;;  %v2398_v24 = vld [vmem:[%s11002_s2 + $0x18] sm:$0xff]  ;;  %v2400_v31 = vld [vmem:[%s11002_s2 + $0x28] sm:$0xff] }
 0x3c9   :  { %5845 = vmatprep.subr.bf16.mxu0 %v11378_v61  ;;  %5909 = vmatprep.subr.bf16.mxu1 %v11379_v9  ;;  %v2402_v9 = vld [vmem:[%s11002_s2 + $0x38] sm:$0xff] }
 0x3cc   :  { %5847 = vmatpush1.bf16.msra.mxu0 %v11380_v35  ;;  %5911 = vmatpush1.bf16.msra.mxu1 %v11381_v63  ;;  %v2405_v35 = vld [vmem:[%s11002_s2 + $0x50] sm:$0xff] }
 0x3cd   :  { %5849 = vmatprep.subr.bf16.mxu0 %v11382_v28  ;;  %5913 = vmatprep.subr.bf16.mxu1 %v11383_v13  ;;  %v9003_v13 = vpack.c.bf16 %v2398_v24, %v2395_v14  ;;  %v9012_v41 = vpack.c.bf16 %v2405_v35, %v2402_v9  ;;  %v2432_v14 = vld [vmem:[%s11002_s2 + $0x128] sm:$0xff]  ;;  %v2434_v9 = vld [vmem:[%s11002_s2 + $0x138] sm:$0xff]  ;;  %v2433_v35 = vld [vmem:[%s11002_s2 + $0x130] sm:$0xff] }
 0x3d0   :  { %5851 = vmatpush1.bf16.msra.mxu0 %v11384_v36  ;;  %5915 = vmatpush1.bf16.msra.mxu1 %v11385_v1  ;;  %v2401_v1 = vld [vmem:[%s11002_s2 + $0x30] sm:$0xff] }
 0x3d1   :  { %5948 = vmatprep.subr.bf16.mxu1 %v11239_v54  ;;  %5917 = vmatprep.subr.bf16.mxu0 %v8950_v21 }
 0x446   :  { %v1776_v33 = vpop.f32.mrb[20].mxu0  ;;  %v1847_v40 = vpop.f32.mrb[20].mxu1 }
 0x447   :  { %v1852_v22 = vadd.f32 %v8956_v4, %v1776_v33  ;;  %v1778_v46 = vpop.f32.mrb[21].mxu0  ;;  %v1849_v43 = vpop.f32.mrb[21].mxu1  ;;  %v1866_v45 = vadd.f32 %v8974_v15, %v1847_v40  ;;  %v2404_v33 = vld [vmem:[%s11002_s2 + $0x48] sm:$0xff]  ;;  %v2406_v40 = vld [vmem:[%s11002_s2 + $0x58] sm:$0xff] }
 0x448   :  { %v1859_v37 = vadd.f32 %v8962_v2, %v1778_v46  ;;  %v1867_v59 = vadd.f32 %v8968_v52, %v1849_v43  ;;  %v2411_v46 = vld [vmem:[%s11002_s2 + $0x80] sm:$0xff]  ;;  %v9033_v43 = vpack.c.bf16 %v2404_v33, %v2401_v1  ;;  %v2441_v1 = vld [vmem:[%s11002_s2 + $0x170] sm:$0xff] }
 0x449   :  { %v4635_v62 = vmul.f32 -1.442695, %v1852_v22  ;;  %v2408_v22 = vld [vmem:[%s11002_s2 + $0x68] sm:$0xff] }
 0x44a   :  { %v4636_v42 = vmul.f32 -1.442695, %v1859_v37  ;;  %v2407_v37 = vld [vmem:[%s11002_s2 + $0x60] sm:$0xff] }
 0x44b   :  { %6754 = vpow2.f32 %v4635_v62 }
 0x44c   :  { %6756 = vpow2.f32 %v4636_v42  ;;  %v9042_v42 = vpack.c.bf16 %v2411_v46, %v2408_v22  ;;  %v2440_v46 = vld [vmem:[%s11002_s2 + $0x168] sm:$0xff] }
 0x455   :  { %v6755_v53 = vpop.eup %6754 }
 0x456   :  { %v1856_v60 = vadd.f32 1.0, %v6755_v53  ;;  %v6757_v58 = vpop.eup %6756  ;;  %v2410_v53 = vld [vmem:[%s11002_s2 + $0x78] sm:$0xff] }
 0x457   :  { %v1863_v3 = vadd.f32 1.0, %v6757_v58  ;;  %v2412_v58 = vld [vmem:[%s11002_s2 + $0x88] sm:$0xff] }
 0x458   :  { %6758 = vrcp.f32 %v1856_v60  ;;  %v2409_v60 = vld [vmem:[%s11002_s2 + $0x70] sm:$0xff] }
 0x459   :  { %6760 = vrcp.f32 %v1863_v3  ;;  %v2414_v3 = vld [vmem:[%s11002_s2 + $0x98] sm:$0xff] }
 0x462   :  { %v6759_v26 = vpop.eup %6758 }
 0x463   :  { %v1868_v50 = vmul.f32 %v6759_v26, %v1867_v59  ;;  %v6761_v29 = vpop.eup %6760  ;;  %v2417_v59 = vld [vmem:[%s11002_s2 + $0xb0] sm:$0xff]  ;;  %v9064_v26 = vpack.c.bf16 %v2410_v53, %v2407_v37  ;;  %v2439_v37 = vld [vmem:[%s11002_s2 + $0x160] sm:$0xff]  ;;  %v2442_v53 = vld [vmem:[%s11002_s2 + $0x178] sm:$0xff] }
 0x464   :  { %v1871_v47 = vsub.f32 1.0, %v6761_v29  ;;  %v1873_v17 = vmul.f32 %v6761_v29, %v8828_v23  ;;  %v2658_v23 = vld [vmem:[%s11003_s3 + $0x1a0] sm:$0xff] }
 0x465   :  { %v1869_v56 = vadd.f32 %v1868_v50, %v1866_v45  ;;  %v9066_v45 = vpack.c.bf16 %v2412_v58, %v2409_v60  ;;  %v2413_v50 = vld [vmem:[%s11002_s2 + $0x90] sm:$0xff]  ;;  %v9200_v58 = vpack.c.bf16 %v2442_v53, %v2439_v37  ;;  %v2629_v37 = vld [vmem:[%s11003_s3 + $0xb8] sm:$0xff]  ;;  %v2622_v53 = vld [vmem:[%s11003_s3 + $0x80] sm:$0xff] }
 0x466   :  { %v1997_v11 = vpop.f32.mrb[6].mxu0  ;;  %v2068_v19 = vpop.f32.mrb[22].mxu1 }
 0x467   :  { %6762 = vtanh.f32 %v1869_v56  ;;  %v4637_v27 = vmul.f32 -1.442695, %v1997_v11  ;;  %v1999_v49 = vpop.f32.mrb[7].mxu0  ;;  %v4983_v55 = vpop.f32.mrb[23].mxu1  ;;  %v2086_v39 = vadd.f32 %v8835_v5, %v2068_v19  ;;  %v2397_v5 = vld [vmem:[%s11002_s2 + $0x10] sm:$0xff]  ;;  %v9073_v56 = vpack.c.bf16 %v2417_v59, %v2414_v3  ;;  %v2416_v11 = vld [vmem:[%s11002_s2 + $0xa8] sm:$0xff] }
 0x468   :  { %v4638_v38 = vmul.f32 -1.442695, %v1999_v49  ;;  %v9005_v36 = vpack.c.bf16 %v2400_v31, %v2397_v5  ;;  %v2415_v19 = vld [vmem:[%s11002_s2 + $0xa0] sm:$0xff]  ;;  %v2420_v49 = vld [vmem:[%s11002_s2 + $0xc8] sm:$0xff] }
 0x469   :  { %6764 = vpow2.f32 %v4637_v27  ;;  %v2418_v27 = vld [vmem:[%s11002_s2 + $0xb8] sm:$0xff]  ;;  %v2423_v55 = vld [vmem:[%s11002_s2 + $0xe0] sm:$0xff]  ;;  %v2607_v3 = vld [vmem:[%s11003_s3 + $0x8] sm:$0xff] }
 0x46a   :  { %6766 = vpow2.f32 %v4638_v38  ;;  %v9092_v38 = vpack.c.bf16 %v2416_v11, %v2413_v50  ;;  %v9094_v29 = vpack.c.bf16 %v2418_v27, %v2415_v19  ;;  %v2431_v31 = vld [vmem:[%s11002_s2 + $0x120] sm:$0xff]  ;;  %v2611_v59 = vld [vmem:[%s11003_s3 + $0x28] sm:$0xff]  ;;  %v2609_v50 = vld [vmem:[%s11003_s3 + $0x18] sm:$0xff] }
 0x46b   :  { %v9176_v33 = vpack.c.bf16 %v2434_v9, %v2431_v31  ;;  %v9217_v11 = vpack.c.bf16 %v2611_v59, %v2607_v3  ;;  %v2613_v19 = vld [vmem:[%s11003_s3 + $0x38] sm:$0xff]  ;;  %v2606_v27 = vld [vmem:[%s11003_s3] sm:$0xff]  ;;  %v2616_v9 = vld [vmem:[%s11003_s3 + $0x50] sm:$0xff] }
 0x46c   :  { %v2626_v3 = vld [vmem:[%s11003_s3 + $0xa0] sm:$0xff] }
 0x471   :  { %v6763_v7 = vpop.eup %6762 }
 0x472   :  { %v1872_v18 = vmul.f32 %v6763_v7, %v1871_v47  ;;  %v2419_v47 = vld [vmem:[%s11002_s2 + $0xc0] sm:$0xff]  ;;  %v9101_v7 = vpack.c.bf16 %v2423_v55, %v2420_v49  ;;  %v9228_v55 = vpack.c.bf16 %v2613_v19, %v2609_v50  ;;  %v9302_v50 = vpack.c.bf16 %v2626_v3, %v2622_v53  ;;  %v2624_v19 = vld [vmem:[%s11003_s3 + $0x90] sm:$0xff]  ;;  %v2641_v53 = vld [vmem:[%s11003_s3 + $0x118] sm:$0xff] }
 0x473   :  { %v6765_v32 = vpop.eup %6764  ;;  %v2610_v49 = vld [vmem:[%s11003_s3 + $0x20] sm:$0xff] }
 0x474   :  { %v2076_v30 = vadd.f32 1.0, %v6765_v32  ;;  %v8978_v34 = vadd.f32 %v1873_v17, %v1872_v18  ;;  %v6767_v57 = vpop.eup %6766  ;;  %v2422_v18 = vld [vmem:[%s11002_s2 + $0xd8] sm:$0xff]  ;;  %v2421_v17 = vld [vmem:[%s11002_s2 + $0xd0] sm:$0xff]  ;;  %v2424_v32 = vld [vmem:[%s11002_s2 + $0xe8] sm:$0xff] }
 0x475   :  { %v2083_v6 = vadd.f32 1.0, %v6767_v57  ;;  %v2429_v57 = vld [vmem:[%s11002_s2 + $0x110] sm:$0xff] }
 0x476   :  { %11386 = vst [vmem:[#allocation46_spill] sm:$0xff] %v8978_v34  ;;  %6768 = vrcp.f32 %v2076_v30  ;;  %2286 = vmatprep.mubr.f32.mxu0 %v8978_v34  ;;  %2357 = vmatprep.mubr.f32.mxu1 %v8978_v34  ;;  %v2426_v30 = vld [vmem:[%s11002_s2 + $0xf8] sm:$0xff] }
 0x477   :  { %6770 = vrcp.f32 %v2083_v6  ;;  %v9120_v6 = vpack.c.bf16 %v2422_v18, %v2419_v47  ;;  %v9230_v47 = vpack.c.bf16 %v2610_v49, %v2606_v27  ;;  %v2608_v18 = vld [vmem:[%s11003_s3 + $0x10] sm:$0xff] }
 0x478   :  { %v2628_v27 = vld [vmem:[%s11003_s3 + $0xb0] sm:$0xff] }
 0x479   :  { %v9311_v49 = vpack.c.bf16 %v2628_v27, %v2624_v19  ;;  %v2645_v19 = vld [vmem:[%s11003_s3 + $0x138] sm:$0xff]  ;;  %v2638_v27 = vld [vmem:[%s11003_s3 + $0x100] sm:$0xff] }
 0x480   :  { %v6769_v44 = vpop.eup %6768 }
 0x481   :  { %v2087_v0 = vmul.f32 %v6769_v44, %v2086_v39  ;;  %v6771_v10 = vpop.eup %6770  ;;  %v9122_v39 = vpack.c.bf16 %v2424_v32, %v2421_v17  ;;  %v2425_v44 = vld [vmem:[%s11002_s2 + $0xf0] sm:$0xff] }
 0x482   :  { %v2090_v51 = vsub.f32 1.0, %v6771_v10  ;;  %v2092_v28 = vmul.f32 %v6771_v10, %v8840_v12  ;;  %v2403_v12 = vld [vmem:[%s11002_s2 + $0x40] sm:$0xff]  ;;  %v2430_v10 = vld [vmem:[%s11002_s2 + $0x118] sm:$0xff]  ;;  %v2612_v17 = vld [vmem:[%s11003_s3 + $0x30] sm:$0xff] }
 0x483   :  { %v2088_v48 = vadd.f32 %v11387_v25, %v2087_v0  ;;  %v9035_v62 = vpack.c.bf16 %v2406_v40, %v2403_v12  ;;  %v9129_v0 = vpack.c.bf16 %v2429_v57, %v2426_v30  ;;  %v2428_v25 = vld [vmem:[%s11002_s2 + $0x108] sm:$0xff]  ;;  %v2437_v40 = vld [vmem:[%s11002_s2 + $0x150] sm:$0xff]  ;;  %v9239_v32 = vpack.c.bf16 %v2612_v17, %v2608_v18 }
 0x484   :  { %v9148_v24 = vpack.c.bf16 %v2428_v25, %v2425_v44  ;;  %v9198_v60 = vpack.c.bf16 %v2440_v46, %v2437_v40  ;;  %v2615_v30 = vld [vmem:[%s11003_s3 + $0x48] sm:$0xff]  ;;  %v2617_v44 = vld [vmem:[%s11003_s3 + $0x58] sm:$0xff] }
 0x485   :  { %6772 = vtanh.f32 %v2088_v48  ;;  %v2427_v48 = vld [vmem:[%s11002_s2 + $0x100] sm:$0xff]  ;;  %v2619_v57 = vld [vmem:[%s11003_s3 + $0x68] sm:$0xff]  ;;  %v2625_v40 = vld [vmem:[%s11003_s3 + $0x98] sm:$0xff] }
 0x486   :  { %v9150_v5 = vpack.c.bf16 %v2430_v10, %v2427_v48  ;;  %v9253_v25 = vpack.c.bf16 %v2619_v57, %v2615_v30  ;;  %v2621_v48 = vld [vmem:[%s11003_s3 + $0x78] sm:$0xff]  ;;  %v2614_v10 = vld [vmem:[%s11003_s3 + $0x40] sm:$0xff]  ;;  %v9300_v59 = vpack.c.bf16 %v2629_v37, %v2625_v40  ;;  %v2631_v18 = vld [vmem:[%s11003_s3 + $0xc8] sm:$0xff] }
 0x487   :  { %v2635_v17 = vld [vmem:[%s11003_s3 + $0xe8] sm:$0xff]  ;;  %v2633_v30 = vld [vmem:[%s11003_s3 + $0xd8] sm:$0xff] }
 0x488   :  { %v9325_v57 = vpack.c.bf16 %v2635_v17, %v2631_v18  ;;  %v2639_v40 = vld [vmem:[%s11003_s3 + $0x108] sm:$0xff]  ;;  %v2642_v18 = vld [vmem:[%s11003_s3 + $0x120] sm:$0xff]  ;;  %v9372_v17 = vpack.c.bf16 %v2645_v19, %v2641_v53  ;;  %v2653_v53 = vld [vmem:[%s11003_s3 + $0x178] sm:$0xff] }
 0x489   :  { %v2643_v37 = vld [vmem:[%s11003_s3 + $0x128] sm:$0xff]  ;;  %v2646_v19 = vld [vmem:[%s11003_s3 + $0x140] sm:$0xff] }
 0x48a   :  { %v9361_v3 = vpack.c.bf16 %v2643_v37, %v2639_v40  ;;  %11388 = vst [vmem:[#allocation5_spill] sm:$0xff] %v9372_v17  ;;  %v2649_v40 = vld [vmem:[%s11003_s3 + $0x158] sm:$0xff] }
 0x48f   :  { %v6773_v61 = vpop.eup %6772 }
 0x490   :  { %v2091_v63 = vmul.f32 %v6773_v61, %v2090_v51  ;;  %v2435_v51 = vld [vmem:[%s11002_s2 + $0x140] sm:$0xff] }
 0x491   :  { %v9157_v61 = vpack.c.bf16 %v2435_v51, %v2432_v14  ;;  %v2618_v14 = vld [vmem:[%s11003_s3 + $0x60] sm:$0xff]  ;;  %v9264_v51 = vpack.c.bf16 %v2621_v48, %v2617_v44  ;;  %v2637_v44 = vld [vmem:[%s11003_s3 + $0xf8] sm:$0xff] }
 0x492   :  { %v9010_v20 = vadd.f32 %v2092_v28, %v2091_v63  ;;  %v2436_v63 = vld [vmem:[%s11002_s2 + $0x148] sm:$0xff]  ;;  %v2438_v28 = vld [vmem:[%s11002_s2 + $0x158] sm:$0xff]  ;;  %v9266_v31 = vpack.c.bf16 %v2618_v14, %v2614_v10  ;;  %v2630_v48 = vld [vmem:[%s11003_s3 + $0xc0] sm:$0xff]  ;;  %v9336_v14 = vpack.c.bf16 %v2637_v44, %v2633_v30  ;;  %v9374_v30 = vpack.c.bf16 %v2642_v18, %v2638_v27 }
 0x493   :  { %v9178_v12 = vpack.c.bf16 %v2436_v63, %v2433_v35  ;;  %v9185_v22 = vpack.c.bf16 %v2441_v1, %v2438_v28  ;;  %v2620_v35 = vld [vmem:[%s11003_s3 + $0x70] sm:$0xff]  ;;  %v2623_v28 = vld [vmem:[%s11003_s3 + $0x88] sm:$0xff]  ;;  %v2634_v10 = vld [vmem:[%s11003_s3 + $0xe0] sm:$0xff]  ;;  %v9408_v18 = vpack.c.bf16 %v2653_v53, %v2649_v40 }
 0x494   :  { %2287 = vmatmul.mubr.f32.vlgmr.msra.gmra.mrb[22].mxu0 %v9010_v20  ;;  %2358 = vmatmul.mubr.f32.vlgmr.msra.gmra.mrb[24].mxu1 %v9010_v20  ;;  %v9275_v63 = vpack.c.bf16 %v2620_v35, %v2616_v9  ;;  %v2627_v1 = vld [vmem:[%s11003_s3 + $0xa8] sm:$0xff]  ;;  %v9338_v9 = vpack.c.bf16 %v2634_v10, %v2630_v48  ;;  %v2632_v35 = vld [vmem:[%s11003_s3 + $0xd0] sm:$0xff]  ;;  %11389 = vst [vmem:[#allocation6_spill] sm:$0xff] %v9374_v30  ;;  %v2650_v27 = vld [vmem:[%s11003_s3 + $0x160] sm:$0xff] }
 0x495   :  { %5919 = vmatpush1.bf16.msra.mxu0 %v9003_v13  ;;  %5950 = vmatpush3.bf16.msra.mxu1 %v9005_v36  ;;  %v9289_v46 = vpack.c.bf16 %v2627_v1, %v2623_v28  ;;  %v2636_v28 = vld [vmem:[%s11003_s3 + $0xf0] sm:$0xff]  ;;  %11392 = vst [vmem:[#allocation9_spill] sm:$0xff] %v9408_v18  ;;  %v2655_v40 = vld [vmem:[%s11003_s3 + $0x188] sm:$0xff] }
 0x496   :  { %5921 = vmatprep.subr.bf16.mxu0 %v9012_v41  ;;  %5951 = vmatprep.subr.bf16.mxu1 %v11239_v54  ;;  %v9347_v1 = vpack.c.bf16 %v2636_v28, %v2632_v35  ;;  %v2640_v44 = vld [vmem:[%s11003_s3 + $0x110] sm:$0xff]  ;;  %v2647_v35 = vld [vmem:[%s11003_s3 + $0x148] sm:$0xff] }
 0x497   :  { %2507 = vmatprep.mubr.f32.mxu0 %v11247_v8  ;;  %5016 = vmatprep.mubr.msk.f32.mxu1 %vm6898_vm4, %v11247_v8  ;;  %v2644_v48 = vld [vmem:[%s11003_s3 + $0x130] sm:$0xff]  ;;  %v2651_v28 = vld [vmem:[%s11003_s3 + $0x168] sm:$0xff] }
 0x498   :  { %v9383_v10 = vpack.c.bf16 %v2644_v48, %v2640_v44  ;;  %v9397_v37 = vpack.c.bf16 %v2651_v28, %v2647_v35  ;;  %v9410_v44 = vpack.c.bf16 %v2650_v27, %v2646_v19  ;;  %v2648_v48 = vld [vmem:[%s11003_s3 + $0x150] sm:$0xff]  ;;  %v2659_v53 = vld [vmem:[%s11003_s3 + $0x1a8] sm:$0xff]  ;;  %v2657_v19 = vld [vmem:[%s11003_s3 + $0x198] sm:$0xff] }
 0x499   :  { %5923 = vmatpush1.bf16.msra.mxu0 %v9033_v43  ;;  %5953 = vmatpush3.bf16.msra.mxu1 %v9035_v62  ;;  %v2652_v35 = vld [vmem:[%s11003_s3 + $0x170] sm:$0xff]  ;;  %v9433_v27 = vpack.c.bf16 %v2659_v53, %v2655_v40 }
 0x49a   :  { %5925 = vmatprep.subr.bf16.mxu0 %v9042_v42  ;;  %5954 = vmatprep.subr.bf16.mxu1 %v11239_v54  ;;  %11390 = vst [vmem:[#allocation7_spill] sm:$0xff] %v9383_v10  ;;  %11391 = vst [vmem:[#allocation8_spill] sm:$0xff] %v9397_v37  ;;  %v9419_v28 = vpack.c.bf16 %v2652_v35, %v2648_v48  ;;  %v2661_v48 = vld [vmem:[%s11003_s3 + $0x1b8] sm:$0xff]  ;;  %v2654_v35 = vld [vmem:[%s11003_s3 + $0x180] sm:$0xff] }
 0x49b   :  { %11393 = vst [vmem:[#allocation10_spill] sm:$0xff] %v9410_v44  ;;  %11395 = vst [vmem:[#allocation12_spill] sm:$0xff] %v9433_v27  ;;  %v9444_v16 = vpack.c.bf16 %v2661_v48, %v2657_v19  ;;  %v2656_v40 = vld [vmem:[%s11003_s3 + $0x190] sm:$0xff]  ;;  %v2667_v19 = vld [vmem:[%s11003_s3 + $0x1e8] sm:$0xff] }
 0x49c   :  { %11394 = vst [vmem:[#allocation11_spill] sm:$0xff] %v9419_v28  ;;  %v2660_v53 = vld [vmem:[%s11003_s3 + $0x1b0] sm:$0xff]  ;;  %v2665_v48 = vld [vmem:[%s11003_s3 + $0x1d8] sm:$0xff] }
 0x49d   :  { %5927 = vmatpush1.bf16.msra.mxu0 %v9064_v26  ;;  %5956 = vmatpush3.bf16.msra.mxu1 %v9066_v45  ;;  %11396 = vst [vmem:[#allocation13_spill] sm:$0xff] %v9444_v16 }
 0x49e   :  { %5929 = vmatprep.subr.bf16.mxu0 %v9073_v56  ;;  %5957 = vmatprep.subr.bf16.mxu1 %v11239_v54 }
 0x4a1   :  { %5931 = vmatpush1.bf16.msra.mxu0 %v9092_v38  ;;  %5959 = vmatpush3.bf16.msra.mxu1 %v9094_v29 }
 0x4a2   :  { %5933 = vmatprep.subr.bf16.mxu0 %v9101_v7  ;;  %5960 = vmatprep.subr.bf16.mxu1 %v11239_v54 }
 0x4a5   :  { %5935 = vmatpush1.bf16.msra.mxu0 %v9120_v6  ;;  %5962 = vmatpush3.bf16.msra.mxu1 %v9122_v39 }
 0x4a6   :  { %5937 = vmatprep.subr.bf16.mxu0 %v9129_v0  ;;  %5963 = vmatprep.subr.bf16.mxu1 %v11239_v54 }
 0x4a9   :  { %5939 = vmatpush1.bf16.msra.mxu0 %v9148_v24  ;;  %5965 = vmatpush3.bf16.msra.mxu1 %v9150_v5 }
 0x4aa   :  { %5941 = vmatprep.subr.bf16.mxu0 %v9157_v61  ;;  %5966 = vmatprep.subr.bf16.mxu1 %v11239_v54 }
 0x4ad   :  { %5943 = vmatpush1.bf16.msra.mxu0 %v9176_v33  ;;  %5968 = vmatpush3.bf16.msra.mxu1 %v9178_v12 }
 0x4ae   :  { %5945 = vmatprep.subr.bf16.mxu0 %v9185_v22  ;;  %5969 = vmatprep.subr.bf16.mxu1 %v11239_v54 }
 0x4b1   :  { %5947 = vmatpush1.bf16.msra.mxu0 %v9198_v60  ;;  %5971 = vmatpush3.bf16.msra.mxu1 %v9200_v58 }
 0x4b2   :  { %5973 = vmatprep.subr.bf16.mxu0 %v9217_v11  ;;  %6037 = vmatprep.subr.bf16.mxu1 %v9228_v55 }
 0x4b4   :  { %2508 = vmatmul.mubr.f32.vlgmr.msra.gmra.mrb[8].mxu0 %v9010_v20  ;;  %5017 = vmatmul.mubr.f32.vlgmr.msra.gmra.mrb[26].mxu1 %v9010_v20 }
 0x4b5   :  { %5975 = vmatpush1.bf16.msra.mxu0 %v9230_v47  ;;  %6039 = vmatpush1.bf16.msra.mxu1 %v9239_v32 }
 0x4b6   :  { %5977 = vmatprep.subr.bf16.mxu0 %v9253_v25  ;;  %6041 = vmatprep.subr.bf16.mxu1 %v9264_v51 }
 0x4b9   :  { %5979 = vmatpush1.bf16.msra.mxu0 %v9266_v31  ;;  %6043 = vmatpush1.bf16.msra.mxu1 %v9275_v63 }
 0x4ba   :  { %5981 = vmatprep.subr.bf16.mxu0 %v9289_v46  ;;  %6045 = vmatprep.subr.bf16.mxu1 %v9300_v59 }
 0x4bd   :  { %5983 = vmatpush1.bf16.msra.mxu0 %v9302_v50  ;;  %6047 = vmatpush1.bf16.msra.mxu1 %v9311_v49 }
 0x4be   :  { %5985 = vmatprep.subr.bf16.mxu0 %v9325_v57  ;;  %6049 = vmatprep.subr.bf16.mxu1 %v9336_v14 }
 0x4c1   :  { %5987 = vmatpush1.bf16.msra.mxu0 %v9338_v9  ;;  %6051 = vmatpush1.bf16.msra.mxu1 %v9347_v1 }
 0x4c2   :  { %5989 = vmatprep.subr.bf16.mxu0 %v9361_v3  ;;  %6053 = vmatprep.subr.bf16.mxu1 %v9372_v17 }
 0x4c5   :  { %5991 = vmatpush1.bf16.msra.mxu0 %v9374_v30  ;;  %6055 = vmatpush1.bf16.msra.mxu1 %v9383_v10 }
 0x4c6   :  { %5993 = vmatprep.subr.bf16.mxu0 %v9397_v37  ;;  %6057 = vmatprep.subr.bf16.mxu1 %v9408_v18  ;;  %v2720_v37 = vld [vmem:[%s11003_s3 + $0x390] sm:$0xff] }
 0x4c9   :  { %5995 = vmatpush1.bf16.msra.mxu0 %v9410_v44  ;;  %6059 = vmatpush1.bf16.msra.mxu1 %v9419_v28  ;;  %v9446_v44 = vpack.c.bf16 %v2658_v23, %v2654_v35  ;;  %v9455_v28 = vpack.c.bf16 %v2660_v53, %v2656_v40  ;;  %v2663_v23 = vld [vmem:[%s11003_s3 + $0x1c8] sm:$0xff]  ;;  %v2669_v40 = vld [vmem:[%s11003_s3 + $0x1f8] sm:$0xff]  ;;  %v2662_v53 = vld [vmem:[%s11003_s3 + $0x1c0] sm:$0xff] }
 0x4ca   :  { %5997 = vmatprep.subr.bf16.mxu0 %v9433_v27  ;;  %6061 = vmatprep.subr.bf16.mxu1 %v9444_v16  ;;  %v9469_v35 = vpack.c.bf16 %v2667_v19, %v2663_v23  ;;  %v9480_v16 = vpack.c.bf16 %v2669_v40, %v2665_v48  ;;  %v2664_v23 = vld [vmem:[%s11003_s3 + $0x1d0] sm:$0xff]  ;;  %v2675_v48 = vld [vmem:[%s11003_s3 + $0x228] sm:$0xff]  ;;  %v2673_v40 = vld [vmem:[%s11003_s3 + $0x218] sm:$0xff] }
 0x4cb   :  { %11397 = vst [vmem:[#allocation14_spill] sm:$0xff] %v9446_v44  ;;  %11398 = vst [vmem:[#allocation15_spill] sm:$0xff] %v9455_v28  ;;  %v2668_v19 = vld [vmem:[%s11003_s3 + $0x1f0] sm:$0xff] }
 0x4cc   :  { %11399 = vst [vmem:[#allocation16_spill] sm:$0xff] %v9469_v35  ;;  %11400 = vst [vmem:[#allocation17_spill] sm:$0xff] %v9480_v16 }
 0x4cd   :  { %5999 = vmatpush1.bf16.msra.mxu0 %v9446_v44  ;;  %6063 = vmatpush1.bf16.msra.mxu1 %v9455_v28  ;;  %v2666_v44 = vld [vmem:[%s11003_s3 + $0x1e0] sm:$0xff]  ;;  %v9491_v28 = vpack.c.bf16 %v2668_v19, %v2664_v23  ;;  %v2677_v23 = vld [vmem:[%s11003_s3 + $0x238] sm:$0xff] }
 0x4ce   :  { %v9482_v27 = vpack.c.bf16 %v2666_v44, %v2662_v53  ;;  %6001 = vmatprep.subr.bf16.mxu0 %v9469_v35  ;;  %6065 = vmatprep.subr.bf16.mxu1 %v9480_v16  ;;  %v2671_v44 = vld [vmem:[%s11003_s3 + $0x208] sm:$0xff]  ;;  %v2670_v19 = vld [vmem:[%s11003_s3 + $0x200] sm:$0xff]  ;;  %v9516_v16 = vpack.c.bf16 %v2677_v23, %v2673_v40  ;;  %v2681_v23 = vld [vmem:[%s11003_s3 + $0x258] sm:$0xff] }
 0x4cf   :  { %11402 = vst [vmem:[#allocation19_spill] sm:$0xff] %v9491_v28  ;;  %v9505_v53 = vpack.c.bf16 %v2675_v48, %v2671_v44  ;;  %v2672_v44 = vld [vmem:[%s11003_s3 + $0x210] sm:$0xff]  ;;  %v2683_v40 = vld [vmem:[%s11003_s3 + $0x268] sm:$0xff] }
 0x4d0   :  { %11401 = vst [vmem:[#allocation18_spill] sm:$0xff] %v9482_v27  ;;  %11404 = vst [vmem:[#allocation21_spill] sm:$0xff] %v9516_v16  ;;  %v2676_v48 = vld [vmem:[%s11003_s3 + $0x230] sm:$0xff] }
 0x4d1   :  { %6003 = vmatpush1.bf16.msra.mxu0 %v9482_v27  ;;  %6067 = vmatpush1.bf16.msra.mxu1 %v9491_v28  ;;  %11403 = vst [vmem:[#allocation20_spill] sm:$0xff] %v9505_v53  ;;  %v2674_v27 = vld [vmem:[%s11003_s3 + $0x220] sm:$0xff]  ;;  %v9527_v28 = vpack.c.bf16 %v2676_v48, %v2672_v44  ;;  %v2685_v44 = vld [vmem:[%s11003_s3 + $0x278] sm:$0xff] }
 0x4d2   :  { %v9518_v35 = vpack.c.bf16 %v2674_v27, %v2670_v19  ;;  %6005 = vmatprep.subr.bf16.mxu0 %v9505_v53  ;;  %6069 = vmatprep.subr.bf16.mxu1 %v9516_v16  ;;  %v2679_v27 = vld [vmem:[%s11003_s3 + $0x248] sm:$0xff]  ;;  %v2678_v48 = vld [vmem:[%s11003_s3 + $0x240] sm:$0xff]  ;;  %v9552_v16 = vpack.c.bf16 %v2685_v44, %v2681_v23  ;;  %v2689_v44 = vld [vmem:[%s11003_s3 + $0x298] sm:$0xff] }
 0x4d3   :  { %11406 = vst [vmem:[#allocation23_spill] sm:$0xff] %v9527_v28  ;;  %v9541_v19 = vpack.c.bf16 %v2683_v40, %v2679_v27  ;;  %v2680_v27 = vld [vmem:[%s11003_s3 + $0x250] sm:$0xff]  ;;  %v2691_v23 = vld [vmem:[%s11003_s3 + $0x2a8] sm:$0xff] }
 0x4d4   :  { %11405 = vst [vmem:[#allocation22_spill] sm:$0xff] %v9518_v35  ;;  %11408 = vst [vmem:[#allocation25_spill] sm:$0xff] %v9552_v16  ;;  %v2684_v40 = vld [vmem:[%s11003_s3 + $0x270] sm:$0xff] }
 0x4d5   :  { %6007 = vmatpush1.bf16.msra.mxu0 %v9518_v35  ;;  %6071 = vmatpush1.bf16.msra.mxu1 %v9527_v28  ;;  %11407 = vst [vmem:[#allocation24_spill] sm:$0xff] %v9541_v19  ;;  %v2682_v35 = vld [vmem:[%s11003_s3 + $0x260] sm:$0xff]  ;;  %v9563_v28 = vpack.c.bf16 %v2684_v40, %v2680_v27  ;;  %v2693_v27 = vld [vmem:[%s11003_s3 + $0x2b8] sm:$0xff] }
 0x4d6   :  { %v9554_v53 = vpack.c.bf16 %v2682_v35, %v2678_v48  ;;  %6009 = vmatprep.subr.bf16.mxu0 %v9541_v19  ;;  %6073 = vmatprep.subr.bf16.mxu1 %v9552_v16  ;;  %v2687_v35 = vld [vmem:[%s11003_s3 + $0x288] sm:$0xff]  ;;  %v2686_v40 = vld [vmem:[%s11003_s3 + $0x280] sm:$0xff]  ;;  %v9588_v16 = vpack.c.bf16 %v2693_v27, %v2689_v44  ;;  %v2697_v27 = vld [vmem:[%s11003_s3 + $0x2d8] sm:$0xff] }
 0x4d7   :  { %11410 = vst [vmem:[#allocation27_spill] sm:$0xff] %v9563_v28  ;;  %v9577_v48 = vpack.c.bf16 %v2691_v23, %v2687_v35  ;;  %v2688_v35 = vld [vmem:[%s11003_s3 + $0x290] sm:$0xff]  ;;  %v2699_v44 = vld [vmem:[%s11003_s3 + $0x2e8] sm:$0xff] }
 0x4d8   :  { %11409 = vst [vmem:[#allocation26_spill] sm:$0xff] %v9554_v53  ;;  %11412 = vst [vmem:[#allocation29_spill] sm:$0xff] %v9588_v16  ;;  %v2692_v23 = vld [vmem:[%s11003_s3 + $0x2b0] sm:$0xff] }
 0x4d9   :  { %6011 = vmatpush1.bf16.msra.mxu0 %v9554_v53  ;;  %6075 = vmatpush1.bf16.msra.mxu1 %v9563_v28  ;;  %11411 = vst [vmem:[#allocation28_spill] sm:$0xff] %v9577_v48  ;;  %v2690_v53 = vld [vmem:[%s11003_s3 + $0x2a0] sm:$0xff]  ;;  %v9599_v28 = vpack.c.bf16 %v2692_v23, %v2688_v35  ;;  %v2701_v35 = vld [vmem:[%s11003_s3 + $0x2f8] sm:$0xff] }
 0x4da   :  { %v9590_v19 = vpack.c.bf16 %v2690_v53, %v2686_v40  ;;  %6013 = vmatprep.subr.bf16.mxu0 %v9577_v48  ;;  %6077 = vmatprep.subr.bf16.mxu1 %v9588_v16  ;;  %v2695_v53 = vld [vmem:[%s11003_s3 + $0x2c8] sm:$0xff]  ;;  %v2694_v23 = vld [vmem:[%s11003_s3 + $0x2c0] sm:$0xff]  ;;  %v9624_v16 = vpack.c.bf16 %v2701_v35, %v2697_v27  ;;  %v2705_v35 = vld [vmem:[%s11003_s3 + $0x318] sm:$0xff] }
 0x4db   :  { %11414 = vst [vmem:[#allocation31_spill] sm:$0xff] %v9599_v28  ;;  %v9613_v40 = vpack.c.bf16 %v2699_v44, %v2695_v53  ;;  %v2696_v53 = vld [vmem:[%s11003_s3 + $0x2d0] sm:$0xff]  ;;  %v2707_v27 = vld [vmem:[%s11003_s3 + $0x328] sm:$0xff] }
 0x4dc   :  { %11413 = vst [vmem:[#allocation30_spill] sm:$0xff] %v9590_v19  ;;  %11416 = vst [vmem:[#allocation33_spill] sm:$0xff] %v9624_v16  ;;  %v2700_v44 = vld [vmem:[%s11003_s3 + $0x2f0] sm:$0xff] }
 0x4dd   :  { %6015 = vmatpush1.bf16.msra.mxu0 %v9590_v19  ;;  %6079 = vmatpush1.bf16.msra.mxu1 %v9599_v28  ;;  %11415 = vst [vmem:[#allocation32_spill] sm:$0xff] %v9613_v40  ;;  %v2698_v19 = vld [vmem:[%s11003_s3 + $0x2e0] sm:$0xff]  ;;  %v9635_v28 = vpack.c.bf16 %v2700_v44, %v2696_v53  ;;  %v2709_v53 = vld [vmem:[%s11003_s3 + $0x338] sm:$0xff] }
 0x4de   :  { %v9626_v48 = vpack.c.bf16 %v2698_v19, %v2694_v23  ;;  %6017 = vmatprep.subr.bf16.mxu0 %v9613_v40  ;;  %6081 = vmatprep.subr.bf16.mxu1 %v9624_v16  ;;  %v2703_v19 = vld [vmem:[%s11003_s3 + $0x308] sm:$0xff]  ;;  %v2702_v44 = vld [vmem:[%s11003_s3 + $0x300] sm:$0xff]  ;;  %v9660_v16 = vpack.c.bf16 %v2709_v53, %v2705_v35  ;;  %v2713_v53 = vld [vmem:[%s11003_s3 + $0x358] sm:$0xff] }
 0x4df   :  { %11418 = vst [vmem:[#allocation35_spill] sm:$0xff] %v9635_v28  ;;  %v9649_v23 = vpack.c.bf16 %v2707_v27, %v2703_v19  ;;  %v2704_v19 = vld [vmem:[%s11003_s3 + $0x310] sm:$0xff]  ;;  %v2715_v35 = vld [vmem:[%s11003_s3 + $0x368] sm:$0xff] }
 0x4e0   :  { %11417 = vst [vmem:[#allocation34_spill] sm:$0xff] %v9626_v48  ;;  %11420 = vst [vmem:[#allocation37_spill] sm:$0xff] %v9660_v16  ;;  %v2708_v27 = vld [vmem:[%s11003_s3 + $0x330] sm:$0xff] }
 0x4e1   :  { %6019 = vmatpush1.bf16.msra.mxu0 %v9626_v48  ;;  %6083 = vmatpush1.bf16.msra.mxu1 %v9635_v28  ;;  %11419 = vst [vmem:[#allocation36_spill] sm:$0xff] %v9649_v23  ;;  %v2706_v48 = vld [vmem:[%s11003_s3 + $0x320] sm:$0xff]  ;;  %v9671_v28 = vpack.c.bf16 %v2708_v27, %v2704_v19  ;;  %v2717_v19 = vld [vmem:[%s11003_s3 + $0x378] sm:$0xff] }
 0x4e2   :  { %v9662_v40 = vpack.c.bf16 %v2706_v48, %v2702_v44  ;;  %6021 = vmatprep.subr.bf16.mxu0 %v9649_v23  ;;  %6085 = vmatprep.subr.bf16.mxu1 %v9660_v16  ;;  %v2711_v48 = vld [vmem:[%s11003_s3 + $0x348] sm:$0xff]  ;;  %v2710_v27 = vld [vmem:[%s11003_s3 + $0x340] sm:$0xff]  ;;  %v9696_v16 = vpack.c.bf16 %v2717_v19, %v2713_v53  ;;  %v2721_v53 = vld [vmem:[%s11003_s3 + $0x398] sm:$0xff] }
 0x4e3   :  { %11422 = vst [vmem:[#allocation39_spill] sm:$0xff] %v9671_v28  ;;  %v9685_v44 = vpack.c.bf16 %v2715_v35, %v2711_v48  ;;  %v2712_v48 = vld [vmem:[%s11003_s3 + $0x350] sm:$0xff]  ;;  %v2725_v19 = vld [vmem:[%s11003_s3 + $0x3b8] sm:$0xff] }
 0x4e4   :  { %11421 = vst [vmem:[#allocation38_spill] sm:$0xff] %v9662_v40  ;;  %11424 = vst [vmem:[#allocation41_spill] sm:$0xff] %v9696_v16  ;;  %v2716_v35 = vld [vmem:[%s11003_s3 + $0x370] sm:$0xff] }
 0x4e5   :  { %6023 = vmatpush1.bf16.msra.mxu0 %v9662_v40  ;;  %6087 = vmatpush1.bf16.msra.mxu1 %v9671_v28  ;;  %11423 = vst [vmem:[#allocation40_spill] sm:$0xff] %v9685_v44  ;;  %v2714_v40 = vld [vmem:[%s11003_s3 + $0x360] sm:$0xff]  ;;  %v2719_v28 = vld [vmem:[%s11003_s3 + $0x388] sm:$0xff]  ;;  %v9710_v18 = vpack.c.bf16 %v2716_v35, %v2712_v48  ;;  %v9725_v48 = vpack.c.bf16 %v2725_v19, %v2721_v53 }
 0x4e6   :  { %v9698_v23 = vpack.c.bf16 %v2714_v40, %v2710_v27  ;;  %6025 = vmatprep.subr.bf16.mxu0 %v9685_v44  ;;  %v2723_v40 = vld [vmem:[%s11003_s3 + $0x3a8] sm:$0xff]  ;;  %6089 = vmatprep.subr.bf16.mxu1 %v9696_v16  ;;  %v2718_v35 = vld [vmem:[%s11003_s3 + $0x380] sm:$0xff] }
 0x4e7   :  { %11426 = vst [vmem:[#allocation43_spill] sm:$0xff] %v9710_v18  ;;  %v9723_v27 = vpack.c.bf16 %v2723_v40, %v2719_v28  ;;  %11428 = vst [vmem:[#allocation51_spill] sm:$0xff] %v9725_v48  ;;  %v2722_v44 = vld [vmem:[%s11003_s3 + $0x3a0] sm:$0xff]  ;;  %v2724_v28 = vld [vmem:[%s11003_s3 + $0x3b0] sm:$0xff] }
 0x4e8   :  { %11425 = vst [vmem:[#allocation42_spill] sm:$0xff] %v9698_v23  ;;  %v9737_v16 = vpack.c.bf16 %v2722_v44, %v2718_v35  ;;  %v2727_v40 = vld [vmem:[%s11003_s3 + $0x3c8] sm:$0xff]  ;;  %v9750_v19 = vpack.c.bf16 %v2724_v28, %v2720_v37  ;;  %v2729_v35 = vld [vmem:[%s11003_s3 + $0x3d8] sm:$0xff]  ;;  %v2730_v37 = vld [vmem:[%s11003_s3 + $0x3e0] sm:$0xff] }
 0x4e9   :  { %6027 = vmatpush1.bf16.msra.mxu0 %v9698_v23  ;;  %11427 = vst [vmem:[#allocation44_spill] sm:$0xff] %v9723_v27  ;;  %6091 = vmatpush1.bf16.msra.mxu1 %v9710_v18  ;;  %v2731_v53 = vld [vmem:[%s11003_s3 + $0x3e8] sm:$0xff]  ;;  %v2733_v18 = vld [vmem:[%s11003_s3 + $0x3f8] sm:$0xff]  ;;  %v2726_v23 = vld [vmem:[%s11003_s3 + $0x3c0] sm:$0xff] }
 0x4ea   :  { %11429 = vst [vmem:[#allocation52_spill] sm:$0xff] %v9737_v16  ;;  %6029 = vmatprep.subr.bf16.mxu0 %v9723_v27  ;;  %6093 = vmatprep.subr.bf16.mxu1 %v9725_v48  ;;  %11430 = vst [vmem:[#allocation53_spill] sm:$0xff] %v9750_v19  ;;  %v9752_v44 = vpack.c.bf16 %v2731_v53, %v2727_v40  ;;  %v9763_v10 = vpack.c.bf16 %v2733_v18, %v2729_v35  ;;  %v2728_v28 = vld [vmem:[%s11003_s3 + $0x3d0] sm:$0xff] }
 0x4eb   :  { %v2732_v40 = vld [vmem:[%s11003_s3 + $0x3f0] sm:$0xff]  ;;  %v9775_v53 = vpack.c.bf16 %v2730_v37, %v2726_v23 }
 0x4ec   :  { %11431 = vst [vmem:[#allocation54_spill] sm:$0xff] %v9752_v44  ;;  %11432 = vst [vmem:[#allocation55_spill] sm:$0xff] %v9763_v10  ;;  %v9779_v18 = vpack.c.bf16 %v2732_v40, %v2728_v28 }
 0x4ed   :  { %6031 = vmatpush1.bf16.msra.mxu0 %v9737_v16  ;;  %11433 = vst [vmem:[#allocation56_spill] sm:$0xff] %v9775_v53  ;;  %6095 = vmatpush1.bf16.msra.mxu1 %v9750_v19 }
 0x4ee   :  { %6033 = vmatprep.subr.bf16.mxu0 %v9752_v44  ;;  %11434 = vst [vmem:[#allocation57_spill] sm:$0xff] %v9779_v18  ;;  %6097 = vmatprep.subr.bf16.mxu1 %v9763_v10 }
 0x4f1   :  { %6035 = vmatpush1.bf16.msra.mxu0 %v9775_v53  ;;  %6099 = vmatpush1.bf16.msra.mxu1 %v9779_v18 }
 0x4f2   :  { %6101 = vmatprep.subr.bf16.mxu0 %v8950_v21  ;;  %6132 = vmatprep.subr.bf16.mxu1 %v11239_v54 }
 0x567   :  { %v2288_v35 = vpop.f32.mrb[22].mxu0  ;;  %v2359_v16 = vpop.f32.mrb[24].mxu1 }
 0x568   :  { %v2364_v23 = vadd.f32 %v8956_v4, %v2288_v35  ;;  %v2290_v37 = vpop.f32.mrb[23].mxu0  ;;  %v2361_v19 = vpop.f32.mrb[25].mxu1  ;;  %v2378_v30 = vadd.f32 %v8974_v15, %v2359_v16 }
 0x569   :  { %v2371_v28 = vadd.f32 %v8962_v2, %v2290_v37  ;;  %v2379_v21 = vadd.f32 %v8968_v52, %v2361_v19 }
 0x56a   :  { %v4639_v48 = vmul.f32 -1.442695, %v2364_v23 }
 0x56b   :  { %v4640_v40 = vmul.f32 -1.442695, %v2371_v28 }
 0x56c   :  { %6774 = vpow2.f32 %v4639_v48 }
 0x56d   :  { %6776 = vpow2.f32 %v4640_v40 }
 0x576   :  { %v6775_v10 = vpop.eup %6774 }
 0x577   :  { %v2368_v53 = vadd.f32 1.0, %v6775_v10  ;;  %v6777_v18 = vpop.eup %6776 }
 0x578   :  { %v2375_v44 = vadd.f32 1.0, %v6777_v18 }
 0x579   :  { %6778 = vrcp.f32 %v2368_v53 }
 0x57a   :  { %6780 = vrcp.f32 %v2375_v44 }
 0x583   :  { %v6779_v27 = vpop.eup %6778 }
 0x584   :  { %v2380_v4 = vmul.f32 %v6779_v27, %v2379_v21  ;;  %v6781_v10 = vpop.eup %6780  ;;  %v9798_v27 = vld [vmem:[%s11004_s4] ss:$0 sm:$0xff] }
 0x585   :  { %v2383_v53 = vsub.f32 1.0, %v6781_v10  ;;  %v2385_v52 = vmul.f32 %v6781_v10, %v8978_v34 }
 0x586   :  { %v2381_v35 = vadd.f32 %v2380_v4, %v2378_v30 }
 0x587   :  { %v2509_v17 = vpop.f32.mrb[8].mxu0  ;;  %v2580_v23 = vpop.f32.mrb[26].mxu1 }
 0x588   :  { %6782 = vtanh.f32 %v2381_v35  ;;  %v4641_v2 = vmul.f32 -1.442695, %v2509_v17  ;;  %v2511_v48 = vpop.f32.mrb[9].mxu0  ;;  %v5018_v37 = vpop.f32.mrb[27].mxu1  ;;  %v2598_v44 = vadd.f32 %v9798_v27, %v2580_v23  ;;  %v11436_v35 = vld [vmem:[#allocation48_spill] sm:$0xff] }
 0x589   :  { %v4642_v28 = vmul.f32 -1.442695, %v2511_v48  ;;  %v11478_v23 = vld [vmem:[#allocation52_spill] sm:$0xff] }
 0x58a   :  { %6784 = vpow2.f32 %v4641_v2 }
 0x58b   :  { %6786 = vpow2.f32 %v4642_v28 }
 0x592   :  { %v6783_v18 = vpop.eup %6782 }
 0x593   :  { %v2384_v40 = vmul.f32 %v6783_v18, %v2383_v53 }
 0x594   :  { %v6785_v19 = vpop.eup %6784 }
 0x595   :  { %v2588_v16 = vadd.f32 1.0, %v6785_v19  ;;  %v9791_v15 = vadd.f32 %v2385_v52, %v2384_v40  ;;  %v6787_v17 = vpop.eup %6786  ;;  %v11479_v40 = vld [vmem:[#allocation53_spill] sm:$0xff]  ;;  %v11480_v52 = vld [vmem:[#allocation54_spill] sm:$0xff]  ;;  %v11481_v19 = vld [vmem:[#allocation55_spill] sm:$0xff] }
 0x596   :  { %v2595_v30 = vadd.f32 1.0, %v6787_v17  ;;  %v11483_v17 = vld [vmem:[#allocation57_spill] sm:$0xff] }
 0x597   :  { %11435 = vst [vmem:[#allocation45_spill] sm:$0xff] %v9791_v15  ;;  %6788 = vrcp.f32 %v2588_v16  ;;  %2798 = vmatprep.mubr.f32.mxu0 %v9791_v15  ;;  %2869 = vmatprep.mubr.f32.mxu1 %v9791_v15  ;;  %v11482_v16 = vld [vmem:[#allocation56_spill] sm:$0xff] }
 0x598   :  { %6790 = vrcp.f32 %v2595_v30  ;;  %v3420_v30 = vld [vmem:[%s11002_s2 + $0x8] sm:$0xff] }
 0x5a1   :  { %v6789_v21 = vpop.eup %6788 }
 0x5a2   :  { %v2599_v4 = vmul.f32 %v6789_v21, %v2598_v44  ;;  %v6791_v48 = vpop.eup %6790  ;;  %v3423_v44 = vld [vmem:[%s11002_s2 + $0x20] sm:$0xff] }
 0x5a3   :  { %v2602_v37 = vsub.f32 1.0, %v6791_v48  ;;  %v2604_v53 = vmul.f32 %v6791_v48, %v9010_v20  ;;  %v11439_v20 = vld [vmem:[#allocation7_spill] sm:$0xff]  ;;  %v9913_v21 = vpack.c.bf16 %v3423_v44, %v3420_v30 }
 0x5a4   :  { %v2600_v2 = vadd.f32 %v2599_v4, %v11436_v35 }
 0x5a6   :  { %6792 = vtanh.f32 %v2600_v2  ;;  %v9919_v2 = vld [vmem:[%s11004_s4 + $0x1] ss:$0 sm:$0xff] }
 0x5b0   :  { %v6793_v28 = vpop.eup %6792 }
 0x5b1   :  { %v2603_v10 = vmul.f32 %v6793_v28, %v2602_v37 }
 0x5b3   :  { %v9803_v18 = vadd.f32 %v2604_v53, %v2603_v10  ;;  %v9925_v53 = vld [vmem:[%s11004_s4 + $0x2] ss:$0 sm:$0xff] }
 0x5b5   :  { %2799 = vmatmul.mubr.f32.vlgmr.msra.gmra.mrb[24].mxu0 %v9803_v18  ;;  %2870 = vmatmul.mubr.f32.vlgmr.msra.gmra.mrb[28].mxu1 %v9803_v18 }
 0x5b6   :  { %6103 = vmatpush1.bf16.msra.mxu0 %v9003_v13  ;;  %6134 = vmatpush3.bf16.msra.mxu1 %v9005_v36  ;;  %v11437_v13 = vld [vmem:[#allocation5_spill] sm:$0xff]  ;;  %v11438_v36 = vld [vmem:[#allocation6_spill] sm:$0xff] }
 0x5b7   :  { %6105 = vmatprep.subr.bf16.mxu0 %v9012_v41  ;;  %6135 = vmatprep.subr.bf16.mxu1 %v11239_v54  ;;  %v11440_v41 = vld [vmem:[#allocation8_spill] sm:$0xff] }
 0x5b8   :  { %3019 = vmatprep.mubr.f32.mxu0 %v11247_v8  ;;  %5051 = vmatprep.mubr.msk.f32.mxu1 %vm6898_vm4, %v11247_v8 }
 0x5ba   :  { %6107 = vmatpush1.bf16.msra.mxu0 %v9033_v43  ;;  %6137 = vmatpush3.bf16.msra.mxu1 %v9035_v62  ;;  %v11441_v43 = vld [vmem:[#allocation9_spill] sm:$0xff]  ;;  %v11442_v62 = vld [vmem:[#allocation10_spill] sm:$0xff] }
 0x5bb   :  { %6109 = vmatprep.subr.bf16.mxu0 %v9042_v42  ;;  %6138 = vmatprep.subr.bf16.mxu1 %v11239_v54  ;;  %v11443_v42 = vld [vmem:[#allocation11_spill] sm:$0xff] }
 0x5be   :  { %6111 = vmatpush1.bf16.msra.mxu0 %v9064_v26  ;;  %6140 = vmatpush3.bf16.msra.mxu1 %v9066_v45  ;;  %v11444_v26 = vld [vmem:[#allocation12_spill] sm:$0xff]  ;;  %v11445_v45 = vld [vmem:[#allocation13_spill] sm:$0xff] }
 0x5bf   :  { %6113 = vmatprep.subr.bf16.mxu0 %v9073_v56  ;;  %6141 = vmatprep.subr.bf16.mxu1 %v11239_v54  ;;  %v11446_v56 = vld [vmem:[#allocation14_spill] sm:$0xff] }
 0x5c2   :  { %6115 = vmatpush1.bf16.msra.mxu0 %v9092_v38  ;;  %6143 = vmatpush3.bf16.msra.mxu1 %v9094_v29  ;;  %v11447_v38 = vld [vmem:[#allocation15_spill] sm:$0xff]  ;;  %v11448_v29 = vld [vmem:[#allocation16_spill] sm:$0xff] }
 0x5c3   :  { %6117 = vmatprep.subr.bf16.mxu0 %v9101_v7  ;;  %6144 = vmatprep.subr.bf16.mxu1 %v11239_v54  ;;  %v11449_v7 = vld [vmem:[#allocation17_spill] sm:$0xff] }
 0x5c6   :  { %6119 = vmatpush1.bf16.msra.mxu0 %v9120_v6  ;;  %6146 = vmatpush3.bf16.msra.mxu1 %v9122_v39  ;;  %v11450_v6 = vld [vmem:[#allocation18_spill] sm:$0xff]  ;;  %v11451_v39 = vld [vmem:[#allocation19_spill] sm:$0xff] }
 0x5c7   :  { %6121 = vmatprep.subr.bf16.mxu0 %v9129_v0  ;;  %6147 = vmatprep.subr.bf16.mxu1 %v11239_v54  ;;  %v11452_v0 = vld [vmem:[#allocation20_spill] sm:$0xff] }
 0x5ca   :  { %6123 = vmatpush1.bf16.msra.mxu0 %v9148_v24  ;;  %6149 = vmatpush3.bf16.msra.mxu1 %v9150_v5  ;;  %v11453_v24 = vld [vmem:[#allocation21_spill] sm:$0xff]  ;;  %v11454_v5 = vld [vmem:[#allocation22_spill] sm:$0xff] }
 0x5cb   :  { %6125 = vmatprep.subr.bf16.mxu0 %v9157_v61  ;;  %6150 = vmatprep.subr.bf16.mxu1 %v11239_v54  ;;  %v11455_v61 = vld [vmem:[#allocation23_spill] sm:$0xff] }
 0x5ce   :  { %6127 = vmatpush1.bf16.msra.mxu0 %v9176_v33  ;;  %6152 = vmatpush3.bf16.msra.mxu1 %v9178_v12  ;;  %v11456_v33 = vld [vmem:[#allocation24_spill] sm:$0xff]  ;;  %v11457_v12 = vld [vmem:[#allocation25_spill] sm:$0xff] }
 0x5cf   :  { %6129 = vmatprep.subr.bf16.mxu0 %v9185_v22  ;;  %6153 = vmatprep.subr.bf16.mxu1 %v11239_v54  ;;  %v11458_v22 = vld [vmem:[#allocation26_spill] sm:$0xff] }
 0x5d2   :  { %6131 = vmatpush1.bf16.msra.mxu0 %v9198_v60  ;;  %6155 = vmatpush3.bf16.msra.mxu1 %v9200_v58  ;;  %v11459_v60 = vld [vmem:[#allocation27_spill] sm:$0xff]  ;;  %v11460_v58 = vld [vmem:[#allocation28_spill] sm:$0xff] }
 0x5d3   :  { %6157 = vmatprep.subr.bf16.mxu0 %v9217_v11  ;;  %6221 = vmatprep.subr.bf16.mxu1 %v9228_v55  ;;  %v11461_v11 = vld [vmem:[#allocation29_spill] sm:$0xff]  ;;  %v11462_v55 = vld [vmem:[#allocation30_spill] sm:$0xff] }
 0x5d5   :  { %3020 = vmatmul.mubr.f32.vlgmr.msra.gmra.mrb[10].mxu0 %v9803_v18  ;;  %5052 = vmatmul.mubr.f32.vlgmr.msra.gmra.mrb[30].mxu1 %v9803_v18 }
 0x5d6   :  { %6159 = vmatpush1.bf16.msra.mxu0 %v9230_v47  ;;  %6223 = vmatpush1.bf16.msra.mxu1 %v9239_v32  ;;  %v11463_v47 = vld [vmem:[#allocation31_spill] sm:$0xff]  ;;  %v11464_v32 = vld [vmem:[#allocation32_spill] sm:$0xff] }
 0x5d7   :  { %6161 = vmatprep.subr.bf16.mxu0 %v9253_v25  ;;  %6225 = vmatprep.subr.bf16.mxu1 %v9264_v51  ;;  %v11465_v25 = vld [vmem:[#allocation33_spill] sm:$0xff]  ;;  %v11466_v51 = vld [vmem:[#allocation34_spill] sm:$0xff] }
 0x5da   :  { %6163 = vmatpush1.bf16.msra.mxu0 %v9266_v31  ;;  %6227 = vmatpush1.bf16.msra.mxu1 %v9275_v63  ;;  %v11467_v31 = vld [vmem:[#allocation35_spill] sm:$0xff]  ;;  %v11468_v63 = vld [vmem:[#allocation36_spill] sm:$0xff] }
 0x5db   :  { %6165 = vmatprep.subr.bf16.mxu0 %v9289_v46  ;;  %6229 = vmatprep.subr.bf16.mxu1 %v9300_v59  ;;  %v11469_v46 = vld [vmem:[#allocation37_spill] sm:$0xff]  ;;  %v11470_v59 = vld [vmem:[#allocation38_spill] sm:$0xff] }
 0x5de   :  { %6167 = vmatpush1.bf16.msra.mxu0 %v9302_v50  ;;  %6231 = vmatpush1.bf16.msra.mxu1 %v9311_v49  ;;  %v11471_v50 = vld [vmem:[#allocation39_spill] sm:$0xff]  ;;  %v11472_v49 = vld [vmem:[#allocation40_spill] sm:$0xff] }
 0x5df   :  { %6169 = vmatprep.subr.bf16.mxu0 %v9325_v57  ;;  %6233 = vmatprep.subr.bf16.mxu1 %v9336_v14  ;;  %v11473_v57 = vld [vmem:[#allocation41_spill] sm:$0xff]  ;;  %v11474_v14 = vld [vmem:[#allocation42_spill] sm:$0xff] }
 0x5e2   :  { %6171 = vmatpush1.bf16.msra.mxu0 %v9338_v9  ;;  %6235 = vmatpush1.bf16.msra.mxu1 %v9347_v1  ;;  %v11475_v9 = vld [vmem:[#allocation43_spill] sm:$0xff]  ;;  %v11476_v1 = vld [vmem:[#allocation44_spill] sm:$0xff] }
 0x5e3   :  { %6173 = vmatprep.subr.bf16.mxu0 %v9361_v3  ;;  %6237 = vmatprep.subr.bf16.mxu1 %v11437_v13  ;;  %v11477_v3 = vld [vmem:[#allocation51_spill] sm:$0xff] }
 0x5e6   :  { %6175 = vmatpush1.bf16.msra.mxu0 %v11438_v36  ;;  %6239 = vmatpush1.bf16.msra.mxu1 %v11439_v20 }
 0x5e7   :  { %6177 = vmatprep.subr.bf16.mxu0 %v11440_v41  ;;  %6241 = vmatprep.subr.bf16.mxu1 %v11441_v43 }
 0x5ea   :  { %6179 = vmatpush1.bf16.msra.mxu0 %v11442_v62  ;;  %6243 = vmatpush1.bf16.msra.mxu1 %v11443_v42  ;;  %v9931_v42 = vld [vmem:[%s11004_s4 + $0x4] ss:$0 sm:$0xff] }
 0x5eb   :  { %6181 = vmatprep.subr.bf16.mxu0 %v11444_v26  ;;  %6245 = vmatprep.subr.bf16.mxu1 %v11445_v45 }
 0x5ee   :  { %6183 = vmatpush1.bf16.msra.mxu0 %v11446_v56  ;;  %6247 = vmatpush1.bf16.msra.mxu1 %v11447_v38  ;;  %v9937_v56 = vld [vmem:[%s11004_s4 + $0x3] ss:$0 sm:$0xff] }
 0x5ef   :  { %6185 = vmatprep.subr.bf16.mxu0 %v11448_v29  ;;  %6249 = vmatprep.subr.bf16.mxu1 %v11449_v7 }
 0x5f2   :  { %6187 = vmatpush1.bf16.msra.mxu0 %v11450_v6  ;;  %6251 = vmatpush1.bf16.msra.mxu1 %v11451_v39 }
 0x5f3   :  { %6189 = vmatprep.subr.bf16.mxu0 %v11452_v0  ;;  %6253 = vmatprep.subr.bf16.mxu1 %v11453_v24 }
 0x5f6   :  { %6191 = vmatpush1.bf16.msra.mxu0 %v11454_v5  ;;  %6255 = vmatpush1.bf16.msra.mxu1 %v11455_v61 }
 0x5f7   :  { %6193 = vmatprep.subr.bf16.mxu0 %v11456_v33  ;;  %6257 = vmatprep.subr.bf16.mxu1 %v11457_v12 }
 0x5fa   :  { %6195 = vmatpush1.bf16.msra.mxu0 %v11458_v22  ;;  %6259 = vmatpush1.bf16.msra.mxu1 %v11459_v60 }
 0x5fb   :  { %6197 = vmatprep.subr.bf16.mxu0 %v11460_v58  ;;  %6261 = vmatprep.subr.bf16.mxu1 %v11461_v11 }
 0x5fe   :  { %6199 = vmatpush1.bf16.msra.mxu0 %v11462_v55  ;;  %6263 = vmatpush1.bf16.msra.mxu1 %v11463_v47 }
 0x5ff   :  { %6201 = vmatprep.subr.bf16.mxu0 %v11464_v32  ;;  %6265 = vmatprep.subr.bf16.mxu1 %v11465_v25 }
 0x602   :  { %6203 = vmatpush1.bf16.msra.mxu0 %v11466_v51  ;;  %6267 = vmatpush1.bf16.msra.mxu1 %v11467_v31 }
 0x603   :  { %6205 = vmatprep.subr.bf16.mxu0 %v11468_v63  ;;  %6269 = vmatprep.subr.bf16.mxu1 %v11469_v46  ;;  %v11484_v46 = vld [vmem:[#allocation47_spill] sm:$0xff] }
 0x606   :  { %6207 = vmatpush1.bf16.msra.mxu0 %v11470_v59  ;;  %6271 = vmatpush1.bf16.msra.mxu1 %v11471_v50 }
 0x607   :  { %6209 = vmatprep.subr.bf16.mxu0 %v11472_v49  ;;  %6273 = vmatprep.subr.bf16.mxu1 %v11473_v57  ;;  %v3419_v49 = vld [vmem:[%s11002_s2] sm:$0xff] }
 0x60a   :  { %6211 = vmatpush1.bf16.msra.mxu0 %v11474_v14  ;;  %6275 = vmatpush1.bf16.msra.mxu1 %v11475_v9  ;;  %v3422_v14 = vld [vmem:[%s11002_s2 + $0x18] sm:$0xff]  ;;  %v3424_v9 = vld [vmem:[%s11002_s2 + $0x28] sm:$0xff] }
 0x60b   :  { %6213 = vmatprep.subr.bf16.mxu0 %v11476_v1  ;;  %6277 = vmatprep.subr.bf16.mxu1 %v11477_v3  ;;  %v3426_v3 = vld [vmem:[%s11002_s2 + $0x38] sm:$0xff] }
 0x60e   :  { %6215 = vmatpush1.bf16.msra.mxu0 %v11478_v23  ;;  %6279 = vmatpush1.bf16.msra.mxu1 %v11479_v40  ;;  %v3429_v23 = vld [vmem:[%s11002_s2 + $0x50] sm:$0xff] }
 0x60f   :  { %6217 = vmatprep.subr.bf16.mxu0 %v11480_v52  ;;  %6281 = vmatprep.subr.bf16.mxu1 %v11481_v19  ;;  %v9966_v19 = vpack.c.bf16 %v3422_v14, %v3419_v49  ;;  %v9975_v44 = vpack.c.bf16 %v3429_v23, %v3426_v3  ;;  %v3456_v49 = vld [vmem:[%s11002_s2 + $0x128] sm:$0xff]  ;;  %v3458_v3 = vld [vmem:[%s11002_s2 + $0x138] sm:$0xff]  ;;  %v3457_v23 = vld [vmem:[%s11002_s2 + $0x130] sm:$0xff] }
 0x612   :  { %6219 = vmatpush1.bf16.msra.mxu0 %v11482_v16  ;;  %6283 = vmatpush1.bf16.msra.mxu1 %v11483_v17  ;;  %v3425_v17 = vld [vmem:[%s11002_s2 + $0x30] sm:$0xff] }
 0x613   :  { %6316 = vmatprep.subr.bf16.mxu1 %v11239_v54  ;;  %6285 = vmatprep.subr.bf16.mxu0 %v9913_v21 }
 0x688   :  { %v2800_v4 = vpop.f32.mrb[24].mxu0  ;;  %v2871_v35 = vpop.f32.mrb[28].mxu1 }
 0x689   :  { %v2876_v48 = vadd.f32 %v9919_v2, %v2800_v4  ;;  %v2802_v37 = vpop.f32.mrb[25].mxu0  ;;  %v2873_v28 = vpop.f32.mrb[29].mxu1  ;;  %v2890_v38 = vadd.f32 %v9937_v56, %v2871_v35  ;;  %v3428_v4 = vld [vmem:[%s11002_s2 + $0x48] sm:$0xff]  ;;  %v3430_v35 = vld [vmem:[%s11002_s2 + $0x58] sm:$0xff] }
 0x68a   :  { %v2883_v13 = vadd.f32 %v9925_v53, %v2802_v37  ;;  %v2891_v26 = vadd.f32 %v9931_v42, %v2873_v28  ;;  %v3435_v37 = vld [vmem:[%s11002_s2 + $0x80] sm:$0xff]  ;;  %v9996_v28 = vpack.c.bf16 %v3428_v4, %v3425_v17  ;;  %v3465_v17 = vld [vmem:[%s11002_s2 + $0x170] sm:$0xff] }
 0x68b   :  { %v4643_v10 = vmul.f32 -1.442695, %v2876_v48  ;;  %v3432_v48 = vld [vmem:[%s11002_s2 + $0x68] sm:$0xff] }
 0x68c   :  { %v4644_v36 = vmul.f32 -1.442695, %v2883_v13  ;;  %v3431_v13 = vld [vmem:[%s11002_s2 + $0x60] sm:$0xff] }
 0x68d   :  { %6794 = vpow2.f32 %v4643_v10 }
 0x68e   :  { %6796 = vpow2.f32 %v4644_v36  ;;  %v10005_v36 = vpack.c.bf16 %v3435_v37, %v3432_v48  ;;  %v3464_v37 = vld [vmem:[%s11002_s2 + $0x168] sm:$0xff] }
 0x697   :  { %v6795_v20 = vpop.eup %6794 }
 0x698   :  { %v2880_v41 = vadd.f32 1.0, %v6795_v20  ;;  %v6797_v43 = vpop.eup %6796  ;;  %v3434_v20 = vld [vmem:[%s11002_s2 + $0x78] sm:$0xff] }
 0x699   :  { %v2887_v62 = vadd.f32 1.0, %v6797_v43  ;;  %v3436_v43 = vld [vmem:[%s11002_s2 + $0x88] sm:$0xff] }
 0x69a   :  { %6798 = vrcp.f32 %v2880_v41  ;;  %v3433_v41 = vld [vmem:[%s11002_s2 + $0x70] sm:$0xff] }
 0x69b   :  { %6800 = vrcp.f32 %v2887_v62  ;;  %v3438_v62 = vld [vmem:[%s11002_s2 + $0x98] sm:$0xff] }
 0x6a4   :  { %v6799_v45 = vpop.eup %6798 }
 0x6a5   :  { %v2892_v29 = vmul.f32 %v6799_v45, %v2891_v26  ;;  %v6801_v33 = vpop.eup %6800  ;;  %v3441_v26 = vld [vmem:[%s11002_s2 + $0xb0] sm:$0xff]  ;;  %v10027_v45 = vpack.c.bf16 %v3434_v20, %v3431_v13  ;;  %v3463_v13 = vld [vmem:[%s11002_s2 + $0x160] sm:$0xff]  ;;  %v3466_v20 = vld [vmem:[%s11002_s2 + $0x178] sm:$0xff] }
 0x6a6   :  { %v2895_v12 = vsub.f32 1.0, %v6801_v33  ;;  %v2897_v58 = vmul.f32 %v6801_v33, %v9791_v15  ;;  %v3682_v15 = vld [vmem:[%s11003_s3 + $0x1a0] sm:$0xff] }
 0x6a7   :  { %v2893_v7 = vadd.f32 %v2892_v29, %v2890_v38  ;;  %v10029_v38 = vpack.c.bf16 %v3436_v43, %v3433_v41  ;;  %v3437_v29 = vld [vmem:[%s11002_s2 + $0x90] sm:$0xff]  ;;  %v10163_v43 = vpack.c.bf16 %v3466_v20, %v3463_v13  ;;  %v3653_v13 = vld [vmem:[%s11003_s3 + $0xb8] sm:$0xff]  ;;  %v3646_v20 = vld [vmem:[%s11003_s3 + $0x80] sm:$0xff] }
 0x6a8   :  { %v3021_v6 = vpop.f32.mrb[10].mxu0  ;;  %v3092_v39 = vpop.f32.mrb[30].mxu1 }
 0x6a9   :  { %6802 = vtanh.f32 %v2893_v7  ;;  %v4645_v0 = vmul.f32 -1.442695, %v3021_v6  ;;  %v3023_v24 = vpop.f32.mrb[11].mxu0  ;;  %v5053_v5 = vpop.f32.mrb[31].mxu1  ;;  %v3110_v51 = vadd.f32 %v9798_v27, %v3092_v39  ;;  %v3421_v27 = vld [vmem:[%s11002_s2 + $0x10] sm:$0xff]  ;;  %v10036_v7 = vpack.c.bf16 %v3441_v26, %v3438_v62  ;;  %v3440_v6 = vld [vmem:[%s11002_s2 + $0xa8] sm:$0xff] }
 0x6aa   :  { %v4646_v61 = vmul.f32 -1.442695, %v3023_v24  ;;  %v9968_v16 = vpack.c.bf16 %v3424_v9, %v3421_v27  ;;  %v3439_v39 = vld [vmem:[%s11002_s2 + $0xa0] sm:$0xff]  ;;  %v3444_v24 = vld [vmem:[%s11002_s2 + $0xc8] sm:$0xff] }
 0x6ab   :  { %6804 = vpow2.f32 %v4645_v0  ;;  %v3442_v0 = vld [vmem:[%s11002_s2 + $0xb8] sm:$0xff]  ;;  %v3447_v5 = vld [vmem:[%s11002_s2 + $0xe0] sm:$0xff]  ;;  %v3631_v62 = vld [vmem:[%s11003_s3 + $0x8] sm:$0xff] }
 0x6ac   :  { %6806 = vpow2.f32 %v4646_v61  ;;  %v10055_v61 = vpack.c.bf16 %v3440_v6, %v3437_v29  ;;  %v10057_v33 = vpack.c.bf16 %v3442_v0, %v3439_v39  ;;  %v3455_v9 = vld [vmem:[%s11002_s2 + $0x120] sm:$0xff]  ;;  %v3635_v26 = vld [vmem:[%s11003_s3 + $0x28] sm:$0xff]  ;;  %v3633_v29 = vld [vmem:[%s11003_s3 + $0x18] sm:$0xff] }
 0x6ad   :  { %v10139_v4 = vpack.c.bf16 %v3458_v3, %v3455_v9  ;;  %v10180_v6 = vpack.c.bf16 %v3635_v26, %v3631_v62  ;;  %v3637_v39 = vld [vmem:[%s11003_s3 + $0x38] sm:$0xff]  ;;  %v3630_v0 = vld [vmem:[%s11003_s3] sm:$0xff]  ;;  %v3640_v3 = vld [vmem:[%s11003_s3 + $0x50] sm:$0xff] }
 0x6ae   :  { %v3650_v62 = vld [vmem:[%s11003_s3 + $0xa0] sm:$0xff] }
 0x6b3   :  { %v6803_v22 = vpop.eup %6802 }
 0x6b4   :  { %v2896_v60 = vmul.f32 %v6803_v22, %v2895_v12  ;;  %v3443_v12 = vld [vmem:[%s11002_s2 + $0xc0] sm:$0xff]  ;;  %v10064_v22 = vpack.c.bf16 %v3447_v5, %v3444_v24  ;;  %v10191_v5 = vpack.c.bf16 %v3637_v39, %v3633_v29  ;;  %v10265_v29 = vpack.c.bf16 %v3650_v62, %v3646_v20  ;;  %v3648_v39 = vld [vmem:[%s11003_s3 + $0x90] sm:$0xff]  ;;  %v3665_v20 = vld [vmem:[%s11003_s3 + $0x118] sm:$0xff] }
 0x6b5   :  { %v6805_v11 = vpop.eup %6804  ;;  %v3634_v24 = vld [vmem:[%s11003_s3 + $0x20] sm:$0xff] }
 0x6b6   :  { %v3100_v55 = vadd.f32 1.0, %v6805_v11  ;;  %v9941_v47 = vadd.f32 %v2897_v58, %v2896_v60  ;;  %v6807_v32 = vpop.eup %6806  ;;  %v3446_v60 = vld [vmem:[%s11002_s2 + $0xd8] sm:$0xff]  ;;  %v3445_v58 = vld [vmem:[%s11002_s2 + $0xd0] sm:$0xff]  ;;  %v3448_v11 = vld [vmem:[%s11002_s2 + $0xe8] sm:$0xff] }
 0x6b7   :  { %v3107_v25 = vadd.f32 1.0, %v6807_v32  ;;  %v3453_v32 = vld [vmem:[%s11002_s2 + $0x110] sm:$0xff] }
 0x6b8   :  { %6808 = vrcp.f32 %v3100_v55  ;;  %3310 = vmatprep.mubr.f32.mxu0 %v9941_v47  ;;  %3381 = vmatprep.mubr.f32.mxu1 %v9941_v47  ;;  %v3450_v55 = vld [vmem:[%s11002_s2 + $0xf8] sm:$0xff] }
 0x6b9   :  { %6810 = vrcp.f32 %v3107_v25  ;;  %v10083_v25 = vpack.c.bf16 %v3446_v60, %v3443_v12  ;;  %v10193_v12 = vpack.c.bf16 %v3634_v24, %v3630_v0  ;;  %v3632_v60 = vld [vmem:[%s11003_s3 + $0x10] sm:$0xff] }
 0x6ba   :  { %v3652_v0 = vld [vmem:[%s11003_s3 + $0xb0] sm:$0xff] }
 0x6bb   :  { %v10274_v24 = vpack.c.bf16 %v3652_v0, %v3648_v39  ;;  %v3669_v39 = vld [vmem:[%s11003_s3 + $0x138] sm:$0xff]  ;;  %v3662_v0 = vld [vmem:[%s11003_s3 + $0x100] sm:$0xff] }
 0x6c2   :  { %v6809_v31 = vpop.eup %6808 }
 0x6c3   :  { %v3111_v63 = vmul.f32 %v6809_v31, %v3110_v51  ;;  %v6811_v50 = vpop.eup %6810  ;;  %v10085_v51 = vpack.c.bf16 %v3448_v11, %v3445_v58  ;;  %v3449_v31 = vld [vmem:[%s11002_s2 + $0xf0] sm:$0xff] }
 0x6c4   :  { %v3114_v57 = vsub.f32 1.0, %v6811_v50  ;;  %v3116_v52 = vmul.f32 %v6811_v50, %v9803_v18  ;;  %v3427_v18 = vld [vmem:[%s11002_s2 + $0x40] sm:$0xff]  ;;  %v3454_v50 = vld [vmem:[%s11002_s2 + $0x118] sm:$0xff]  ;;  %v3636_v58 = vld [vmem:[%s11003_s3 + $0x30] sm:$0xff] }
 0x6c5   :  { %v3112_v59 = vadd.f32 %v11484_v46, %v3111_v63  ;;  %v9998_v10 = vpack.c.bf16 %v3430_v35, %v3427_v18  ;;  %v10092_v63 = vpack.c.bf16 %v3453_v32, %v3450_v55  ;;  %v3452_v46 = vld [vmem:[%s11002_s2 + $0x108] sm:$0xff]  ;;  %v3461_v35 = vld [vmem:[%s11002_s2 + $0x150] sm:$0xff]  ;;  %v10202_v11 = vpack.c.bf16 %v3636_v58, %v3632_v60 }
 0x6c6   :  { %v10111_v14 = vpack.c.bf16 %v3452_v46, %v3449_v31  ;;  %v10161_v41 = vpack.c.bf16 %v3464_v37, %v3461_v35  ;;  %v3639_v55 = vld [vmem:[%s11003_s3 + $0x48] sm:$0xff]  ;;  %v3641_v31 = vld [vmem:[%s11003_s3 + $0x58] sm:$0xff] }
 0x6c7   :  { %6812 = vtanh.f32 %v3112_v59  ;;  %v3451_v59 = vld [vmem:[%s11002_s2 + $0x100] sm:$0xff]  ;;  %v3643_v32 = vld [vmem:[%s11003_s3 + $0x68] sm:$0xff]  ;;  %v3649_v35 = vld [vmem:[%s11003_s3 + $0x98] sm:$0xff] }
 0x6c8   :  { %v10113_v27 = vpack.c.bf16 %v3454_v50, %v3451_v59  ;;  %v10216_v46 = vpack.c.bf16 %v3643_v32, %v3639_v55  ;;  %v3645_v59 = vld [vmem:[%s11003_s3 + $0x78] sm:$0xff]  ;;  %v3638_v50 = vld [vmem:[%s11003_s3 + $0x40] sm:$0xff]  ;;  %v10263_v26 = vpack.c.bf16 %v3653_v13, %v3649_v35  ;;  %v3655_v60 = vld [vmem:[%s11003_s3 + $0xc8] sm:$0xff] }
 0x6c9   :  { %v3659_v58 = vld [vmem:[%s11003_s3 + $0xe8] sm:$0xff]  ;;  %v3657_v55 = vld [vmem:[%s11003_s3 + $0xd8] sm:$0xff] }
 0x6ca   :  { %v10288_v32 = vpack.c.bf16 %v3659_v58, %v3655_v60  ;;  %v3663_v35 = vld [vmem:[%s11003_s3 + $0x108] sm:$0xff]  ;;  %v3666_v60 = vld [vmem:[%s11003_s3 + $0x120] sm:$0xff]  ;;  %v10335_v58 = vpack.c.bf16 %v3669_v39, %v3665_v20  ;;  %v3677_v20 = vld [vmem:[%s11003_s3 + $0x178] sm:$0xff] }
 0x6cb   :  { %v3667_v13 = vld [vmem:[%s11003_s3 + $0x128] sm:$0xff]  ;;  %v3670_v39 = vld [vmem:[%s11003_s3 + $0x140] sm:$0xff] }
 0x6cc   :  { %v10324_v62 = vpack.c.bf16 %v3667_v13, %v3663_v35  ;;  %11485 = vst [vmem:[#allocation48_spill] sm:$0xff] %v10335_v58  ;;  %v3673_v35 = vld [vmem:[%s11003_s3 + $0x158] sm:$0xff] }
 0x6d1   :  { %v6813_v1 = vpop.eup %6812 }
 0x6d2   :  { %v3115_v40 = vmul.f32 %v6813_v1, %v3114_v57  ;;  %v3459_v57 = vld [vmem:[%s11002_s2 + $0x140] sm:$0xff] }
 0x6d3   :  { %v10120_v1 = vpack.c.bf16 %v3459_v57, %v3456_v49  ;;  %v3642_v49 = vld [vmem:[%s11003_s3 + $0x60] sm:$0xff]  ;;  %v10227_v57 = vpack.c.bf16 %v3645_v59, %v3641_v31  ;;  %v3661_v31 = vld [vmem:[%s11003_s3 + $0xf8] sm:$0xff] }
 0x6d4   :  { %v9973_v30 = vadd.f32 %v3116_v52, %v3115_v40  ;;  %v3460_v40 = vld [vmem:[%s11002_s2 + $0x148] sm:$0xff]  ;;  %v3462_v52 = vld [vmem:[%s11002_s2 + $0x158] sm:$0xff]  ;;  %v10229_v9 = vpack.c.bf16 %v3642_v49, %v3638_v50  ;;  %v3654_v59 = vld [vmem:[%s11003_s3 + $0xc0] sm:$0xff]  ;;  %v10299_v49 = vpack.c.bf16 %v3661_v31, %v3657_v55  ;;  %v10337_v55 = vpack.c.bf16 %v3666_v60, %v3662_v0 }
 0x6d5   :  { %v10141_v18 = vpack.c.bf16 %v3460_v40, %v3457_v23  ;;  %v10148_v48 = vpack.c.bf16 %v3465_v17, %v3462_v52  ;;  %v3644_v23 = vld [vmem:[%s11003_s3 + $0x70] sm:$0xff]  ;;  %v3647_v52 = vld [vmem:[%s11003_s3 + $0x88] sm:$0xff]  ;;  %v3658_v50 = vld [vmem:[%s11003_s3 + $0xe0] sm:$0xff]  ;;  %v10371_v60 = vpack.c.bf16 %v3677_v20, %v3673_v35 }
 0x6d6   :  { %3311 = vmatmul.mubr.f32.vlgmr.msra.gmra.mrb[26].mxu0 %v9973_v30  ;;  %3382 = vmatmul.mubr.f32.vlgmr.msra.gmra.mrb[32].mxu1 %v9973_v30  ;;  %v10238_v40 = vpack.c.bf16 %v3644_v23, %v3640_v3  ;;  %v3651_v17 = vld [vmem:[%s11003_s3 + $0xa8] sm:$0xff]  ;;  %v10301_v3 = vpack.c.bf16 %v3658_v50, %v3654_v59  ;;  %v3656_v23 = vld [vmem:[%s11003_s3 + $0xd0] sm:$0xff]  ;;  %11486 = vst [vmem:[#allocation5_spill] sm:$0xff] %v10337_v55  ;;  %v3674_v0 = vld [vmem:[%s11003_s3 + $0x160] sm:$0xff] }
 0x6d7   :  { %6287 = vmatpush1.bf16.msra.mxu0 %v9966_v19  ;;  %6318 = vmatpush3.bf16.msra.mxu1 %v9968_v16  ;;  %v10252_v37 = vpack.c.bf16 %v3651_v17, %v3647_v52  ;;  %v3660_v52 = vld [vmem:[%s11003_s3 + $0xf0] sm:$0xff]  ;;  %11489 = vst [vmem:[#allocation8_spill] sm:$0xff] %v10371_v60  ;;  %v3679_v35 = vld [vmem:[%s11003_s3 + $0x188] sm:$0xff] }
 0x6d8   :  { %6289 = vmatprep.subr.bf16.mxu0 %v9975_v44  ;;  %6319 = vmatprep.subr.bf16.mxu1 %v11239_v54  ;;  %v10310_v17 = vpack.c.bf16 %v3660_v52, %v3656_v23  ;;  %v3664_v31 = vld [vmem:[%s11003_s3 + $0x110] sm:$0xff]  ;;  %v3671_v23 = vld [vmem:[%s11003_s3 + $0x148] sm:$0xff] }
 0x6d9   :  { %3531 = vmatprep.mubr.f32.mxu0 %v11247_v8  ;;  %5086 = vmatprep.mubr.msk.f32.mxu1 %vm6898_vm4, %v11247_v8  ;;  %v3668_v59 = vld [vmem:[%s11003_s3 + $0x130] sm:$0xff]  ;;  %v3675_v52 = vld [vmem:[%s11003_s3 + $0x168] sm:$0xff] }
 0x6da   :  { %v10346_v50 = vpack.c.bf16 %v3668_v59, %v3664_v31  ;;  %v10360_v13 = vpack.c.bf16 %v3675_v52, %v3671_v23  ;;  %v10373_v31 = vpack.c.bf16 %v3674_v0, %v3670_v39  ;;  %v3672_v59 = vld [vmem:[%s11003_s3 + $0x150] sm:$0xff]  ;;  %v3683_v20 = vld [vmem:[%s11003_s3 + $0x1a8] sm:$0xff]  ;;  %v3681_v39 = vld [vmem:[%s11003_s3 + $0x198] sm:$0xff] }
 0x6db   :  { %6291 = vmatpush1.bf16.msra.mxu0 %v9996_v28  ;;  %6321 = vmatpush3.bf16.msra.mxu1 %v9998_v10  ;;  %v3676_v23 = vld [vmem:[%s11003_s3 + $0x170] sm:$0xff]  ;;  %v10396_v0 = vpack.c.bf16 %v3683_v20, %v3679_v35 }
 0x6dc   :  { %6293 = vmatprep.subr.bf16.mxu0 %v10005_v36  ;;  %6322 = vmatprep.subr.bf16.mxu1 %v11239_v54  ;;  %11487 = vst [vmem:[#allocation6_spill] sm:$0xff] %v10346_v50  ;;  %11488 = vst [vmem:[#allocation7_spill] sm:$0xff] %v10360_v13  ;;  %v10382_v52 = vpack.c.bf16 %v3676_v23, %v3672_v59  ;;  %v3685_v59 = vld [vmem:[%s11003_s3 + $0x1b8] sm:$0xff]  ;;  %v3678_v23 = vld [vmem:[%s11003_s3 + $0x180] sm:$0xff] }
 0x6dd   :  { %11490 = vst [vmem:[#allocation9_spill] sm:$0xff] %v10373_v31  ;;  %11492 = vst [vmem:[#allocation11_spill] sm:$0xff] %v10396_v0  ;;  %v10407_v34 = vpack.c.bf16 %v3685_v59, %v3681_v39  ;;  %v3680_v35 = vld [vmem:[%s11003_s3 + $0x190] sm:$0xff]  ;;  %v3691_v39 = vld [vmem:[%s11003_s3 + $0x1e8] sm:$0xff] }
 0x6de   :  { %11491 = vst [vmem:[#allocation10_spill] sm:$0xff] %v10382_v52  ;;  %v3684_v20 = vld [vmem:[%s11003_s3 + $0x1b0] sm:$0xff]  ;;  %v3689_v59 = vld [vmem:[%s11003_s3 + $0x1d8] sm:$0xff] }
 0x6df   :  { %6295 = vmatpush1.bf16.msra.mxu0 %v10027_v45  ;;  %6324 = vmatpush3.bf16.msra.mxu1 %v10029_v38  ;;  %11493 = vst [vmem:[#allocation12_spill] sm:$0xff] %v10407_v34 }
 0x6e0   :  { %6297 = vmatprep.subr.bf16.mxu0 %v10036_v7  ;;  %6325 = vmatprep.subr.bf16.mxu1 %v11239_v54 }
 0x6e3   :  { %6299 = vmatpush1.bf16.msra.mxu0 %v10055_v61  ;;  %6327 = vmatpush3.bf16.msra.mxu1 %v10057_v33 }
 0x6e4   :  { %6301 = vmatprep.subr.bf16.mxu0 %v10064_v22  ;;  %6328 = vmatprep.subr.bf16.mxu1 %v11239_v54 }
 0x6e7   :  { %6303 = vmatpush1.bf16.msra.mxu0 %v10083_v25  ;;  %6330 = vmatpush3.bf16.msra.mxu1 %v10085_v51 }
 0x6e8   :  { %6305 = vmatprep.subr.bf16.mxu0 %v10092_v63  ;;  %6331 = vmatprep.subr.bf16.mxu1 %v11239_v54 }
 0x6eb   :  { %6307 = vmatpush1.bf16.msra.mxu0 %v10111_v14  ;;  %6333 = vmatpush3.bf16.msra.mxu1 %v10113_v27 }
 0x6ec   :  { %6309 = vmatprep.subr.bf16.mxu0 %v10120_v1  ;;  %6334 = vmatprep.subr.bf16.mxu1 %v11239_v54 }
 0x6ef   :  { %6311 = vmatpush1.bf16.msra.mxu0 %v10139_v4  ;;  %6336 = vmatpush3.bf16.msra.mxu1 %v10141_v18 }
 0x6f0   :  { %6313 = vmatprep.subr.bf16.mxu0 %v10148_v48  ;;  %6337 = vmatprep.subr.bf16.mxu1 %v11239_v54 }
 0x6f3   :  { %6315 = vmatpush1.bf16.msra.mxu0 %v10161_v41  ;;  %6339 = vmatpush3.bf16.msra.mxu1 %v10163_v43 }
 0x6f4   :  { %6341 = vmatprep.subr.bf16.mxu0 %v10180_v6  ;;  %6405 = vmatprep.subr.bf16.mxu1 %v10191_v5 }
 0x6f6   :  { %3532 = vmatmul.mubr.f32.vlgmr.msra.gmra.mrb[12].mxu0 %v9973_v30  ;;  %5087 = vmatmul.mubr.f32.vlgmr.msra.gmra.mrb[34].mxu1 %v9973_v30 }
 0x6f7   :  { %6343 = vmatpush1.bf16.msra.mxu0 %v10193_v12  ;;  %6407 = vmatpush1.bf16.msra.mxu1 %v10202_v11 }
 0x6f8   :  { %6345 = vmatprep.subr.bf16.mxu0 %v10216_v46  ;;  %6409 = vmatprep.subr.bf16.mxu1 %v10227_v57 }
 0x6fb   :  { %6347 = vmatpush1.bf16.msra.mxu0 %v10229_v9  ;;  %6411 = vmatpush1.bf16.msra.mxu1 %v10238_v40 }
 0x6fc   :  { %6349 = vmatprep.subr.bf16.mxu0 %v10252_v37  ;;  %6413 = vmatprep.subr.bf16.mxu1 %v10263_v26 }
 0x6ff   :  { %6351 = vmatpush1.bf16.msra.mxu0 %v10265_v29  ;;  %6415 = vmatpush1.bf16.msra.mxu1 %v10274_v24 }
 0x700   :  { %6353 = vmatprep.subr.bf16.mxu0 %v10288_v32  ;;  %6417 = vmatprep.subr.bf16.mxu1 %v10299_v49 }
 0x703   :  { %6355 = vmatpush1.bf16.msra.mxu0 %v10301_v3  ;;  %6419 = vmatpush1.bf16.msra.mxu1 %v10310_v17 }
 0x704   :  { %6357 = vmatprep.subr.bf16.mxu0 %v10324_v62  ;;  %6421 = vmatprep.subr.bf16.mxu1 %v10335_v58 }
 0x707   :  { %6359 = vmatpush1.bf16.msra.mxu0 %v10337_v55  ;;  %6423 = vmatpush1.bf16.msra.mxu1 %v10346_v50 }
 0x708   :  { %6361 = vmatprep.subr.bf16.mxu0 %v10360_v13  ;;  %6425 = vmatprep.subr.bf16.mxu1 %v10371_v60  ;;  %v3744_v13 = vld [vmem:[%s11003_s3 + $0x390] sm:$0xff] }
 0x70b   :  { %6363 = vmatpush1.bf16.msra.mxu0 %v10373_v31  ;;  %6427 = vmatpush1.bf16.msra.mxu1 %v10382_v52  ;;  %v10409_v31 = vpack.c.bf16 %v3682_v15, %v3678_v23  ;;  %v10418_v52 = vpack.c.bf16 %v3684_v20, %v3680_v35  ;;  %v3687_v15 = vld [vmem:[%s11003_s3 + $0x1c8] sm:$0xff]  ;;  %v3693_v35 = vld [vmem:[%s11003_s3 + $0x1f8] sm:$0xff]  ;;  %v3686_v20 = vld [vmem:[%s11003_s3 + $0x1c0] sm:$0xff] }
 0x70c   :  { %6365 = vmatprep.subr.bf16.mxu0 %v10396_v0  ;;  %6429 = vmatprep.subr.bf16.mxu1 %v10407_v34  ;;  %v10432_v23 = vpack.c.bf16 %v3691_v39, %v3687_v15  ;;  %v10443_v34 = vpack.c.bf16 %v3693_v35, %v3689_v59  ;;  %v3688_v15 = vld [vmem:[%s11003_s3 + $0x1d0] sm:$0xff]  ;;  %v3699_v59 = vld [vmem:[%s11003_s3 + $0x228] sm:$0xff]  ;;  %v3697_v35 = vld [vmem:[%s11003_s3 + $0x218] sm:$0xff] }
 0x70d   :  { %11494 = vst [vmem:[#allocation13_spill] sm:$0xff] %v10409_v31  ;;  %11495 = vst [vmem:[#allocation14_spill] sm:$0xff] %v10418_v52  ;;  %v3692_v39 = vld [vmem:[%s11003_s3 + $0x1f0] sm:$0xff] }
 0x70e   :  { %11496 = vst [vmem:[#allocation15_spill] sm:$0xff] %v10432_v23  ;;  %11497 = vst [vmem:[#allocation16_spill] sm:$0xff] %v10443_v34 }
 0x70f   :  { %6367 = vmatpush1.bf16.msra.mxu0 %v10409_v31  ;;  %6431 = vmatpush1.bf16.msra.mxu1 %v10418_v52  ;;  %v3690_v31 = vld [vmem:[%s11003_s3 + $0x1e0] sm:$0xff]  ;;  %v10454_v52 = vpack.c.bf16 %v3692_v39, %v3688_v15  ;;  %v3701_v15 = vld [vmem:[%s11003_s3 + $0x238] sm:$0xff] }
 0x710   :  { %v10445_v0 = vpack.c.bf16 %v3690_v31, %v3686_v20  ;;  %6369 = vmatprep.subr.bf16.mxu0 %v10432_v23  ;;  %6433 = vmatprep.subr.bf16.mxu1 %v10443_v34  ;;  %v3695_v31 = vld [vmem:[%s11003_s3 + $0x208] sm:$0xff]  ;;  %v3694_v39 = vld [vmem:[%s11003_s3 + $0x200] sm:$0xff]  ;;  %v10479_v34 = vpack.c.bf16 %v3701_v15, %v3697_v35  ;;  %v3705_v15 = vld [vmem:[%s11003_s3 + $0x258] sm:$0xff] }
 0x711   :  { %11499 = vst [vmem:[#allocation18_spill] sm:$0xff] %v10454_v52  ;;  %v10468_v20 = vpack.c.bf16 %v3699_v59, %v3695_v31  ;;  %v3696_v31 = vld [vmem:[%s11003_s3 + $0x210] sm:$0xff]  ;;  %v3707_v35 = vld [vmem:[%s11003_s3 + $0x268] sm:$0xff] }
 0x712   :  { %11498 = vst [vmem:[#allocation17_spill] sm:$0xff] %v10445_v0  ;;  %11501 = vst [vmem:[#allocation20_spill] sm:$0xff] %v10479_v34  ;;  %v3700_v59 = vld [vmem:[%s11003_s3 + $0x230] sm:$0xff] }
 0x713   :  { %6371 = vmatpush1.bf16.msra.mxu0 %v10445_v0  ;;  %6435 = vmatpush1.bf16.msra.mxu1 %v10454_v52  ;;  %11500 = vst [vmem:[#allocation19_spill] sm:$0xff] %v10468_v20  ;;  %v3698_v0 = vld [vmem:[%s11003_s3 + $0x220] sm:$0xff]  ;;  %v10490_v52 = vpack.c.bf16 %v3700_v59, %v3696_v31  ;;  %v3709_v31 = vld [vmem:[%s11003_s3 + $0x278] sm:$0xff] }
 0x714   :  { %v10481_v23 = vpack.c.bf16 %v3698_v0, %v3694_v39  ;;  %6373 = vmatprep.subr.bf16.mxu0 %v10468_v20  ;;  %6437 = vmatprep.subr.bf16.mxu1 %v10479_v34  ;;  %v3703_v0 = vld [vmem:[%s11003_s3 + $0x248] sm:$0xff]  ;;  %v3702_v59 = vld [vmem:[%s11003_s3 + $0x240] sm:$0xff]  ;;  %v10515_v34 = vpack.c.bf16 %v3709_v31, %v3705_v15  ;;  %v3713_v31 = vld [vmem:[%s11003_s3 + $0x298] sm:$0xff] }
 0x715   :  { %11503 = vst [vmem:[#allocation22_spill] sm:$0xff] %v10490_v52  ;;  %v10504_v39 = vpack.c.bf16 %v3707_v35, %v3703_v0  ;;  %v3704_v0 = vld [vmem:[%s11003_s3 + $0x250] sm:$0xff]  ;;  %v3715_v15 = vld [vmem:[%s11003_s3 + $0x2a8] sm:$0xff] }
 0x716   :  { %11502 = vst [vmem:[#allocation21_spill] sm:$0xff] %v10481_v23  ;;  %11505 = vst [vmem:[#allocation24_spill] sm:$0xff] %v10515_v34  ;;  %v3708_v35 = vld [vmem:[%s11003_s3 + $0x270] sm:$0xff] }
 0x717   :  { %6375 = vmatpush1.bf16.msra.mxu0 %v10481_v23  ;;  %6439 = vmatpush1.bf16.msra.mxu1 %v10490_v52  ;;  %11504 = vst [vmem:[#allocation23_spill] sm:$0xff] %v10504_v39  ;;  %v3706_v23 = vld [vmem:[%s11003_s3 + $0x260] sm:$0xff]  ;;  %v10526_v52 = vpack.c.bf16 %v3708_v35, %v3704_v0  ;;  %v3717_v0 = vld [vmem:[%s11003_s3 + $0x2b8] sm:$0xff] }
 0x718   :  { %v10517_v20 = vpack.c.bf16 %v3706_v23, %v3702_v59  ;;  %6377 = vmatprep.subr.bf16.mxu0 %v10504_v39  ;;  %6441 = vmatprep.subr.bf16.mxu1 %v10515_v34  ;;  %v3711_v23 = vld [vmem:[%s11003_s3 + $0x288] sm:$0xff]  ;;  %v3710_v35 = vld [vmem:[%s11003_s3 + $0x280] sm:$0xff]  ;;  %v10551_v34 = vpack.c.bf16 %v3717_v0, %v3713_v31  ;;  %v3721_v0 = vld [vmem:[%s11003_s3 + $0x2d8] sm:$0xff] }
 0x719   :  { %11507 = vst [vmem:[#allocation26_spill] sm:$0xff] %v10526_v52  ;;  %v10540_v59 = vpack.c.bf16 %v3715_v15, %v3711_v23  ;;  %v3712_v23 = vld [vmem:[%s11003_s3 + $0x290] sm:$0xff]  ;;  %v3723_v31 = vld [vmem:[%s11003_s3 + $0x2e8] sm:$0xff] }
 0x71a   :  { %11506 = vst [vmem:[#allocation25_spill] sm:$0xff] %v10517_v20  ;;  %11509 = vst [vmem:[#allocation28_spill] sm:$0xff] %v10551_v34  ;;  %v3716_v15 = vld [vmem:[%s11003_s3 + $0x2b0] sm:$0xff] }
 0x71b   :  { %6379 = vmatpush1.bf16.msra.mxu0 %v10517_v20  ;;  %6443 = vmatpush1.bf16.msra.mxu1 %v10526_v52  ;;  %11508 = vst [vmem:[#allocation27_spill] sm:$0xff] %v10540_v59  ;;  %v3714_v20 = vld [vmem:[%s11003_s3 + $0x2a0] sm:$0xff]  ;;  %v10562_v52 = vpack.c.bf16 %v3716_v15, %v3712_v23  ;;  %v3725_v23 = vld [vmem:[%s11003_s3 + $0x2f8] sm:$0xff] }
 0x71c   :  { %v10553_v39 = vpack.c.bf16 %v3714_v20, %v3710_v35  ;;  %6381 = vmatprep.subr.bf16.mxu0 %v10540_v59  ;;  %6445 = vmatprep.subr.bf16.mxu1 %v10551_v34  ;;  %v3719_v20 = vld [vmem:[%s11003_s3 + $0x2c8] sm:$0xff]  ;;  %v3718_v15 = vld [vmem:[%s11003_s3 + $0x2c0] sm:$0xff]  ;;  %v10587_v34 = vpack.c.bf16 %v3725_v23, %v3721_v0  ;;  %v3729_v23 = vld [vmem:[%s11003_s3 + $0x318] sm:$0xff] }
 0x71d   :  { %11511 = vst [vmem:[#allocation30_spill] sm:$0xff] %v10562_v52  ;;  %v10576_v35 = vpack.c.bf16 %v3723_v31, %v3719_v20  ;;  %v3720_v20 = vld [vmem:[%s11003_s3 + $0x2d0] sm:$0xff]  ;;  %v3731_v0 = vld [vmem:[%s11003_s3 + $0x328] sm:$0xff] }
 0x71e   :  { %11510 = vst [vmem:[#allocation29_spill] sm:$0xff] %v10553_v39  ;;  %11513 = vst [vmem:[#allocation32_spill] sm:$0xff] %v10587_v34  ;;  %v3724_v31 = vld [vmem:[%s11003_s3 + $0x2f0] sm:$0xff] }
 0x71f   :  { %6383 = vmatpush1.bf16.msra.mxu0 %v10553_v39  ;;  %6447 = vmatpush1.bf16.msra.mxu1 %v10562_v52  ;;  %11512 = vst [vmem:[#allocation31_spill] sm:$0xff] %v10576_v35  ;;  %v3722_v39 = vld [vmem:[%s11003_s3 + $0x2e0] sm:$0xff]  ;;  %v10598_v52 = vpack.c.bf16 %v3724_v31, %v3720_v20  ;;  %v3733_v20 = vld [vmem:[%s11003_s3 + $0x338] sm:$0xff] }
 0x720   :  { %v10589_v59 = vpack.c.bf16 %v3722_v39, %v3718_v15  ;;  %6385 = vmatprep.subr.bf16.mxu0 %v10576_v35  ;;  %6449 = vmatprep.subr.bf16.mxu1 %v10587_v34  ;;  %v3727_v39 = vld [vmem:[%s11003_s3 + $0x308] sm:$0xff]  ;;  %v3726_v31 = vld [vmem:[%s11003_s3 + $0x300] sm:$0xff]  ;;  %v10623_v34 = vpack.c.bf16 %v3733_v20, %v3729_v23  ;;  %v3737_v20 = vld [vmem:[%s11003_s3 + $0x358] sm:$0xff] }
 0x721   :  { %11515 = vst [vmem:[#allocation34_spill] sm:$0xff] %v10598_v52  ;;  %v10612_v15 = vpack.c.bf16 %v3731_v0, %v3727_v39  ;;  %v3728_v39 = vld [vmem:[%s11003_s3 + $0x310] sm:$0xff]  ;;  %v3739_v23 = vld [vmem:[%s11003_s3 + $0x368] sm:$0xff] }
 0x722   :  { %11514 = vst [vmem:[#allocation33_spill] sm:$0xff] %v10589_v59  ;;  %11517 = vst [vmem:[#allocation36_spill] sm:$0xff] %v10623_v34  ;;  %v3732_v0 = vld [vmem:[%s11003_s3 + $0x330] sm:$0xff] }
 0x723   :  { %6387 = vmatpush1.bf16.msra.mxu0 %v10589_v59  ;;  %6451 = vmatpush1.bf16.msra.mxu1 %v10598_v52  ;;  %11516 = vst [vmem:[#allocation35_spill] sm:$0xff] %v10612_v15  ;;  %v3730_v59 = vld [vmem:[%s11003_s3 + $0x320] sm:$0xff]  ;;  %v10634_v52 = vpack.c.bf16 %v3732_v0, %v3728_v39  ;;  %v3741_v39 = vld [vmem:[%s11003_s3 + $0x378] sm:$0xff] }
 0x724   :  { %v10625_v35 = vpack.c.bf16 %v3730_v59, %v3726_v31  ;;  %6389 = vmatprep.subr.bf16.mxu0 %v10612_v15  ;;  %6453 = vmatprep.subr.bf16.mxu1 %v10623_v34  ;;  %v3735_v59 = vld [vmem:[%s11003_s3 + $0x348] sm:$0xff]  ;;  %v3734_v0 = vld [vmem:[%s11003_s3 + $0x340] sm:$0xff]  ;;  %v10659_v34 = vpack.c.bf16 %v3741_v39, %v3737_v20  ;;  %v3745_v20 = vld [vmem:[%s11003_s3 + $0x398] sm:$0xff] }
 0x725   :  { %11519 = vst [vmem:[#allocation38_spill] sm:$0xff] %v10634_v52  ;;  %v10648_v31 = vpack.c.bf16 %v3739_v23, %v3735_v59  ;;  %v3736_v59 = vld [vmem:[%s11003_s3 + $0x350] sm:$0xff]  ;;  %v3749_v39 = vld [vmem:[%s11003_s3 + $0x3b8] sm:$0xff] }
 0x726   :  { %11518 = vst [vmem:[#allocation37_spill] sm:$0xff] %v10625_v35  ;;  %11521 = vst [vmem:[#allocation40_spill] sm:$0xff] %v10659_v34  ;;  %v3740_v23 = vld [vmem:[%s11003_s3 + $0x370] sm:$0xff] }
 0x727   :  { %6391 = vmatpush1.bf16.msra.mxu0 %v10625_v35  ;;  %6455 = vmatpush1.bf16.msra.mxu1 %v10634_v52  ;;  %11520 = vst [vmem:[#allocation39_spill] sm:$0xff] %v10648_v31  ;;  %v3738_v35 = vld [vmem:[%s11003_s3 + $0x360] sm:$0xff]  ;;  %v3743_v52 = vld [vmem:[%s11003_s3 + $0x388] sm:$0xff]  ;;  %v10673_v60 = vpack.c.bf16 %v3740_v23, %v3736_v59  ;;  %v10688_v59 = vpack.c.bf16 %v3749_v39, %v3745_v20 }
 0x728   :  { %v10661_v15 = vpack.c.bf16 %v3738_v35, %v3734_v0  ;;  %6393 = vmatprep.subr.bf16.mxu0 %v10648_v31  ;;  %v3747_v35 = vld [vmem:[%s11003_s3 + $0x3a8] sm:$0xff]  ;;  %6457 = vmatprep.subr.bf16.mxu1 %v10659_v34  ;;  %v3742_v23 = vld [vmem:[%s11003_s3 + $0x380] sm:$0xff] }
 0x729   :  { %11523 = vst [vmem:[#allocation42_spill] sm:$0xff] %v10673_v60  ;;  %v10686_v0 = vpack.c.bf16 %v3747_v35, %v3743_v52  ;;  %11525 = vst [vmem:[#allocation44_spill] sm:$0xff] %v10688_v59  ;;  %v3746_v31 = vld [vmem:[%s11003_s3 + $0x3a0] sm:$0xff]  ;;  %v3748_v52 = vld [vmem:[%s11003_s3 + $0x3b0] sm:$0xff] }
 0x72a   :  { %11522 = vst [vmem:[#allocation41_spill] sm:$0xff] %v10661_v15  ;;  %v10700_v34 = vpack.c.bf16 %v3746_v31, %v3742_v23  ;;  %v3751_v35 = vld [vmem:[%s11003_s3 + $0x3c8] sm:$0xff]  ;;  %v10713_v39 = vpack.c.bf16 %v3748_v52, %v3744_v13  ;;  %v3753_v23 = vld [vmem:[%s11003_s3 + $0x3d8] sm:$0xff]  ;;  %v3754_v13 = vld [vmem:[%s11003_s3 + $0x3e0] sm:$0xff] }
 0x72b   :  { %6395 = vmatpush1.bf16.msra.mxu0 %v10661_v15  ;;  %11524 = vst [vmem:[#allocation43_spill] sm:$0xff] %v10686_v0  ;;  %6459 = vmatpush1.bf16.msra.mxu1 %v10673_v60  ;;  %v3755_v20 = vld [vmem:[%s11003_s3 + $0x3e8] sm:$0xff]  ;;  %v3757_v60 = vld [vmem:[%s11003_s3 + $0x3f8] sm:$0xff]  ;;  %v3750_v15 = vld [vmem:[%s11003_s3 + $0x3c0] sm:$0xff] }
 0x72c   :  { %11526 = vst [vmem:[#allocation51_spill] sm:$0xff] %v10700_v34  ;;  %6397 = vmatprep.subr.bf16.mxu0 %v10686_v0  ;;  %6461 = vmatprep.subr.bf16.mxu1 %v10688_v59  ;;  %11527 = vst [vmem:[#allocation52_spill] sm:$0xff] %v10713_v39  ;;  %v10715_v31 = vpack.c.bf16 %v3755_v20, %v3751_v35  ;;  %v10726_v50 = vpack.c.bf16 %v3757_v60, %v3753_v23  ;;  %v3752_v52 = vld [vmem:[%s11003_s3 + $0x3d0] sm:$0xff] }
 0x72d   :  { %v3756_v35 = vld [vmem:[%s11003_s3 + $0x3f0] sm:$0xff]  ;;  %v10738_v20 = vpack.c.bf16 %v3754_v13, %v3750_v15 }
 0x72e   :  { %11528 = vst [vmem:[#allocation53_spill] sm:$0xff] %v10715_v31  ;;  %11529 = vst [vmem:[#allocation54_spill] sm:$0xff] %v10726_v50  ;;  %v10742_v60 = vpack.c.bf16 %v3756_v35, %v3752_v52 }
 0x72f   :  { %6399 = vmatpush1.bf16.msra.mxu0 %v10700_v34  ;;  %11530 = vst [vmem:[#allocation55_spill] sm:$0xff] %v10738_v20  ;;  %6463 = vmatpush1.bf16.msra.mxu1 %v10713_v39 }
 0x730   :  { %6401 = vmatprep.subr.bf16.mxu0 %v10715_v31  ;;  %11531 = vst [vmem:[#allocation56_spill] sm:$0xff] %v10742_v60  ;;  %6465 = vmatprep.subr.bf16.mxu1 %v10726_v50 }
 0x733   :  { %6403 = vmatpush1.bf16.msra.mxu0 %v10738_v20  ;;  %6467 = vmatpush1.bf16.msra.mxu1 %v10742_v60 }
 0x734   :  { %6469 = vmatprep.subr.bf16.mxu0 %v9913_v21  ;;  %6500 = vmatprep.subr.bf16.mxu1 %v11239_v54 }
 0x7a9   :  { %v3312_v23 = vpop.f32.mrb[26].mxu0  ;;  %v3383_v34 = vpop.f32.mrb[32].mxu1 }
 0x7aa   :  { %v3388_v15 = vadd.f32 %v9919_v2, %v3312_v23  ;;  %v3314_v13 = vpop.f32.mrb[27].mxu0  ;;  %v3385_v39 = vpop.f32.mrb[33].mxu1  ;;  %v3402_v55 = vadd.f32 %v9937_v56, %v3383_v34 }
 0x7ab   :  { %v3395_v52 = vadd.f32 %v9925_v53, %v3314_v13  ;;  %v3403_v21 = vadd.f32 %v9931_v42, %v3385_v39 }
 0x7ac   :  { %v4647_v59 = vmul.f32 -1.442695, %v3388_v15 }
 0x7ad   :  { %v4648_v35 = vmul.f32 -1.442695, %v3395_v52 }
 0x7ae   :  { %6814 = vpow2.f32 %v4647_v59 }
 0x7af   :  { %6816 = vpow2.f32 %v4648_v35 }
 0x7b8   :  { %v6815_v50 = vpop.eup %6814 }
 0x7b9   :  { %v3392_v20 = vadd.f32 1.0, %v6815_v50  ;;  %v6817_v60 = vpop.eup %6816 }
 0x7ba   :  { %v3399_v31 = vadd.f32 1.0, %v6817_v60 }
 0x7bb   :  { %6818 = vrcp.f32 %v3392_v20 }
 0x7bc   :  { %6820 = vrcp.f32 %v3399_v31 }
 0x7c5   :  { %v6819_v0 = vpop.eup %6818 }
 0x7c6   :  { %v3404_v2 = vmul.f32 %v6819_v0, %v3403_v21  ;;  %v6821_v50 = vpop.eup %6820  ;;  %v10761_v0 = vld [vmem:[%s11004_s4] ss:$0 sm:$0xff] }
 0x7c7   :  { %v3407_v20 = vsub.f32 1.0, %v6821_v50  ;;  %v3409_v42 = vmul.f32 %v6821_v50, %v9941_v47 }
 0x7c8   :  { %v3405_v23 = vadd.f32 %v3404_v2, %v3402_v55 }
 0x7c9   :  { %v3533_v58 = vpop.f32.mrb[12].mxu0  ;;  %v3604_v15 = vpop.f32.mrb[34].mxu1 }
 0x7ca   :  { %6822 = vtanh.f32 %v3405_v23  ;;  %v4649_v53 = vmul.f32 -1.442695, %v3533_v58  ;;  %v3535_v59 = vpop.f32.mrb[13].mxu0  ;;  %v5088_v13 = vpop.f32.mrb[35].mxu1  ;;  %v3622_v31 = vadd.f32 %v10761_v0, %v3604_v15  ;;  %v11532_v23 = vld [vmem:[#allocation50_spill] sm:$0xff]  ;;  %v11576_v15 = vld [vmem:[#allocation53_spill] sm:$0xff] }
 0x7cb   :  { %v4650_v52 = vmul.f32 -1.442695, %v3535_v59 }
 0x7cc   :  { %6824 = vpow2.f32 %v4649_v53 }
 0x7cd   :  { %6826 = vpow2.f32 %v4650_v52 }
 0x7d4   :  { %v6823_v60 = vpop.eup %6822 }
 0x7d5   :  { %v3408_v35 = vmul.f32 %v6823_v60, %v3407_v20 }
 0x7d6   :  { %v6825_v39 = vpop.eup %6824 }
 0x7d7   :  { %v3612_v34 = vadd.f32 1.0, %v6825_v39  ;;  %v10754_v56 = vadd.f32 %v3409_v42, %v3408_v35  ;;  %v6827_v58 = vpop.eup %6826  ;;  %v11577_v35 = vld [vmem:[#allocation54_spill] sm:$0xff]  ;;  %v11578_v42 = vld [vmem:[#allocation55_spill] sm:$0xff]  ;;  %v11579_v39 = vld [vmem:[#allocation56_spill] sm:$0xff] }
 0x7d8   :  { %v3619_v55 = vadd.f32 1.0, %v6827_v58  ;;  %v4446_v58 = vld [vmem:[%s11005_s5 + $0x8] sm:$0xff] }
 0x7d9   :  { %6828 = vrcp.f32 %v3612_v34  ;;  %3822 = vmatprep.mubr.f32.mxu0 %v10754_v56  ;;  %3893 = vmatprep.mubr.f32.mxu1 %v10754_v56  ;;  %v4445_v34 = vld [vmem:[%s11005_s5] sm:$0xff] }
 0x7da   :  { %6830 = vrcp.f32 %v3619_v55  ;;  %v10875_v55 = vpack.c.bf16 %v4446_v58, %v4445_v34  ;;  %v4454_v34 = vld [vmem:[%s11005_s5 + $0x48] sm:$0xff] }
 0x7e3   :  { %v6829_v21 = vpop.eup %6828 }
 0x7e4   :  { %v3623_v2 = vmul.f32 %v6829_v21, %v3622_v31  ;;  %v6831_v59 = vpop.eup %6830 }
 0x7e5   :  { %v3626_v13 = vsub.f32 1.0, %v6831_v59  ;;  %v3628_v20 = vmul.f32 %v6831_v59, %v9973_v30  ;;  %v11537_v30 = vld [vmem:[#allocation8_spill] sm:$0xff] }
 0x7e6   :  { %v3624_v53 = vadd.f32 %v3623_v2, %v11532_v23  ;;  %v10881_v2 = vld [vmem:[%s11004_s4 + $0x1] ss:$0 sm:$0xff] }
 0x7e8   :  { %6832 = vtanh.f32 %v3624_v53 }
 0x7f2   :  { %v6833_v52 = vpop.eup %6832 }
 0x7f3   :  { %v3627_v50 = vmul.f32 %v6833_v52, %v3626_v13  ;;  %v10887_v52 = vld [vmem:[%s11004_s4 + $0x2] ss:$0 sm:$0xff] }
 0x7f5   :  { %v10766_v60 = vadd.f32 %v3628_v20, %v3627_v50 }
 0x7f7   :  { %3823 = vmatmul.mubr.f32.vlgmr.msra.gmra.mrb[28].mxu0 %v10766_v60  ;;  %3894 = vmatmul.mubr.f32.vlgmr.msra.gmra.mrb[36].mxu1 %v10766_v60 }
 0x7f8   :  { %6471 = vmatpush1.bf16.msra.mxu0 %v9966_v19  ;;  %6502 = vmatpush3.bf16.msra.mxu1 %v9968_v16  ;;  %v11535_v19 = vld [vmem:[#allocation6_spill] sm:$0xff]  ;;  %v11536_v16 = vld [vmem:[#allocation7_spill] sm:$0xff] }
 0x7f9   :  { %6473 = vmatprep.subr.bf16.mxu0 %v9975_v44  ;;  %6503 = vmatprep.subr.bf16.mxu1 %v11239_v54  ;;  %v11538_v44 = vld [vmem:[#allocation9_spill] sm:$0xff] }
 0x7fa   :  { %4043 = vmatprep.mubr.f32.mxu0 %v11247_v8  ;;  %5121 = vmatprep.mubr.msk.f32.mxu1 %vm6898_vm4, %v11247_v8  ;;  %v11534_v8 = vld [vmem:[#allocation5_spill] sm:$0xff] }
 0x7fc   :  { %6475 = vmatpush1.bf16.msra.mxu0 %v9996_v28  ;;  %6505 = vmatpush3.bf16.msra.mxu1 %v9998_v10  ;;  %v11539_v28 = vld [vmem:[#allocation10_spill] sm:$0xff]  ;;  %v11540_v10 = vld [vmem:[#allocation11_spill] sm:$0xff] }
 0x7fd   :  { %6477 = vmatprep.subr.bf16.mxu0 %v10005_v36  ;;  %6506 = vmatprep.subr.bf16.mxu1 %v11239_v54  ;;  %v11541_v36 = vld [vmem:[#allocation12_spill] sm:$0xff] }
 0x800   :  { %6479 = vmatpush1.bf16.msra.mxu0 %v10027_v45  ;;  %6508 = vmatpush3.bf16.msra.mxu1 %v10029_v38  ;;  %v11542_v45 = vld [vmem:[#allocation13_spill] sm:$0xff]  ;;  %v11543_v38 = vld [vmem:[#allocation14_spill] sm:$0xff] }
 0x801   :  { %6481 = vmatprep.subr.bf16.mxu0 %v10036_v7  ;;  %6509 = vmatprep.subr.bf16.mxu1 %v11239_v54  ;;  %v11544_v7 = vld [vmem:[#allocation15_spill] sm:$0xff] }
 0x804   :  { %6483 = vmatpush1.bf16.msra.mxu0 %v10055_v61  ;;  %6511 = vmatpush3.bf16.msra.mxu1 %v10057_v33  ;;  %v11545_v61 = vld [vmem:[#allocation16_spill] sm:$0xff]  ;;  %v11546_v33 = vld [vmem:[#allocation17_spill] sm:$0xff] }
 0x805   :  { %6485 = vmatprep.subr.bf16.mxu0 %v10064_v22  ;;  %6512 = vmatprep.subr.bf16.mxu1 %v11239_v54  ;;  %v11547_v22 = vld [vmem:[#allocation18_spill] sm:$0xff] }
 0x808   :  { %6487 = vmatpush1.bf16.msra.mxu0 %v10083_v25  ;;  %6514 = vmatpush3.bf16.msra.mxu1 %v10085_v51  ;;  %v11548_v25 = vld [vmem:[#allocation19_spill] sm:$0xff]  ;;  %v11549_v51 = vld [vmem:[#allocation20_spill] sm:$0xff] }
 0x809   :  { %6489 = vmatprep.subr.bf16.mxu0 %v10092_v63  ;;  %6515 = vmatprep.subr.bf16.mxu1 %v11239_v54  ;;  %v11550_v63 = vld [vmem:[#allocation21_spill] sm:$0xff] }
 0x80c   :  { %6491 = vmatpush1.bf16.msra.mxu0 %v10111_v14  ;;  %6517 = vmatpush3.bf16.msra.mxu1 %v10113_v27  ;;  %v11551_v14 = vld [vmem:[#allocation22_spill] sm:$0xff]  ;;  %v11552_v27 = vld [vmem:[#allocation23_spill] sm:$0xff] }
 0x80d   :  { %6493 = vmatprep.subr.bf16.mxu0 %v10120_v1  ;;  %6518 = vmatprep.subr.bf16.mxu1 %v11239_v54  ;;  %v11553_v1 = vld [vmem:[#allocation24_spill] sm:$0xff] }
 0x810   :  { %6495 = vmatpush1.bf16.msra.mxu0 %v10139_v4  ;;  %6520 = vmatpush3.bf16.msra.mxu1 %v10141_v18  ;;  %v11554_v4 = vld [vmem:[#allocation25_spill] sm:$0xff]  ;;  %v11555_v18 = vld [vmem:[#allocation26_spill] sm:$0xff] }
 0x811   :  { %6497 = vmatprep.subr.bf16.mxu0 %v10148_v48  ;;  %6521 = vmatprep.subr.bf16.mxu1 %v11239_v54  ;;  %v11533_v54 = vld [vmem:[#allocation48_spill] sm:$0xff]  ;;  %v11556_v48 = vld [vmem:[#allocation27_spill] sm:$0xff] }
 0x814   :  { %6499 = vmatpush1.bf16.msra.mxu0 %v10161_v41  ;;  %6523 = vmatpush3.bf16.msra.mxu1 %v10163_v43  ;;  %v11557_v41 = vld [vmem:[#allocation28_spill] sm:$0xff]  ;;  %v11558_v43 = vld [vmem:[#allocation29_spill] sm:$0xff] }
 0x815   :  { %6525 = vmatprep.subr.bf16.mxu0 %v10180_v6  ;;  %6589 = vmatprep.subr.bf16.mxu1 %v10191_v5  ;;  %v11559_v6 = vld [vmem:[#allocation30_spill] sm:$0xff]  ;;  %v11560_v5 = vld [vmem:[#allocation31_spill] sm:$0xff] }
 0x817   :  { %4044 = vmatmul.mubr.f32.vlgmr.msra.gmra.mrb[14].mxu0 %v10766_v60  ;;  %5122 = vmatmul.mubr.f32.vlgmr.msra.gmra.mrb[38].mxu1 %v10766_v60 }
 0x818   :  { %6527 = vmatpush1.bf16.msra.mxu0 %v10193_v12  ;;  %6591 = vmatpush1.bf16.msra.mxu1 %v10202_v11  ;;  %v11561_v12 = vld [vmem:[#allocation32_spill] sm:$0xff]  ;;  %v11562_v11 = vld [vmem:[#allocation33_spill] sm:$0xff] }
 0x819   :  { %6529 = vmatprep.subr.bf16.mxu0 %v10216_v46  ;;  %6593 = vmatprep.subr.bf16.mxu1 %v10227_v57  ;;  %v11563_v46 = vld [vmem:[#allocation34_spill] sm:$0xff]  ;;  %v11564_v57 = vld [vmem:[#allocation35_spill] sm:$0xff] }
 0x81c   :  { %6531 = vmatpush1.bf16.msra.mxu0 %v10229_v9  ;;  %6595 = vmatpush1.bf16.msra.mxu1 %v10238_v40  ;;  %v11565_v9 = vld [vmem:[#allocation36_spill] sm:$0xff]  ;;  %v11566_v40 = vld [vmem:[#allocation37_spill] sm:$0xff] }
 0x81d   :  { %6533 = vmatprep.subr.bf16.mxu0 %v10252_v37  ;;  %6597 = vmatprep.subr.bf16.mxu1 %v10263_v26  ;;  %v11567_v37 = vld [vmem:[#allocation38_spill] sm:$0xff]  ;;  %v11568_v26 = vld [vmem:[#allocation39_spill] sm:$0xff] }
 0x820   :  { %6535 = vmatpush1.bf16.msra.mxu0 %v10265_v29  ;;  %6599 = vmatpush1.bf16.msra.mxu1 %v10274_v24  ;;  %v11569_v29 = vld [vmem:[#allocation40_spill] sm:$0xff]  ;;  %v11570_v24 = vld [vmem:[#allocation41_spill] sm:$0xff] }
 0x821   :  { %6537 = vmatprep.subr.bf16.mxu0 %v10288_v32  ;;  %6601 = vmatprep.subr.bf16.mxu1 %v10299_v49  ;;  %v11571_v32 = vld [vmem:[#allocation42_spill] sm:$0xff]  ;;  %v11572_v49 = vld [vmem:[#allocation43_spill] sm:$0xff] }
 0x824   :  { %6539 = vmatpush1.bf16.msra.mxu0 %v10301_v3  ;;  %6603 = vmatpush1.bf16.msra.mxu1 %v10310_v17  ;;  %v11573_v3 = vld [vmem:[#allocation44_spill] sm:$0xff]  ;;  %v11574_v17 = vld [vmem:[#allocation51_spill] sm:$0xff] }
 0x825   :  { %6541 = vmatprep.subr.bf16.mxu0 %v10324_v62  ;;  %6605 = vmatprep.subr.bf16.mxu1 %v11533_v54  ;;  %v11575_v62 = vld [vmem:[#allocation52_spill] sm:$0xff] }
 0x828   :  { %6543 = vmatpush1.bf16.msra.mxu0 %v11534_v8  ;;  %6607 = vmatpush1.bf16.msra.mxu1 %v11535_v19 }
 0x829   :  { %6545 = vmatprep.subr.bf16.mxu0 %v11536_v16  ;;  %6609 = vmatprep.subr.bf16.mxu1 %v11537_v30  ;;  %v10893_v30 = vld [vmem:[%s11004_s4 + $0x4] ss:$0 sm:$0xff] }
 0x82c   :  { %6547 = vmatpush1.bf16.msra.mxu0 %v11538_v44  ;;  %6611 = vmatpush1.bf16.msra.mxu1 %v11539_v28 }
 0x82d   :  { %6549 = vmatprep.subr.bf16.mxu0 %v11540_v10  ;;  %6613 = vmatprep.subr.bf16.mxu1 %v11541_v36  ;;  %v10899_v10 = vld [vmem:[%s11004_s4 + $0x3] ss:$0 sm:$0xff] }
 0x830   :  { %6551 = vmatpush1.bf16.msra.mxu0 %v11542_v45  ;;  %6615 = vmatpush1.bf16.msra.mxu1 %v11543_v38 }
 0x831   :  { %6553 = vmatprep.subr.bf16.mxu0 %v11544_v7  ;;  %6617 = vmatprep.subr.bf16.mxu1 %v11545_v61 }
 0x834   :  { %6555 = vmatpush1.bf16.msra.mxu0 %v11546_v33  ;;  %6619 = vmatpush1.bf16.msra.mxu1 %v11547_v22 }
 0x835   :  { %6557 = vmatprep.subr.bf16.mxu0 %v11548_v25  ;;  %6621 = vmatprep.subr.bf16.mxu1 %v11549_v51 }
 0x838   :  { %6559 = vmatpush1.bf16.msra.mxu0 %v11550_v63  ;;  %6623 = vmatpush1.bf16.msra.mxu1 %v11551_v14 }
 0x839   :  { %6561 = vmatprep.subr.bf16.mxu0 %v11552_v27  ;;  %6625 = vmatprep.subr.bf16.mxu1 %v11553_v1 }
 0x83c   :  { %6563 = vmatpush1.bf16.msra.mxu0 %v11554_v4  ;;  %6627 = vmatpush1.bf16.msra.mxu1 %v11555_v18 }
 0x83d   :  { %6565 = vmatprep.subr.bf16.mxu0 %v11556_v48  ;;  %6629 = vmatprep.subr.bf16.mxu1 %v11557_v41 }
 0x840   :  { %6567 = vmatpush1.bf16.msra.mxu0 %v11558_v43  ;;  %6631 = vmatpush1.bf16.msra.mxu1 %v11559_v6 }
 0x841   :  { %6569 = vmatprep.subr.bf16.mxu0 %v11560_v5  ;;  %6633 = vmatprep.subr.bf16.mxu1 %v11561_v12 }
 0x844   :  { %6571 = vmatpush1.bf16.msra.mxu0 %v11562_v11  ;;  %6635 = vmatpush1.bf16.msra.mxu1 %v11563_v46  ;;  %v11580_v46 = vld [vmem:[#allocation49_spill] sm:$0xff] }
 0x845   :  { %6573 = vmatprep.subr.bf16.mxu0 %v11564_v57  ;;  %6637 = vmatprep.subr.bf16.mxu1 %v11565_v9 }
 0x848   :  { %6575 = vmatpush1.bf16.msra.mxu0 %v11566_v40  ;;  %6639 = vmatpush1.bf16.msra.mxu1 %v11567_v37 }
 0x849   :  { %6577 = vmatprep.subr.bf16.mxu0 %v11568_v26  ;;  %6641 = vmatprep.subr.bf16.mxu1 %v11569_v29  ;;  %v4447_v26 = vld [vmem:[%s11005_s5 + $0x10] sm:$0xff]  ;;  %v4448_v29 = vld [vmem:[%s11005_s5 + $0x18] sm:$0xff] }
 0x84c   :  { %6579 = vmatpush1.bf16.msra.mxu0 %v11570_v24  ;;  %6643 = vmatpush1.bf16.msra.mxu1 %v11571_v32 }
 0x84d   :  { %6581 = vmatprep.subr.bf16.mxu0 %v11572_v49  ;;  %6645 = vmatprep.subr.bf16.mxu1 %v11573_v3  ;;  %v6656_v49 = vpack.c.bf16 %v4448_v29, %v4447_v26  ;;  %v4449_v3 = vld [vmem:[%s11005_s5 + $0x20] sm:$0xff] }
 0x850   :  { %6583 = vmatpush1.bf16.msra.mxu0 %v11574_v17  ;;  %6647 = vmatpush1.bf16.msra.mxu1 %v11575_v62  ;;  %v4450_v17 = vld [vmem:[%s11005_s5 + $0x28] sm:$0xff]  ;;  %v11581_v62 = vld [vmem:[#allocation4_spill] sm:$0xff] }
 0x851   :  { %6585 = vmatprep.subr.bf16.mxu0 %v11576_v15  ;;  %6649 = vmatprep.subr.bf16.mxu1 %v11577_v35  ;;  %v6660_v15 = vpack.c.bf16 %v4450_v17, %v4449_v3  ;;  %v4452_v35 = vld [vmem:[%s11005_s5 + $0x38] sm:$0xff] }
 0x854   :  { %6587 = vmatpush1.bf16.msra.mxu0 %v11578_v42  ;;  %6651 = vmatpush1.bf16.msra.mxu1 %v11579_v39  ;;  %v4453_v39 = vld [vmem:[%s11005_s5 + $0x40] sm:$0xff] }
 0x855   :  { %6653 = vmatprep.subr.bf16.mxu0 %v10875_v55  ;;  %v6668_v58 = vpack.c.bf16 %v4454_v34, %v4453_v39 }
 0x8ca   :  { %v3824_v31 = vpop.f32.mrb[28].mxu0  ;;  %v3895_v21 = vpop.f32.mrb[36].mxu1 }
 0x8cb   :  { %v3900_v23 = vadd.f32 %v10881_v2, %v3824_v31  ;;  %v3826_v53 = vpop.f32.mrb[29].mxu0  ;;  %v3897_v59 = vpop.f32.mrb[37].mxu1  ;;  %v3914_v36 = vadd.f32 %v10899_v10, %v3895_v21  ;;  %v4456_v31 = vld [vmem:[%s11005_s5 + $0x58] sm:$0xff] }
 0x8cc   :  { %v3907_v50 = vadd.f32 %v10887_v52, %v3826_v53  ;;  %v3915_v44 = vadd.f32 %v10893_v30, %v3897_v59  ;;  %v4458_v53 = vld [vmem:[%s11005_s5 + $0x68] sm:$0xff] }
 0x8cd   :  { %v4651_v13 = vmul.f32 -1.442695, %v3900_v23  ;;  %v4457_v23 = vld [vmem:[%s11005_s5 + $0x60] sm:$0xff] }
 0x8ce   :  { %v4652_v20 = vmul.f32 -1.442695, %v3907_v50  ;;  %v6676_v59 = vpack.c.bf16 %v4458_v53, %v4457_v23  ;;  %v4460_v50 = vld [vmem:[%s11005_s5 + $0x78] sm:$0xff] }
 0x8cf   :  { %6834 = vpow2.f32 %v4651_v13  ;;  %v4459_v13 = vld [vmem:[%s11005_s5 + $0x70] sm:$0xff] }
 0x8d0   :  { %6836 = vpow2.f32 %v4652_v20  ;;  %v6680_v20 = vpack.c.bf16 %v4460_v50, %v4459_v13 }
 0x8d9   :  { %v6835_v54 = vpop.eup %6834 }
 0x8da   :  { %v3904_v8 = vadd.f32 1.0, %v6835_v54  ;;  %v6837_v19 = vpop.eup %6836  ;;  %v11582_v54 = vld [vmem:[#allocation58_spill] sm:$0xff] }
 0x8db   :  { %v3911_v16 = vadd.f32 1.0, %v6837_v19  ;;  %v11584_v19 = vld [vmem:[#allocation45_spill] sm:$0xff] }
 0x8dc   :  { %6838 = vrcp.f32 %v3904_v8  ;;  %v11583_v8 = vld [vmem:[#allocation46_spill] sm:$0xff] }
 0x8dd   :  { %6840 = vrcp.f32 %v3911_v16 }
 0x8e6   :  { %v6839_v28 = vpop.eup %6838 }
 0x8e7   :  { %v3916_v45 = vmul.f32 %v6839_v28, %v3915_v44  ;;  %v6841_v63 = vpop.eup %6840 }
 0x8e8   :  { %v3919_v14 = vsub.f32 1.0, %v6841_v63  ;;  %v3921_v4 = vmul.f32 %v6841_v63, %v10754_v56 }
 0x8e9   :  { %v3917_v38 = vadd.f32 %v3916_v45, %v3914_v36 }
 0x8ea   :  { %v4045_v7 = vpop.f32.mrb[14].mxu0  ;;  %v4116_v61 = vpop.f32.mrb[38].mxu1 }
 0x8eb   :  { %6842 = vtanh.f32 %v3917_v38  ;;  %v4653_v33 = vmul.f32 -1.442695, %v4045_v7  ;;  %v4047_v22 = vpop.f32.mrb[15].mxu0  ;;  %v5123_v25 = vpop.f32.mrb[39].mxu1  ;;  %v4134_v5 = vadd.f32 %v10761_v0, %v4116_v61 }
 0x8ec   :  { %v4654_v51 = vmul.f32 -1.442695, %v4047_v22 }
 0x8ed   :  { %6844 = vpow2.f32 %v4653_v33 }
 0x8ee   :  { %6846 = vpow2.f32 %v4654_v51 }
 0x8f5   :  { %v6843_v27 = vpop.eup %6842 }
 0x8f6   :  { %v3920_v1 = vmul.f32 %v6843_v27, %v3919_v14  ;;  %v4657_v14 = vld [vmem:[%s11006_s6] ss:$0 sm:$0xff] }
 0x8f7   :  { %v6845_v18 = vpop.eup %6844 }
 0x8f8   :  { %v4124_v48 = vadd.f32 1.0, %v6845_v18  ;;  %v10903_v41 = vadd.f32 %v3921_v4, %v3920_v1  ;;  %v6847_v43 = vpop.eup %6846 }
 0x8f9   :  { %v4131_v6 = vadd.f32 1.0, %v6847_v43 }
 0x8fa   :  { %6848 = vrcp.f32 %v4124_v48  ;;  %4334 = vmatprep.mubr.f32.mxu0 %v10903_v41  ;;  %4405 = vmatprep.mubr.f32.mxu1 %v10903_v41 }
 0x8fb   :  { %6850 = vrcp.f32 %v4131_v6 }
 0x904   :  { %v6849_v12 = vpop.eup %6848 }
 0x905   :  { %v4135_v11 = vmul.f32 %v6849_v12, %v4134_v5  ;;  %v6851_v9 = vpop.eup %6850 }
 0x906   :  { %v4138_v40 = vsub.f32 1.0, %v6851_v9  ;;  %v4140_v0 = vmul.f32 %v6851_v9, %v10766_v60  ;;  %v4451_v60 = vld [vmem:[%s11005_s5 + $0x30] sm:$0xff] }
 0x907   :  { %v4136_v57 = vadd.f32 %v11580_v46, %v4135_v11  ;;  %v6664_v42 = vpack.c.bf16 %v4452_v35, %v4451_v60 }
 0x909   :  { %6852 = vtanh.f32 %v4136_v57 }
 0x913   :  { %v6853_v37 = vpop.eup %6852 }
 0x914   :  { %v4139_v24 = vmul.f32 %v6853_v37, %v4138_v40 }
 0x916   :  { %v4141_v32 = vadd.f32 %v4140_v0, %v4139_v24 }
 0x918   :  { %4335 = vmatmul.mubr.f32.vlgmr.msra.gmra.mrb[30].mxu0 %v4141_v32  ;;  %4406 = vmatmul.mubr.f32.vlgmr.msra.gmra.mrb[40].mxu1 %v4141_v32 }
 0x919   :  { %6655 = vmatpush3.bf16.msra.mxu0 %v10875_v55  ;;  %5156 = vmatprep.mubr.f32.mxu0 %v11581_v62  ;;  %v4455_v55 = vld [vmem:[%s11005_s5 + $0x50] sm:$0xff] }
 0x91a   :  { %6657 = vmatprep.subr.bf16.mxu0 %v6656_v49  ;;  %v6672_v21 = vpack.c.bf16 %v4456_v31, %v4455_v55 }
 0x91d   :  { %6659 = vmatpush3.bf16.msra.mxu0 %v6656_v49 }
 0x91e   :  { %6661 = vmatprep.subr.bf16.mxu0 %v6660_v15 }
 0x921   :  { %6663 = vmatpush3.bf16.msra.mxu0 %v6660_v15 }
 0x922   :  { %6665 = vmatprep.subr.bf16.mxu0 %v6664_v42 }
 0x925   :  { %6667 = vmatpush3.bf16.msra.mxu0 %v6664_v42 }
 0x926   :  { %6669 = vmatprep.subr.bf16.mxu0 %v6668_v58 }
 0x929   :  { %6671 = vmatpush3.bf16.msra.mxu0 %v6668_v58 }
 0x92a   :  { %6673 = vmatprep.subr.bf16.mxu0 %v6672_v21 }
 0x92d   :  { %6675 = vmatpush3.bf16.msra.mxu0 %v6672_v21 }
 0x92e   :  { %6677 = vmatprep.subr.bf16.mxu0 %v6676_v59 }
 0x931   :  { %6679 = vmatpush3.bf16.msra.mxu0 %v6676_v59 }
 0x932   :  { %6681 = vmatprep.subr.bf16.mxu0 %v6680_v20 }
 0x935   :  { %6683 = vmatpush3.bf16.msra.mxu0 %v6680_v20 }
 0x938   :  { %5157 = vmatmul.mubr.f32.vlgmr.msra.gmra.mrb[32].mxu0 %v11582_v54 }
 0x939   :  { %5159 = vmatprep.mubr.f32.mxu0 %v11583_v8 }
 0x93c   :  { %5160 = vmatmul.mubr.f32.gmra.mrb[34].mxu0 %v11584_v19 }
 0x93d   :  { %5162 = vmatprep.mubr.f32.mxu0 %v9941_v47 }
 0x940   :  { %5163 = vmatmul.mubr.f32.gmra.mrb[36].mxu0 %v10754_v56 }
 0x941   :  { %5165 = vmatprep.mubr.f32.mxu0 %v10903_v41 }
 0x9eb   :  { %v4336_v16 = vpop.f32.mrb[30].mxu0  ;;  %v4407_v44 = vpop.f32.mrb[40].mxu1 }
 0x9ec   :  { %v4412_v28 = vadd.f32 %v10881_v2, %v4336_v16  ;;  %v4338_v36 = vpop.f32.mrb[31].mxu0  ;;  %v4409_v45 = vpop.f32.mrb[41].mxu1  ;;  %v4426_v63 = vadd.f32 %v10899_v10, %v4407_v44 }
 0x9ed   :  { %v4419_v7 = vadd.f32 %v10887_v52, %v4338_v36  ;;  %v4427_v56 = vadd.f32 %v10893_v30, %v4409_v45 }
 0x9ee   :  { %v4655_v38 = vmul.f32 -1.442695, %v4412_v28 }
 0x9ef   :  { %v4656_v61 = vmul.f32 -1.442695, %v4419_v7 }
 0x9f0   :  { %6854 = vpow2.f32 %v4655_v38 }
 0x9f1   :  { %6856 = vpow2.f32 %v4656_v61 }
 0x9fa   :  { %v6855_v33 = vpop.eup %6854 }
 0x9fb   :  { %v4416_v22 = vadd.f32 1.0, %v6855_v33  ;;  %v6857_v47 = vpop.eup %6856 }
 0x9fc   :  { %v4423_v25 = vadd.f32 1.0, %v6857_v47 }
 0x9fd   :  { %6858 = vrcp.f32 %v4416_v22 }
 0x9fe   :  { %6860 = vrcp.f32 %v4423_v25 }
 0xa07   :  { %v6859_v51 = vpop.eup %6858 }
 0xa08   :  { %v4428_v2 = vmul.f32 %v6859_v51, %v4427_v56  ;;  %v6861_v5 = vpop.eup %6860 }
 0xa09   :  { %v4431_v57 = vsub.f32 1.0, %v6861_v5  ;;  %v4433_v37 = vmul.f32 %v6861_v5, %v10903_v41 }
 0xa0a   :  { %v4429_v52 = vadd.f32 %v4428_v2, %v4426_v63 }
 0xa0b   :  { %v5158_v27 = vpop.f32.mrb[32].mxu0 }
 0xa0c   :  { %6862 = vtanh.f32 %v4429_v52  ;;  %v4540_v1 = vadd.f32 %v5158_v27, %v4657_v14  ;;  %v4534_v4 = vpop.f32.mrb[33].mxu0 }
 0xa0d   :  { %v4535_v18 = vadd.f32 %v4657_v14, %v4534_v4 }
 0xa0e   :  { %6864 = vtanh.f32 %v4540_v1 }
 0xa0f   :  { %6866 = vtanh.f32 %v4535_v18  ;;  %v5161_v48 = vpop.f32.mrb[34].mxu0 }
 0xa10   :  { %v4550_v43 = vadd.f32 %v5161_v48, %v4657_v14  ;;  %v4544_v30 = vpop.f32.mrb[35].mxu0 }
 0xa11   :  { %v4545_v6 = vadd.f32 %v4657_v14, %v4544_v30 }
 0xa12   :  { %6868 = vtanh.f32 %v4550_v43 }
 0xa13   :  { %6870 = vtanh.f32 %v4545_v6  ;;  %v5164_v10 = vpop.f32.mrb[36].mxu0 }
 0xa14   :  { %v4560_v12 = vadd.f32 %v5164_v10, %v4657_v14  ;;  %v4554_v11 = vpop.f32.mrb[37].mxu0 }
 0xa15   :  { %v4555_v46 = vadd.f32 %v4657_v14, %v4554_v11 }
 0xa16   :  { %v6863_v9 = vpop.eup %6862  ;;  %6872 = vtanh.f32 %v4560_v12 }
 0xa17   :  { %6874 = vtanh.f32 %v4555_v46  ;;  %v4432_v40 = vmul.f32 %v6863_v9, %v4431_v57 }
 0xa18   :  { %v6865_v26 = vpop.eup %6864 }
 0xa19   :  { %v6867_v29 = vpop.eup %6866  ;;  %4583 = vst.msk [vmem:[%s11007_s7 + $0x8] sm:$0xff] %vm4581_vm5, %v6865_v26  ;;  %v4434_v24 = vadd.f32 %v4433_v37, %v4432_v40 }
 0xa1a   :  { %4582 = vst.msk [vmem:[%s11007_s7] sm:$0xff] %vm4581_vm5, %v6867_v29 }
 0xa1b   :  { %5166 = vmatmul.mubr.f32.gmra.mrb[38].mxu0 %v4434_v24 }
 0xa1c   :  { %v6869_v0 = vpop.eup %6868 }
 0xa1d   :  { %v6871_v32 = vpop.eup %6870  ;;  %4585 = vst.msk [vmem:[%s11007_s7 + $0x18] sm:$0xff] %vm4581_vm5, %v6869_v0 }
 0xa1e   :  { %4584 = vst.msk [vmem:[%s11007_s7 + $0x10] sm:$0xff] %vm4581_vm5, %v6871_v32 }
 0xa20   :  { %v6873_v41 = vpop.eup %6872 }
 0xa21   :  { %v6875_v49 = vpop.eup %6874  ;;  %4587 = vst.msk [vmem:[%s11007_s7 + $0x28] sm:$0xff] %vm4581_vm5, %v6873_v41 }
 0xa22   :  { %4586 = vst.msk [vmem:[%s11007_s7 + $0x20] sm:$0xff] %vm4581_vm5, %v6875_v49 }
 0xaee   :  { %v5167_v3 = vpop.f32.mrb[38].mxu0 }
 0xaef   :  { %v4570_v17 = vadd.f32 %v5167_v3, %v4657_v14  ;;  %v4564_v62 = vpop.f32.mrb[39].mxu0 }
 0xaf0   :  { %v4565_v15 = vadd.f32 %v4657_v14, %v4564_v62 }
 0xaf1   :  { %6876 = vtanh.f32 %v4570_v17 }
 0xaf2   :  { %6878 = vtanh.f32 %v4565_v15 }
 0xafb   :  { %v6877_v60 = vpop.eup %6876 }
 0xafc   :  { %v6879_v35 = vpop.eup %6878  ;;  %4589 = vst.msk [vmem:[%s11007_s7 + $0x38] sm:$0xff] %vm4581_vm5, %v6877_v60 }
 0xafd   :  { %4588 = vst.msk [vmem:[%s11007_s7 + $0x30] sm:$0xff] %vm4581_vm5, %v6879_v35 }

</bundles_post_ra>
